<compile_context>
chip_gen: v6e
topology: v6e:2x2x1
jax: 0.10.0
libtpu: 0.0.40
codegen_flags: <defaults>
</compile_context>

<pallas_src>
import math

import jax
import jax.numpy as jnp
from jax.experimental import pallas as pl
from jax.experimental.pallas import tpu as pltpu

# ----------------------------- small ViT config -----------------------------
IMG = 16          # image_size
PATCH = 4         # patches (fh = fw)
IN_CH = 3         # in_channels
DIM = 32          # dim
FF_DIM = 64       # ff_dim
HEADS = 4         # num_heads
LAYERS = 2        # num_layers
BATCH = 2

GH = IMG // PATCH
SEQ = GH * GH               # number of patches (16)
SEQ1 = SEQ + 1              # + class token (17)
S_PAD = 24                  # padded token count (3 clean sublanes)
PAD_TAIL = S_PAD - SEQ1     # 7 padded (masked) rows
HEAD_DIM = DIM // HEADS
EPS = 1e-6                  # LayerNorm eps (nn.LayerNorm(..., eps=1e-6))
PATCH_VEC = IN_CH * PATCH * PATCH
NEG_INF = -1e30

BBLK = BATCH                # batch elements folded into one grid step
BT = BBLK * S_PAD           # rows per grid step (48)
VEC_W = 3 * DIM             # packed parameter-vector slab width (96)


# ------------------------------ Pallas kernel --------------------------------
def _layernorm(z, g, b):
    # z: (R, D), g/b: (1, D); biased variance like torch.nn.LayerNorm
    m = jnp.mean(z, axis=-1, keepdims=True)
    v = jnp.mean((z - m) ** 2, axis=-1, keepdims=True)
    return (z - m) * jax.lax.rsqrt(v + EPS) * g + b


def _vit_kernel(xp_ref, base_ref, wp_ref, wqkv_ref, wo_ref, w1_ref, w2_ref,
                vecs_ref, x5_ref, x8_ref):
    # ---- patch embedding + class token + positional embedding (fused) ----
    # xp_ref  : (BT, PATCH_VEC); cls row and pad rows are zeros.
    # base_ref: (BT, DIM) = per-batch [cls + pos0, pos1..16 + patch_bias, zeros].
    tok = jnp.dot(xp_ref[...].astype(jnp.bfloat16), wp_ref[...],
                  preferred_element_type=jnp.float32) + base_ref[...]   # (BT, D)

    # ---- block-diagonal key-mask bias (per batch element, pad cols = -inf) ----
    row = jax.lax.broadcasted_iota(jnp.int32, (BT, BT), 0)
    col = jax.lax.broadcasted_iota(jnp.int32, (BT, BT), 1)
    valid = None
    for b in range(BBLK):                       # static, tiny (VPU compares only)
        lo = b * S_PAD
        blk = ((row >= lo) & (row < lo + S_PAD) &
               (col >= lo) & (col < lo + SEQ1))
        valid = blk if valid is None else (valid | blk)
    kbias = jnp.where(valid, 0.0, NEG_INF).astype(jnp.float32)          # (BT, BT)

    inv_sqrt2 = 1.0 / math.sqrt(2.0)

    for l in range(LAYERS):                     # static layer loop (unrolled)
        vl = vecs_ref[l]                        # (8, VEC_W) packed f32 vectors
        ln1g = vl[0:1, :DIM];  ln1b = vl[1:2, :DIM]
        bqkv = vl[2:3, :]                       # (1, 3*DIM), head-major, q scaled
        bo   = vl[3:4, :DIM]
        ln2g = vl[4:5, :DIM];  ln2b = vl[5:6, :DIM]
        b1   = vl[6:7, :FF_DIM]
        b2   = vl[7:8, :DIM]

        # ---------------- multi-head self attention (pre-norm) ----------------
        h = _layernorm(tok, ln1g, ln1b)                                  # f32
        qkv = jnp.dot(h.astype(jnp.bfloat16), wqkv_ref[l],
                      preferred_element_type=jnp.float32) + bqkv         # (BT,3D)

        ctxs = []
        for hd in range(HEADS):                 # static head loop
            off = hd * 3 * HEAD_DIM             # head-major: [q_h | k_h | v_h]
            q = qkv[:, off:off + HEAD_DIM]      # 1/sqrt(dh) folded into Wq/bq
            k = qkv[:, off + HEAD_DIM:off + 2 * HEAD_DIM]
            v = qkv[:, off + 2 * HEAD_DIM:off + 3 * HEAD_DIM]
            # q @ k^T without an explicit transpose (rhs-contracting dims)
            s = jax.lax.dot_general(
                q.astype(jnp.bfloat16), k.astype(jnp.bfloat16),
                dimension_numbers=(((1,), (1,)), ((), ())),
                preferred_element_type=jnp.float32) + kbias
            s = s - jnp.max(s, axis=-1, keepdims=True)
            p = jnp.exp(s)
            p = p * pl.reciprocal(jnp.sum(p, axis=-1, keepdims=True),
                                  approx=True)
            ctxs.append(jnp.dot(p.astype(jnp.bfloat16), v.astype(jnp.bfloat16),
                                preferred_element_type=jnp.float32))     # (BT,dh)

        # single output projection: concat heads along lanes, one MXU push
        ctx = jnp.concatenate(ctxs, axis=-1)                             # (BT, D)
        attn = jnp.dot(ctx.astype(jnp.bfloat16), wo_ref[l],
                       preferred_element_type=jnp.float32) + bo
        tok = tok + attn                                                 # res 1

        # ---------------- position-wise feed forward (exact GELU) -------------
        h2 = _layernorm(tok, ln2g, ln2b)
        ff = jnp.dot(h2.astype(jnp.bfloat16), w1_ref[l],
                     preferred_element_type=jnp.float32) + b1
        ff = 0.5 * ff * (1.0 + jax.lax.erf(ff * inv_sqrt2))
        ff = jnp.dot(ff.astype(jnp.bfloat16), w2_ref[l],
                     preferred_element_type=jnp.float32) + b2
        tok = tok + ff                                                   # res 2

    # ---- outputs ----
    # Full padded, sublane-aligned slab; wrapper un-pads to (B, SEQ1, DIM).
    x5_ref[...] = tok

    # LayerNorm of each batch element's class row only (forward() uses norm(x5)[:,0]).
    vg = vecs_ref[LAYERS]
    ng = vg[0:1, :DIM]
    nb = vg[1:2, :DIM]
    cls = jnp.concatenate([tok[b * S_PAD:b * S_PAD + 1, :] for b in range(BBLK)],
                          axis=0)                                        # (BBLK, D)
    x8_ref[...] = _layernorm(cls, ng, nb)


# ------------------------------ Pallas wrapper --------------------------------
def _pack_vec(v, width=VEC_W):
    v = v.reshape(1, -1).astype(jnp.float32)
    return jnp.pad(v, ((0, 0), (0, width - v.shape[1])))


def vit_forward(x, params):
    B = x.shape[0]
    assert B % BBLK == 0
    n_blocks = B // BBLK

    # ---- NCHW -> (B*S_PAD, PATCH_VEC) patch extraction (plain-JAX glue) ----
    # TODO(synk): the 6-D patch transpose + cls/pad zero rows stay outside the
    # kernel; they have no clean Mosaic equivalent and are a tiny one-off XLA op.
    xp = x.reshape(B, IN_CH, GH, PATCH, GH, PATCH)
    xp = xp.transpose(0, 2, 4, 1, 3, 5).reshape(B, SEQ, PATCH_VEC)
    xp = jnp.concatenate([jnp.zeros((B, 1, PATCH_VEC), jnp.float32),     # cls row
                          xp,
                          jnp.zeros((B, PAD_TAIL, PATCH_VEC), jnp.float32)],
                         axis=1).reshape(B * S_PAD, PATCH_VEC)

    # ---- weight prep: head-major fused QKV, scale folded, packed vectors ----
    scale = 1.0 / math.sqrt(HEAD_DIM)
    wp = params["patch_w"].reshape(DIM, PATCH_VEC).T.astype(jnp.bfloat16)
    patch_b = params["patch_b"].reshape(1, 1, DIM)

    wqkv_layers, wo_layers, w1_layers, w2_layers, vec_layers = [], [], [], [], []
    for p in params["layers"]:
        wq = p["wq"] * scale
        bq = p["bq"] * scale
        cols_w, cols_b = [], []
        for h in range(HEADS):                 # head-major: [q_h | k_h | v_h]
            sl = slice(h * HEAD_DIM, (h + 1) * HEAD_DIM)
            cols_w += [wq[:, sl], p["wk"][:, sl], p["wv"][:, sl]]
            cols_b += [bq[:, sl], p["bk"][:, sl], p["bv"][:, sl]]
        wqkv_layers.append(jnp.concatenate(cols_w, axis=1))             # (D, 3D)
        bqkv_l = jnp.concatenate(cols_b, axis=1)                        # (1, 3D)
        wo_layers.append(p["wo"])
        w1_layers.append(p["w1"])
        w2_layers.append(p["w2"])
        vec_layers.append(jnp.concatenate(
            [_pack_vec(p["ln1_g"]), _pack_vec(p["ln1_b"]), bqkv_l,
             _pack_vec(p["bo"]), _pack_vec(p["ln2_g"]), _pack_vec(p["ln2_b"]),
             _pack_vec(p["b1"]), _pack_vec(p["b2"])], axis=0)[None])    # (1,8,3D)

    norm_slab = jnp.concatenate(
        [_pack_vec(params["norm_g"]), _pack_vec(params["norm_b"]),
         jnp.zeros((6, VEC_W), jnp.float32)], axis=0)[None]             # (1,8,3D)

    wqkv = jnp.stack(wqkv_layers, axis=0).astype(jnp.bfloat16)          # (L,D,3D)
    wo = jnp.stack(wo_layers, axis=0).astype(jnp.bfloat16)              # (L,D,D)
    w1 = jnp.stack(w1_layers, axis=0).astype(jnp.bfloat16)              # (L,D,F)
    w2 = jnp.stack(w2_layers, axis=0).astype(jnp.bfloat16)              # (L,F,D)
    vecs = jnp.concatenate(vec_layers + [norm_slab], axis=0)            # (L+1,8,3D)

    # base token slab per batch element, tiled over the batch block:
    # row0 = cls + pos0, rows 1..SEQ = pos + patch bias, pad rows = 0
    base1 = jnp.concatenate(
        [params["class_token"] + params["pos_emb"][:, :1],
         params["pos_emb"][:, 1:] + patch_b,
         jnp.zeros((1, PAD_TAIL, DIM), jnp.float32)], axis=1)[0]        # (S_PAD,D)
    base = jnp.tile(base1, (BBLK, 1))                                   # (BT, D)

    inputs = [xp, base, wp, wqkv, wo, w1, w2, vecs]
    in_specs = [
        pl.BlockSpec((BT, PATCH_VEC), lambda i: (i, 0)),
        pl.BlockSpec((BT, DIM), lambda i: (0, 0)),
        pl.BlockSpec((PATCH_VEC, DIM), lambda i: (0, 0)),
        pl.BlockSpec((LAYERS, DIM, 3 * DIM), lambda i: (0, 0, 0)),
        pl.BlockSpec((LAYERS, DIM, DIM), lambda i: (0, 0, 0)),
        pl.BlockSpec((LAYERS, DIM, FF_DIM), lambda i: (0, 0, 0)),
        pl.BlockSpec((LAYERS, FF_DIM, DIM), lambda i: (0, 0, 0)),
        pl.BlockSpec((LAYERS + 1, 8, VEC_W), lambda i: (0, 0, 0)),
    ]
    out_specs = (
        pl.BlockSpec((BT, DIM), lambda i: (i, 0)),        # padded x5 slab
        pl.BlockSpec((BBLK, DIM), lambda i: (i, 0)),      # x8 (cls LayerNorm)
    )

    x5_pad, x8 = pl.pallas_call(
        _vit_kernel,
        out_shape=(jax.ShapeDtypeStruct((B * S_PAD, DIM), jnp.float32),
                   jax.ShapeDtypeStruct((B, DIM), jnp.float32)),
        grid=(n_blocks,),
        in_specs=in_specs,
        out_specs=out_specs,
        compiler_params=pltpu.CompilerParams(
            dimension_semantics=("parallel",)),
    )(*inputs)

    x5 = x5_pad.reshape(B, S_PAD, DIM)[:, :SEQ1, :]
    return x8, x5


# ------------------------------ parameter init --------------------------------
def _xavier(key, fin, fout):
    bound = math.sqrt(6.0 / (fin + fout))
    return jax.random.uniform(key, (fin, fout), jnp.float32, -bound, bound)


def _lin_bias(key, n):
    return 1e-6 * jax.random.normal(key, (1, n), jnp.float32)


def _init_layer(key):
    ks = jax.random.split(key, 12)
    return dict(
        ln1_g=jnp.ones((1, DIM), jnp.float32),
        ln1_b=jnp.zeros((1, DIM), jnp.float32),
        wq=_xavier(ks[0], DIM, DIM), bq=_lin_bias(ks[1], DIM),
        wk=_xavier(ks[2], DIM, DIM), bk=_lin_bias(ks[3], DIM),
        wv=_xavier(ks[4], DIM, DIM), bv=_lin_bias(ks[5], DIM),
        wo=_xavier(ks[6], DIM, DIM), bo=_lin_bias(ks[7], DIM),
        ln2_g=jnp.ones((1, DIM), jnp.float32),
        ln2_b=jnp.zeros((1, DIM), jnp.float32),
        w1=_xavier(ks[8], DIM, FF_DIM), b1=_lin_bias(ks[9], FF_DIM),
        w2=_xavier(ks[10], FF_DIM, DIM), b2=_lin_bias(ks[11], DIM),
    )


def init_params(key):
    ks = jax.random.split(key, 3 + LAYERS)
    conv_bound = 1.0 / math.sqrt(PATCH_VEC)   # PyTorch Conv2d default init scale
    return dict(
        patch_w=jax.random.uniform(ks[0], (DIM, IN_CH, PATCH, PATCH),
                                   jnp.float32, -conv_bound, conv_bound),
        patch_b=jax.random.uniform(ks[1], (DIM,), jnp.float32,
                                   -conv_bound, conv_bound),
        pos_emb=0.02 * jax.random.normal(ks[2], (1, SEQ1, DIM), jnp.float32),
        class_token=jnp.zeros((1, 1, DIM), jnp.float32),   # init_weights -> 0
        norm_g=jnp.ones((1, DIM), jnp.float32),
        norm_b=jnp.zeros((1, DIM), jnp.float32),
        layers=[_init_layer(k) for k in ks[3:3 + LAYERS]],
        # fc.weight / fc.bias are zero-initialized in the reference and their
        # output x9 is discarded by forward(), so they are omitted here.
    )


# ----------------------------------- main --------------------------------------
if __name__ == "__main__":
    key = jax.random.PRNGKey(0)
    kx, kp = jax.random.split(key)
    x = jax.random.normal(kx, (BATCH, IN_CH, IMG, IMG), jnp.float32)
    params = init_params(kp)

    x8, x5 = jax.jit(vit_forward)(x, params)
    jax.block_until_ready((x8, x5))

    assert x8.shape == (BATCH, DIM), x8.shape
    assert x5.shape == (BATCH, SEQ1, DIM), x5.shape
    assert jnp.all(jnp.isfinite(x8)) and jnp.all(jnp.isfinite(x5))
    print("KERNEL_OK")
</pallas_src>

<mosaic_0001>
module attributes {stable_mosaic.version = 11 : i64} {
  func.func @_vit_kernel(%arg0: i32, %arg1: memref<48x48xf32, #tpu.memory_space<vmem>>, %arg2: memref<48x32xf32, #tpu.memory_space<vmem>>, %arg3: memref<48x32xbf16, #tpu.memory_space<vmem>>, %arg4: memref<2x32x96xbf16, #tpu.memory_space<vmem>>, %arg5: memref<2x32x32xbf16, #tpu.memory_space<vmem>>, %arg6: memref<2x32x64xbf16, #tpu.memory_space<vmem>>, %arg7: memref<2x64x32xbf16, #tpu.memory_space<vmem>>, %arg8: memref<3x8x96xf32, #tpu.memory_space<vmem>>, %arg9: memref<48x32xf32, #tpu.memory_space<vmem>>, %arg10: memref<2x32xf32, #tpu.memory_space<vmem>>) attributes {dimension_semantics = [#tpu.dimension_semantics<parallel>], iteration_bounds = array<i64: 1>, scalar_prefetch = 0 : i64, scratch_operands = 0 : i64, tpu.core_type = #tpu.core_type<tc>, window_params = [{transform_indices = @transform_0, window_bounds = array<i64: 48, 48>}, {pipeline_mode = #tpu.pipeline_mode<synchronous>, transform_indices = @transform_1, window_bounds = array<i64: 48, 32>}, {pipeline_mode = #tpu.pipeline_mode<synchronous>, transform_indices = @transform_2, window_bounds = array<i64: 48, 32>}, {pipeline_mode = #tpu.pipeline_mode<synchronous>, transform_indices = @transform_3, window_bounds = array<i64: 2, 32, 96>}, {pipeline_mode = #tpu.pipeline_mode<synchronous>, transform_indices = @transform_4, window_bounds = array<i64: 2, 32, 32>}, {pipeline_mode = #tpu.pipeline_mode<synchronous>, transform_indices = @transform_5, window_bounds = array<i64: 2, 32, 64>}, {pipeline_mode = #tpu.pipeline_mode<synchronous>, transform_indices = @transform_6, window_bounds = array<i64: 2, 64, 32>}, {pipeline_mode = #tpu.pipeline_mode<synchronous>, transform_indices = @transform_7, window_bounds = array<i64: 3, 8, 96>}, {transform_indices = @transform_8, window_bounds = array<i64: 48, 32>}, {transform_indices = @transform_9, window_bounds = array<i64: 2, 32>}]} {
    %c0 = arith.constant 0 : index
    %c0_0 = arith.constant 0 : index
    %0 = vector.load %arg1[%c0, %c0_0] : memref<48x48xf32, #tpu.memory_space<vmem>>, vector<48x48xf32>
    %1 = arith.truncf %0 : vector<48x48xf32> to vector<48x48xbf16>
    %c0_1 = arith.constant 0 : index
    %c0_2 = arith.constant 0 : index
    %2 = vector.load %arg3[%c0_1, %c0_2] : memref<48x32xbf16, #tpu.memory_space<vmem>>, vector<48x32xbf16>
    %cst = arith.constant dense<0.000000e+00> : vector<48x32xf32>
    %3 = tpu.matmul %1, %2, %cst {dimension_numbers = #tpu.dot_dimension_numbers<[1], [0], [0], [1], [0, 0, 1, 1], [], []>} : vector<48x48xbf16>, vector<48x32xbf16>, vector<48x32xf32> -> vector<48x32xf32>
    %c0_3 = arith.constant 0 : index
    %c0_4 = arith.constant 0 : index
    %4 = vector.load %arg2[%c0_3, %c0_4] : memref<48x32xf32, #tpu.memory_space<vmem>>, vector<48x32xf32>
    %5 = arith.addf %3, %4 : vector<48x32xf32>
    %6 = tpu.iota {dimensions = array<i32: 0>} : vector<48x48xi32>
    %7 = tpu.iota {dimensions = array<i32: 1>} : vector<48x48xi32>
    %c0_i32 = arith.constant 0 : i32
    %8 = vector.broadcast %c0_i32 : i32 to vector<48x48xi32>
    %9 = arith.cmpi sge, %6, %8 : vector<48x48xi32>
    %c24_i32 = arith.constant 24 : i32
    %10 = vector.broadcast %c24_i32 : i32 to vector<48x48xi32>
    %11 = arith.cmpi slt, %6, %10 : vector<48x48xi32>
    %12 = arith.andi %9, %11 : vector<48x48xi1>
    %c0_i32_5 = arith.constant 0 : i32
    %13 = vector.broadcast %c0_i32_5 : i32 to vector<48x48xi32>
    %14 = arith.cmpi sge, %7, %13 : vector<48x48xi32>
    %15 = arith.andi %12, %14 : vector<48x48xi1>
    %c17_i32 = arith.constant 17 : i32
    %16 = vector.broadcast %c17_i32 : i32 to vector<48x48xi32>
    %17 = arith.cmpi slt, %7, %16 : vector<48x48xi32>
    %18 = arith.andi %15, %17 : vector<48x48xi1>
    %c24_i32_6 = arith.constant 24 : i32
    %19 = vector.broadcast %c24_i32_6 : i32 to vector<48x48xi32>
    %20 = arith.cmpi sge, %6, %19 : vector<48x48xi32>
    %c48_i32 = arith.constant 48 : i32
    %21 = vector.broadcast %c48_i32 : i32 to vector<48x48xi32>
    %22 = arith.cmpi slt, %6, %21 : vector<48x48xi32>
    %23 = arith.andi %20, %22 : vector<48x48xi1>
    %c24_i32_7 = arith.constant 24 : i32
    %24 = vector.broadcast %c24_i32_7 : i32 to vector<48x48xi32>
    %25 = arith.cmpi sge, %7, %24 : vector<48x48xi32>
    %26 = arith.andi %23, %25 : vector<48x48xi1>
    %c41_i32 = arith.constant 41 : i32
    %27 = vector.broadcast %c41_i32 : i32 to vector<48x48xi32>
    %28 = arith.cmpi slt, %7, %27 : vector<48x48xi32>
    %29 = arith.andi %26, %28 : vector<48x48xi1>
    %30 = arith.ori %18, %29 : vector<48x48xi1>
    %cst_8 = arith.constant 0.000000e+00 : f32
    %cst_9 = arith.constant -1.000000e+30 : f32
    %31 = vector.broadcast %cst_8 : f32 to vector<48x48xf32>
    %32 = vector.broadcast %cst_9 : f32 to vector<48x48xf32>
    %33 = arith.select %30, %31, %32 : vector<48x48xi1>, vector<48x48xf32>
    %c0_10 = arith.constant 0 : index
    %c0_11 = arith.constant 0 : index
    %c0_12 = arith.constant 0 : index
    %34 = vector.load %arg8[%c0_10, %c0_11, %c0_12] : memref<3x8x96xf32, #tpu.memory_space<vmem>>, vector<1x8x96xf32>
    %35 = vector.shape_cast %34 : vector<1x8x96xf32> to vector<8x96xf32>
    %36 = vector.extract_strided_slice %35 {offsets = [0, 0], sizes = [1, 32], strides = [1, 1]} : vector<8x96xf32> to vector<1x32xf32>
    %37 = vector.extract_strided_slice %35 {offsets = [1, 0], sizes = [1, 32], strides = [1, 1]} : vector<8x96xf32> to vector<1x32xf32>
    %38 = vector.extract_strided_slice %35 {offsets = [2, 0], sizes = [1, 96], strides = [1, 1]} : vector<8x96xf32> to vector<1x96xf32>
    %39 = vector.extract_strided_slice %35 {offsets = [3, 0], sizes = [1, 32], strides = [1, 1]} : vector<8x96xf32> to vector<1x32xf32>
    %40 = vector.extract_strided_slice %35 {offsets = [4, 0], sizes = [1, 32], strides = [1, 1]} : vector<8x96xf32> to vector<1x32xf32>
    %41 = vector.extract_strided_slice %35 {offsets = [5, 0], sizes = [1, 32], strides = [1, 1]} : vector<8x96xf32> to vector<1x32xf32>
    %42 = vector.extract_strided_slice %35 {offsets = [6, 0], sizes = [1, 64], strides = [1, 1]} : vector<8x96xf32> to vector<1x64xf32>
    %43 = vector.extract_strided_slice %35 {offsets = [7, 0], sizes = [1, 32], strides = [1, 1]} : vector<8x96xf32> to vector<1x32xf32>
    %cst_13 = arith.constant dense<0.000000e+00> : vector<48xf32>
    %44 = vector.multi_reduction <add>, %5, %cst_13 [1] : vector<48x32xf32> to vector<48xf32>
    %45 = vector.shape_cast %44 : vector<48xf32> to vector<48x1xf32>
    %cst_14 = arith.constant 3.200000e+01 : f32
    %46 = vector.broadcast %cst_14 : f32 to vector<48x1xf32>
    %47 = arith.divf %45, %46 : vector<48x1xf32>
    %48 = vector.broadcast %47 : vector<48x1xf32> to vector<48x32xf32>
    %49 = arith.subf %5, %48 : vector<48x32xf32>
    %50 = arith.mulf %49, %49 : vector<48x32xf32>
    %cst_15 = arith.constant dense<0.000000e+00> : vector<48xf32>
    %51 = vector.multi_reduction <add>, %50, %cst_15 [1] : vector<48x32xf32> to vector<48xf32>
    %52 = vector.shape_cast %51 : vector<48xf32> to vector<48x1xf32>
    %cst_16 = arith.constant 3.200000e+01 : f32
    %53 = vector.broadcast %cst_16 : f32 to vector<48x1xf32>
    %54 = arith.divf %52, %53 : vector<48x1xf32>
    %55 = vector.broadcast %47 : vector<48x1xf32> to vector<48x32xf32>
    %56 = arith.subf %5, %55 : vector<48x32xf32>
    %cst_17 = arith.constant 9.99999997E-7 : f32
    %57 = vector.broadcast %cst_17 : f32 to vector<48x1xf32>
    %58 = arith.addf %54, %57 : vector<48x1xf32>
    %59 = math.rsqrt %58 : vector<48x1xf32>
    %60 = vector.broadcast %59 : vector<48x1xf32> to vector<48x32xf32>
    %61 = arith.mulf %56, %60 : vector<48x32xf32>
    %62 = vector.broadcast %36 : vector<1x32xf32> to vector<48x32xf32>
    %63 = arith.mulf %61, %62 : vector<48x32xf32>
    %64 = vector.broadcast %37 : vector<1x32xf32> to vector<48x32xf32>
    %65 = arith.addf %63, %64 : vector<48x32xf32>
    %66 = arith.truncf %65 : vector<48x32xf32> to vector<48x32xbf16>
    %c0_18 = arith.constant 0 : index
    %c0_19 = arith.constant 0 : index
    %c0_20 = arith.constant 0 : index
    %67 = vector.load %arg4[%c0_18, %c0_19, %c0_20] : memref<2x32x96xbf16, #tpu.memory_space<vmem>>, vector<1x32x96xbf16>
    %68 = vector.shape_cast %67 : vector<1x32x96xbf16> to vector<32x96xbf16>
    %cst_21 = arith.constant dense<0.000000e+00> : vector<48x96xf32>
    %69 = tpu.matmul %66, %68, %cst_21 {dimension_numbers = #tpu.dot_dimension_numbers<[1], [0], [0], [1], [0, 0, 1, 1], [], []>} : vector<48x32xbf16>, vector<32x96xbf16>, vector<48x96xf32> -> vector<48x96xf32>
    %70 = vector.broadcast %38 : vector<1x96xf32> to vector<48x96xf32>
    %71 = arith.addf %69, %70 : vector<48x96xf32>
    %72 = vector.extract_strided_slice %71 {offsets = [0, 0], sizes = [48, 8], strides = [1, 1]} : vector<48x96xf32> to vector<48x8xf32>
    %73 = vector.extract_strided_slice %71 {offsets = [0, 8], sizes = [48, 8], strides = [1, 1]} : vector<48x96xf32> to vector<48x8xf32>
    %74 = vector.extract_strided_slice %71 {offsets = [0, 16], sizes = [48, 8], strides = [1, 1]} : vector<48x96xf32> to vector<48x8xf32>
    %75 = arith.truncf %72 : vector<48x8xf32> to vector<48x8xbf16>
    %76 = arith.truncf %73 : vector<48x8xf32> to vector<48x8xbf16>
    %cst_22 = arith.constant dense<0.000000e+00> : vector<48x48xf32>
    %77 = tpu.matmul %75, %76, %cst_22 {dimension_numbers = #tpu.dot_dimension_numbers<[1], [1], [0], [0], [0, 0, 1, 0], [], []>} : vector<48x8xbf16>, vector<48x8xbf16>, vector<48x48xf32> -> vector<48x48xf32>
    %78 = arith.addf %77, %33 : vector<48x48xf32>
    %cst_23 = arith.constant dense<0xFF800000> : vector<48xf32>
    %79 = vector.multi_reduction <maximumf>, %78, %cst_23 [1] : vector<48x48xf32> to vector<48xf32>
    %80 = vector.shape_cast %79 : vector<48xf32> to vector<48x1xf32>
    %81 = vector.broadcast %80 : vector<48x1xf32> to vector<48x48xf32>
    %82 = arith.subf %78, %81 : vector<48x48xf32>
    %83 = math.exp %82 : vector<48x48xf32>
    %cst_24 = arith.constant dense<0.000000e+00> : vector<48xf32>
    %84 = vector.multi_reduction <add>, %83, %cst_24 [1] : vector<48x48xf32> to vector<48xf32>
    %85 = vector.shape_cast %84 : vector<48xf32> to vector<48x1xf32>
    %86 = tpu.reciprocal %85 {approx = true} : vector<48x1xf32> -> vector<48x1xf32>
    %87 = vector.broadcast %86 : vector<48x1xf32> to vector<48x48xf32>
    %88 = arith.mulf %83, %87 : vector<48x48xf32>
    %89 = arith.truncf %88 : vector<48x48xf32> to vector<48x48xbf16>
    %90 = arith.truncf %74 : vector<48x8xf32> to vector<48x8xbf16>
    %cst_25 = arith.constant dense<0.000000e+00> : vector<48x8xf32>
    %91 = tpu.matmul %89, %90, %cst_25 {dimension_numbers = #tpu.dot_dimension_numbers<[1], [0], [0], [1], [0, 0, 1, 1], [], []>} : vector<48x48xbf16>, vector<48x8xbf16>, vector<48x8xf32> -> vector<48x8xf32>
    %92 = vector.extract_strided_slice %71 {offsets = [0, 24], sizes = [48, 8], strides = [1, 1]} : vector<48x96xf32> to vector<48x8xf32>
    %93 = vector.extract_strided_slice %71 {offsets = [0, 32], sizes = [48, 8], strides = [1, 1]} : vector<48x96xf32> to vector<48x8xf32>
    %94 = vector.extract_strided_slice %71 {offsets = [0, 40], sizes = [48, 8], strides = [1, 1]} : vector<48x96xf32> to vector<48x8xf32>
    %95 = arith.truncf %92 : vector<48x8xf32> to vector<48x8xbf16>
    %96 = arith.truncf %93 : vector<48x8xf32> to vector<48x8xbf16>
    %cst_26 = arith.constant dense<0.000000e+00> : vector<48x48xf32>
    %97 = tpu.matmul %95, %96, %cst_26 {dimension_numbers = #tpu.dot_dimension_numbers<[1], [1], [0], [0], [0, 0, 1, 0], [], []>} : vector<48x8xbf16>, vector<48x8xbf16>, vector<48x48xf32> -> vector<48x48xf32>
    %98 = arith.addf %97, %33 : vector<48x48xf32>
    %cst_27 = arith.constant dense<0xFF800000> : vector<48xf32>
    %99 = vector.multi_reduction <maximumf>, %98, %cst_27 [1] : vector<48x48xf32> to vector<48xf32>
    %100 = vector.shape_cast %99 : vector<48xf32> to vector<48x1xf32>
    %101 = vector.broadcast %100 : vector<48x1xf32> to vector<48x48xf32>
    %102 = arith.subf %98, %101 : vector<48x48xf32>
    %103 = math.exp %102 : vector<48x48xf32>
    %cst_28 = arith.constant dense<0.000000e+00> : vector<48xf32>
    %104 = vector.multi_reduction <add>, %103, %cst_28 [1] : vector<48x48xf32> to vector<48xf32>
    %105 = vector.shape_cast %104 : vector<48xf32> to vector<48x1xf32>
    %106 = tpu.reciprocal %105 {approx = true} : vector<48x1xf32> -> vector<48x1xf32>
    %107 = vector.broadcast %106 : vector<48x1xf32> to vector<48x48xf32>
    %108 = arith.mulf %103, %107 : vector<48x48xf32>
    %109 = arith.truncf %108 : vector<48x48xf32> to vector<48x48xbf16>
    %110 = arith.truncf %94 : vector<48x8xf32> to vector<48x8xbf16>
    %cst_29 = arith.constant dense<0.000000e+00> : vector<48x8xf32>
    %111 = tpu.matmul %109, %110, %cst_29 {dimension_numbers = #tpu.dot_dimension_numbers<[1], [0], [0], [1], [0, 0, 1, 1], [], []>} : vector<48x48xbf16>, vector<48x8xbf16>, vector<48x8xf32> -> vector<48x8xf32>
    %112 = vector.extract_strided_slice %71 {offsets = [0, 48], sizes = [48, 8], strides = [1, 1]} : vector<48x96xf32> to vector<48x8xf32>
    %113 = vector.extract_strided_slice %71 {offsets = [0, 56], sizes = [48, 8], strides = [1, 1]} : vector<48x96xf32> to vector<48x8xf32>
    %114 = vector.extract_strided_slice %71 {offsets = [0, 64], sizes = [48, 8], strides = [1, 1]} : vector<48x96xf32> to vector<48x8xf32>
    %115 = arith.truncf %112 : vector<48x8xf32> to vector<48x8xbf16>
    %116 = arith.truncf %113 : vector<48x8xf32> to vector<48x8xbf16>
    %cst_30 = arith.constant dense<0.000000e+00> : vector<48x48xf32>
    %117 = tpu.matmul %115, %116, %cst_30 {dimension_numbers = #tpu.dot_dimension_numbers<[1], [1], [0], [0], [0, 0, 1, 0], [], []>} : vector<48x8xbf16>, vector<48x8xbf16>, vector<48x48xf32> -> vector<48x48xf32>
    %118 = arith.addf %117, %33 : vector<48x48xf32>
    %cst_31 = arith.constant dense<0xFF800000> : vector<48xf32>
    %119 = vector.multi_reduction <maximumf>, %118, %cst_31 [1] : vector<48x48xf32> to vector<48xf32>
    %120 = vector.shape_cast %119 : vector<48xf32> to vector<48x1xf32>
    %121 = vector.broadcast %120 : vector<48x1xf32> to vector<48x48xf32>
    %122 = arith.subf %118, %121 : vector<48x48xf32>
    %123 = math.exp %122 : vector<48x48xf32>
    %cst_32 = arith.constant dense<0.000000e+00> : vector<48xf32>
    %124 = vector.multi_reduction <add>, %123, %cst_32 [1] : vector<48x48xf32> to vector<48xf32>
    %125 = vector.shape_cast %124 : vector<48xf32> to vector<48x1xf32>
    %126 = tpu.reciprocal %125 {approx = true} : vector<48x1xf32> -> vector<48x1xf32>
    %127 = vector.broadcast %126 : vector<48x1xf32> to vector<48x48xf32>
    %128 = arith.mulf %123, %127 : vector<48x48xf32>
    %129 = arith.truncf %128 : vector<48x48xf32> to vector<48x48xbf16>
    %130 = arith.truncf %114 : vector<48x8xf32> to vector<48x8xbf16>
    %cst_33 = arith.constant dense<0.000000e+00> : vector<48x8xf32>
    %131 = tpu.matmul %129, %130, %cst_33 {dimension_numbers = #tpu.dot_dimension_numbers<[1], [0], [0], [1], [0, 0, 1, 1], [], []>} : vector<48x48xbf16>, vector<48x8xbf16>, vector<48x8xf32> -> vector<48x8xf32>
    %132 = vector.extract_strided_slice %71 {offsets = [0, 72], sizes = [48, 8], strides = [1, 1]} : vector<48x96xf32> to vector<48x8xf32>
    %133 = vector.extract_strided_slice %71 {offsets = [0, 80], sizes = [48, 8], strides = [1, 1]} : vector<48x96xf32> to vector<48x8xf32>
    %134 = vector.extract_strided_slice %71 {offsets = [0, 88], sizes = [48, 8], strides = [1, 1]} : vector<48x96xf32> to vector<48x8xf32>
    %135 = arith.truncf %132 : vector<48x8xf32> to vector<48x8xbf16>
    %136 = arith.truncf %133 : vector<48x8xf32> to vector<48x8xbf16>
    %cst_34 = arith.constant dense<0.000000e+00> : vector<48x48xf32>
    %137 = tpu.matmul %135, %136, %cst_34 {dimension_numbers = #tpu.dot_dimension_numbers<[1], [1], [0], [0], [0, 0, 1, 0], [], []>} : vector<48x8xbf16>, vector<48x8xbf16>, vector<48x48xf32> -> vector<48x48xf32>
    %138 = arith.addf %137, %33 : vector<48x48xf32>
    %cst_35 = arith.constant dense<0xFF800000> : vector<48xf32>
    %139 = vector.multi_reduction <maximumf>, %138, %cst_35 [1] : vector<48x48xf32> to vector<48xf32>
    %140 = vector.shape_cast %139 : vector<48xf32> to vector<48x1xf32>
    %141 = vector.broadcast %140 : vector<48x1xf32> to vector<48x48xf32>
    %142 = arith.subf %138, %141 : vector<48x48xf32>
    %143 = math.exp %142 : vector<48x48xf32>
    %cst_36 = arith.constant dense<0.000000e+00> : vector<48xf32>
    %144 = vector.multi_reduction <add>, %143, %cst_36 [1] : vector<48x48xf32> to vector<48xf32>
    %145 = vector.shape_cast %144 : vector<48xf32> to vector<48x1xf32>
    %146 = tpu.reciprocal %145 {approx = true} : vector<48x1xf32> -> vector<48x1xf32>
    %147 = vector.broadcast %146 : vector<48x1xf32> to vector<48x48xf32>
    %148 = arith.mulf %143, %147 : vector<48x48xf32>
    %149 = arith.truncf %148 : vector<48x48xf32> to vector<48x48xbf16>
    %150 = arith.truncf %134 : vector<48x8xf32> to vector<48x8xbf16>
    %cst_37 = arith.constant dense<0.000000e+00> : vector<48x8xf32>
    %151 = tpu.matmul %149, %150, %cst_37 {dimension_numbers = #tpu.dot_dimension_numbers<[1], [0], [0], [1], [0, 0, 1, 1], [], []>} : vector<48x48xbf16>, vector<48x8xbf16>, vector<48x8xf32> -> vector<48x8xf32>
    %152 = tpu.concatenate %91, %111, %131, %151 in 1 : vector<48x8xf32>, vector<48x8xf32>, vector<48x8xf32>, vector<48x8xf32> -> vector<48x32xf32>
    %153 = arith.truncf %152 : vector<48x32xf32> to vector<48x32xbf16>
    %c0_38 = arith.constant 0 : index
    %c0_39 = arith.constant 0 : index
    %c0_40 = arith.constant 0 : index
    %154 = vector.load %arg5[%c0_38, %c0_39, %c0_40] : memref<2x32x32xbf16, #tpu.memory_space<vmem>>, vector<1x32x32xbf16>
    %155 = vector.shape_cast %154 : vector<1x32x32xbf16> to vector<32x32xbf16>
    %cst_41 = arith.constant dense<0.000000e+00> : vector<48x32xf32>
    %156 = tpu.matmul %153, %155, %cst_41 {dimension_numbers = #tpu.dot_dimension_numbers<[1], [0], [0], [1], [0, 0, 1, 1], [], []>} : vector<48x32xbf16>, vector<32x32xbf16>, vector<48x32xf32> -> vector<48x32xf32>
    %157 = vector.broadcast %39 : vector<1x32xf32> to vector<48x32xf32>
    %158 = arith.addf %156, %157 : vector<48x32xf32>
    %159 = arith.addf %5, %158 : vector<48x32xf32>
    %cst_42 = arith.constant dense<0.000000e+00> : vector<48xf32>
    %160 = vector.multi_reduction <add>, %159, %cst_42 [1] : vector<48x32xf32> to vector<48xf32>
    %161 = vector.shape_cast %160 : vector<48xf32> to vector<48x1xf32>
    %cst_43 = arith.constant 3.200000e+01 : f32
    %162 = vector.broadcast %cst_43 : f32 to vector<48x1xf32>
    %163 = arith.divf %161, %162 : vector<48x1xf32>
    %164 = vector.broadcast %163 : vector<48x1xf32> to vector<48x32xf32>
    %165 = arith.subf %159, %164 : vector<48x32xf32>
    %166 = arith.mulf %165, %165 : vector<48x32xf32>
    %cst_44 = arith.constant dense<0.000000e+00> : vector<48xf32>
    %167 = vector.multi_reduction <add>, %166, %cst_44 [1] : vector<48x32xf32> to vector<48xf32>
    %168 = vector.shape_cast %167 : vector<48xf32> to vector<48x1xf32>
    %cst_45 = arith.constant 3.200000e+01 : f32
    %169 = vector.broadcast %cst_45 : f32 to vector<48x1xf32>
    %170 = arith.divf %168, %169 : vector<48x1xf32>
    %171 = vector.broadcast %163 : vector<48x1xf32> to vector<48x32xf32>
    %172 = arith.subf %159, %171 : vector<48x32xf32>
    %cst_46 = arith.constant 9.99999997E-7 : f32
    %173 = vector.broadcast %cst_46 : f32 to vector<48x1xf32>
    %174 = arith.addf %170, %173 : vector<48x1xf32>
    %175 = math.rsqrt %174 : vector<48x1xf32>
    %176 = vector.broadcast %175 : vector<48x1xf32> to vector<48x32xf32>
    %177 = arith.mulf %172, %176 : vector<48x32xf32>
    %178 = vector.broadcast %40 : vector<1x32xf32> to vector<48x32xf32>
    %179 = arith.mulf %177, %178 : vector<48x32xf32>
    %180 = vector.broadcast %41 : vector<1x32xf32> to vector<48x32xf32>
    %181 = arith.addf %179, %180 : vector<48x32xf32>
    %182 = arith.truncf %181 : vector<48x32xf32> to vector<48x32xbf16>
    %c0_47 = arith.constant 0 : index
    %c0_48 = arith.constant 0 : index
    %c0_49 = arith.constant 0 : index
    %183 = vector.load %arg6[%c0_47, %c0_48, %c0_49] : memref<2x32x64xbf16, #tpu.memory_space<vmem>>, vector<1x32x64xbf16>
    %184 = vector.shape_cast %183 : vector<1x32x64xbf16> to vector<32x64xbf16>
    %cst_50 = arith.constant dense<0.000000e+00> : vector<48x64xf32>
    %185 = tpu.matmul %182, %184, %cst_50 {dimension_numbers = #tpu.dot_dimension_numbers<[1], [0], [0], [1], [0, 0, 1, 1], [], []>} : vector<48x32xbf16>, vector<32x64xbf16>, vector<48x64xf32> -> vector<48x64xf32>
    %186 = vector.broadcast %42 : vector<1x64xf32> to vector<48x64xf32>
    %187 = arith.addf %185, %186 : vector<48x64xf32>
    %cst_51 = arith.constant 5.000000e-01 : f32
    %188 = vector.broadcast %cst_51 : f32 to vector<48x64xf32>
    %189 = arith.mulf %188, %187 : vector<48x64xf32>
    %cst_52 = arith.constant 0.707106769 : f32
    %190 = vector.broadcast %cst_52 : f32 to vector<48x64xf32>
    %191 = arith.mulf %187, %190 : vector<48x64xf32>
    %192 = math.erf %191 : vector<48x64xf32>
    %cst_53 = arith.constant 1.000000e+00 : f32
    %193 = vector.broadcast %cst_53 : f32 to vector<48x64xf32>
    %194 = arith.addf %193, %192 : vector<48x64xf32>
    %195 = arith.mulf %189, %194 : vector<48x64xf32>
    %196 = arith.truncf %195 : vector<48x64xf32> to vector<48x64xbf16>
    %c0_54 = arith.constant 0 : index
    %c0_55 = arith.constant 0 : index
    %c0_56 = arith.constant 0 : index
    %197 = vector.load %arg7[%c0_54, %c0_55, %c0_56] : memref<2x64x32xbf16, #tpu.memory_space<vmem>>, vector<1x64x32xbf16>
    %198 = vector.shape_cast %197 : vector<1x64x32xbf16> to vector<64x32xbf16>
    %cst_57 = arith.constant dense<0.000000e+00> : vector<48x32xf32>
    %199 = tpu.matmul %196, %198, %cst_57 {dimension_numbers = #tpu.dot_dimension_numbers<[1], [0], [0], [1], [0, 0, 1, 1], [], []>} : vector<48x64xbf16>, vector<64x32xbf16>, vector<48x32xf32> -> vector<48x32xf32>
    %200 = vector.broadcast %43 : vector<1x32xf32> to vector<48x32xf32>
    %201 = arith.addf %199, %200 : vector<48x32xf32>
    %202 = arith.addf %159, %201 : vector<48x32xf32>
    %c1 = arith.constant 1 : index
    %c0_58 = arith.constant 0 : index
    %c0_59 = arith.constant 0 : index
    %203 = vector.load %arg8[%c1, %c0_58, %c0_59] : memref<3x8x96xf32, #tpu.memory_space<vmem>>, vector<1x8x96xf32>
    %204 = vector.shape_cast %203 : vector<1x8x96xf32> to vector<8x96xf32>
    %205 = vector.extract_strided_slice %204 {offsets = [0, 0], sizes = [1, 32], strides = [1, 1]} : vector<8x96xf32> to vector<1x32xf32>
    %206 = vector.extract_strided_slice %204 {offsets = [1, 0], sizes = [1, 32], strides = [1, 1]} : vector<8x96xf32> to vector<1x32xf32>
    %207 = vector.extract_strided_slice %204 {offsets = [2, 0], sizes = [1, 96], strides = [1, 1]} : vector<8x96xf32> to vector<1x96xf32>
    %208 = vector.extract_strided_slice %204 {offsets = [3, 0], sizes = [1, 32], strides = [1, 1]} : vector<8x96xf32> to vector<1x32xf32>
    %209 = vector.extract_strided_slice %204 {offsets = [4, 0], sizes = [1, 32], strides = [1, 1]} : vector<8x96xf32> to vector<1x32xf32>
    %210 = vector.extract_strided_slice %204 {offsets = [5, 0], sizes = [1, 32], strides = [1, 1]} : vector<8x96xf32> to vector<1x32xf32>
    %211 = vector.extract_strided_slice %204 {offsets = [6, 0], sizes = [1, 64], strides = [1, 1]} : vector<8x96xf32> to vector<1x64xf32>
    %212 = vector.extract_strided_slice %204 {offsets = [7, 0], sizes = [1, 32], strides = [1, 1]} : vector<8x96xf32> to vector<1x32xf32>
    %cst_60 = arith.constant dense<0.000000e+00> : vector<48xf32>
    %213 = vector.multi_reduction <add>, %202, %cst_60 [1] : vector<48x32xf32> to vector<48xf32>
    %214 = vector.shape_cast %213 : vector<48xf32> to vector<48x1xf32>
    %cst_61 = arith.constant 3.200000e+01 : f32
    %215 = vector.broadcast %cst_61 : f32 to vector<48x1xf32>
    %216 = arith.divf %214, %215 : vector<48x1xf32>
    %217 = vector.broadcast %216 : vector<48x1xf32> to vector<48x32xf32>
    %218 = arith.subf %202, %217 : vector<48x32xf32>
    %219 = arith.mulf %218, %218 : vector<48x32xf32>
    %cst_62 = arith.constant dense<0.000000e+00> : vector<48xf32>
    %220 = vector.multi_reduction <add>, %219, %cst_62 [1] : vector<48x32xf32> to vector<48xf32>
    %221 = vector.shape_cast %220 : vector<48xf32> to vector<48x1xf32>
    %cst_63 = arith.constant 3.200000e+01 : f32
    %222 = vector.broadcast %cst_63 : f32 to vector<48x1xf32>
    %223 = arith.divf %221, %222 : vector<48x1xf32>
    %224 = vector.broadcast %216 : vector<48x1xf32> to vector<48x32xf32>
    %225 = arith.subf %202, %224 : vector<48x32xf32>
    %cst_64 = arith.constant 9.99999997E-7 : f32
    %226 = vector.broadcast %cst_64 : f32 to vector<48x1xf32>
    %227 = arith.addf %223, %226 : vector<48x1xf32>
    %228 = math.rsqrt %227 : vector<48x1xf32>
    %229 = vector.broadcast %228 : vector<48x1xf32> to vector<48x32xf32>
    %230 = arith.mulf %225, %229 : vector<48x32xf32>
    %231 = vector.broadcast %205 : vector<1x32xf32> to vector<48x32xf32>
    %232 = arith.mulf %230, %231 : vector<48x32xf32>
    %233 = vector.broadcast %206 : vector<1x32xf32> to vector<48x32xf32>
    %234 = arith.addf %232, %233 : vector<48x32xf32>
    %235 = arith.truncf %234 : vector<48x32xf32> to vector<48x32xbf16>
    %c1_65 = arith.constant 1 : index
    %c0_66 = arith.constant 0 : index
    %c0_67 = arith.constant 0 : index
    %236 = vector.load %arg4[%c1_65, %c0_66, %c0_67] : memref<2x32x96xbf16, #tpu.memory_space<vmem>>, vector<1x32x96xbf16>
    %237 = vector.shape_cast %236 : vector<1x32x96xbf16> to vector<32x96xbf16>
    %cst_68 = arith.constant dense<0.000000e+00> : vector<48x96xf32>
    %238 = tpu.matmul %235, %237, %cst_68 {dimension_numbers = #tpu.dot_dimension_numbers<[1], [0], [0], [1], [0, 0, 1, 1], [], []>} : vector<48x32xbf16>, vector<32x96xbf16>, vector<48x96xf32> -> vector<48x96xf32>
    %239 = vector.broadcast %207 : vector<1x96xf32> to vector<48x96xf32>
    %240 = arith.addf %238, %239 : vector<48x96xf32>
    %241 = vector.extract_strided_slice %240 {offsets = [0, 0], sizes = [48, 8], strides = [1, 1]} : vector<48x96xf32> to vector<48x8xf32>
    %242 = vector.extract_strided_slice %240 {offsets = [0, 8], sizes = [48, 8], strides = [1, 1]} : vector<48x96xf32> to vector<48x8xf32>
    %243 = vector.extract_strided_slice %240 {offsets = [0, 16], sizes = [48, 8], strides = [1, 1]} : vector<48x96xf32> to vector<48x8xf32>
    %244 = arith.truncf %241 : vector<48x8xf32> to vector<48x8xbf16>
    %245 = arith.truncf %242 : vector<48x8xf32> to vector<48x8xbf16>
    %cst_69 = arith.constant dense<0.000000e+00> : vector<48x48xf32>
    %246 = tpu.matmul %244, %245, %cst_69 {dimension_numbers = #tpu.dot_dimension_numbers<[1], [1], [0], [0], [0, 0, 1, 0], [], []>} : vector<48x8xbf16>, vector<48x8xbf16>, vector<48x48xf32> -> vector<48x48xf32>
    %247 = arith.addf %246, %33 : vector<48x48xf32>
    %cst_70 = arith.constant dense<0xFF800000> : vector<48xf32>
    %248 = vector.multi_reduction <maximumf>, %247, %cst_70 [1] : vector<48x48xf32> to vector<48xf32>
    %249 = vector.shape_cast %248 : vector<48xf32> to vector<48x1xf32>
    %250 = vector.broadcast %249 : vector<48x1xf32> to vector<48x48xf32>
    %251 = arith.subf %247, %250 : vector<48x48xf32>
    %252 = math.exp %251 : vector<48x48xf32>
    %cst_71 = arith.constant dense<0.000000e+00> : vector<48xf32>
    %253 = vector.multi_reduction <add>, %252, %cst_71 [1] : vector<48x48xf32> to vector<48xf32>
    %254 = vector.shape_cast %253 : vector<48xf32> to vector<48x1xf32>
    %255 = tpu.reciprocal %254 {approx = true} : vector<48x1xf32> -> vector<48x1xf32>
    %256 = vector.broadcast %255 : vector<48x1xf32> to vector<48x48xf32>
    %257 = arith.mulf %252, %256 : vector<48x48xf32>
    %258 = arith.truncf %257 : vector<48x48xf32> to vector<48x48xbf16>
    %259 = arith.truncf %243 : vector<48x8xf32> to vector<48x8xbf16>
    %cst_72 = arith.constant dense<0.000000e+00> : vector<48x8xf32>
    %260 = tpu.matmul %258, %259, %cst_72 {dimension_numbers = #tpu.dot_dimension_numbers<[1], [0], [0], [1], [0, 0, 1, 1], [], []>} : vector<48x48xbf16>, vector<48x8xbf16>, vector<48x8xf32> -> vector<48x8xf32>
    %261 = vector.extract_strided_slice %240 {offsets = [0, 24], sizes = [48, 8], strides = [1, 1]} : vector<48x96xf32> to vector<48x8xf32>
    %262 = vector.extract_strided_slice %240 {offsets = [0, 32], sizes = [48, 8], strides = [1, 1]} : vector<48x96xf32> to vector<48x8xf32>
    %263 = vector.extract_strided_slice %240 {offsets = [0, 40], sizes = [48, 8], strides = [1, 1]} : vector<48x96xf32> to vector<48x8xf32>
    %264 = arith.truncf %261 : vector<48x8xf32> to vector<48x8xbf16>
    %265 = arith.truncf %262 : vector<48x8xf32> to vector<48x8xbf16>
    %cst_73 = arith.constant dense<0.000000e+00> : vector<48x48xf32>
    %266 = tpu.matmul %264, %265, %cst_73 {dimension_numbers = #tpu.dot_dimension_numbers<[1], [1], [0], [0], [0, 0, 1, 0], [], []>} : vector<48x8xbf16>, vector<48x8xbf16>, vector<48x48xf32> -> vector<48x48xf32>
    %267 = arith.addf %266, %33 : vector<48x48xf32>
    %cst_74 = arith.constant dense<0xFF800000> : vector<48xf32>
    %268 = vector.multi_reduction <maximumf>, %267, %cst_74 [1] : vector<48x48xf32> to vector<48xf32>
    %269 = vector.shape_cast %268 : vector<48xf32> to vector<48x1xf32>
    %270 = vector.broadcast %269 : vector<48x1xf32> to vector<48x48xf32>
    %271 = arith.subf %267, %270 : vector<48x48xf32>
    %272 = math.exp %271 : vector<48x48xf32>
    %cst_75 = arith.constant dense<0.000000e+00> : vector<48xf32>
    %273 = vector.multi_reduction <add>, %272, %cst_75 [1] : vector<48x48xf32> to vector<48xf32>
    %274 = vector.shape_cast %273 : vector<48xf32> to vector<48x1xf32>
    %275 = tpu.reciprocal %274 {approx = true} : vector<48x1xf32> -> vector<48x1xf32>
    %276 = vector.broadcast %275 : vector<48x1xf32> to vector<48x48xf32>
    %277 = arith.mulf %272, %276 : vector<48x48xf32>
    %278 = arith.truncf %277 : vector<48x48xf32> to vector<48x48xbf16>
    %279 = arith.truncf %263 : vector<48x8xf32> to vector<48x8xbf16>
    %cst_76 = arith.constant dense<0.000000e+00> : vector<48x8xf32>
    %280 = tpu.matmul %278, %279, %cst_76 {dimension_numbers = #tpu.dot_dimension_numbers<[1], [0], [0], [1], [0, 0, 1, 1], [], []>} : vector<48x48xbf16>, vector<48x8xbf16>, vector<48x8xf32> -> vector<48x8xf32>
    %281 = vector.extract_strided_slice %240 {offsets = [0, 48], sizes = [48, 8], strides = [1, 1]} : vector<48x96xf32> to vector<48x8xf32>
    %282 = vector.extract_strided_slice %240 {offsets = [0, 56], sizes = [48, 8], strides = [1, 1]} : vector<48x96xf32> to vector<48x8xf32>
    %283 = vector.extract_strided_slice %240 {offsets = [0, 64], sizes = [48, 8], strides = [1, 1]} : vector<48x96xf32> to vector<48x8xf32>
    %284 = arith.truncf %281 : vector<48x8xf32> to vector<48x8xbf16>
    %285 = arith.truncf %282 : vector<48x8xf32> to vector<48x8xbf16>
    %cst_77 = arith.constant dense<0.000000e+00> : vector<48x48xf32>
    %286 = tpu.matmul %284, %285, %cst_77 {dimension_numbers = #tpu.dot_dimension_numbers<[1], [1], [0], [0], [0, 0, 1, 0], [], []>} : vector<48x8xbf16>, vector<48x8xbf16>, vector<48x48xf32> -> vector<48x48xf32>
    %287 = arith.addf %286, %33 : vector<48x48xf32>
    %cst_78 = arith.constant dense<0xFF800000> : vector<48xf32>
    %288 = vector.multi_reduction <maximumf>, %287, %cst_78 [1] : vector<48x48xf32> to vector<48xf32>
    %289 = vector.shape_cast %288 : vector<48xf32> to vector<48x1xf32>
    %290 = vector.broadcast %289 : vector<48x1xf32> to vector<48x48xf32>
    %291 = arith.subf %287, %290 : vector<48x48xf32>
    %292 = math.exp %291 : vector<48x48xf32>
    %cst_79 = arith.constant dense<0.000000e+00> : vector<48xf32>
    %293 = vector.multi_reduction <add>, %292, %cst_79 [1] : vector<48x48xf32> to vector<48xf32>
    %294 = vector.shape_cast %293 : vector<48xf32> to vector<48x1xf32>
    %295 = tpu.reciprocal %294 {approx = true} : vector<48x1xf32> -> vector<48x1xf32>
    %296 = vector.broadcast %295 : vector<48x1xf32> to vector<48x48xf32>
    %297 = arith.mulf %292, %296 : vector<48x48xf32>
    %298 = arith.truncf %297 : vector<48x48xf32> to vector<48x48xbf16>
    %299 = arith.truncf %283 : vector<48x8xf32> to vector<48x8xbf16>
    %cst_80 = arith.constant dense<0.000000e+00> : vector<48x8xf32>
    %300 = tpu.matmul %298, %299, %cst_80 {dimension_numbers = #tpu.dot_dimension_numbers<[1], [0], [0], [1], [0, 0, 1, 1], [], []>} : vector<48x48xbf16>, vector<48x8xbf16>, vector<48x8xf32> -> vector<48x8xf32>
    %301 = vector.extract_strided_slice %240 {offsets = [0, 72], sizes = [48, 8], strides = [1, 1]} : vector<48x96xf32> to vector<48x8xf32>
    %302 = vector.extract_strided_slice %240 {offsets = [0, 80], sizes = [48, 8], strides = [1, 1]} : vector<48x96xf32> to vector<48x8xf32>
    %303 = vector.extract_strided_slice %240 {offsets = [0, 88], sizes = [48, 8], strides = [1, 1]} : vector<48x96xf32> to vector<48x8xf32>
    %304 = arith.truncf %301 : vector<48x8xf32> to vector<48x8xbf16>
    %305 = arith.truncf %302 : vector<48x8xf32> to vector<48x8xbf16>
    %cst_81 = arith.constant dense<0.000000e+00> : vector<48x48xf32>
    %306 = tpu.matmul %304, %305, %cst_81 {dimension_numbers = #tpu.dot_dimension_numbers<[1], [1], [0], [0], [0, 0, 1, 0], [], []>} : vector<48x8xbf16>, vector<48x8xbf16>, vector<48x48xf32> -> vector<48x48xf32>
    %307 = arith.addf %306, %33 : vector<48x48xf32>
    %cst_82 = arith.constant dense<0xFF800000> : vector<48xf32>
    %308 = vector.multi_reduction <maximumf>, %307, %cst_82 [1] : vector<48x48xf32> to vector<48xf32>
    %309 = vector.shape_cast %308 : vector<48xf32> to vector<48x1xf32>
    %310 = vector.broadcast %309 : vector<48x1xf32> to vector<48x48xf32>
    %311 = arith.subf %307, %310 : vector<48x48xf32>
    %312 = math.exp %311 : vector<48x48xf32>
    %cst_83 = arith.constant dense<0.000000e+00> : vector<48xf32>
    %313 = vector.multi_reduction <add>, %312, %cst_83 [1] : vector<48x48xf32> to vector<48xf32>
    %314 = vector.shape_cast %313 : vector<48xf32> to vector<48x1xf32>
    %315 = tpu.reciprocal %314 {approx = true} : vector<48x1xf32> -> vector<48x1xf32>
    %316 = vector.broadcast %315 : vector<48x1xf32> to vector<48x48xf32>
    %317 = arith.mulf %312, %316 : vector<48x48xf32>
    %318 = arith.truncf %317 : vector<48x48xf32> to vector<48x48xbf16>
    %319 = arith.truncf %303 : vector<48x8xf32> to vector<48x8xbf16>
    %cst_84 = arith.constant dense<0.000000e+00> : vector<48x8xf32>
    %320 = tpu.matmul %318, %319, %cst_84 {dimension_numbers = #tpu.dot_dimension_numbers<[1], [0], [0], [1], [0, 0, 1, 1], [], []>} : vector<48x48xbf16>, vector<48x8xbf16>, vector<48x8xf32> -> vector<48x8xf32>
    %321 = tpu.concatenate %260, %280, %300, %320 in 1 : vector<48x8xf32>, vector<48x8xf32>, vector<48x8xf32>, vector<48x8xf32> -> vector<48x32xf32>
    %322 = arith.truncf %321 : vector<48x32xf32> to vector<48x32xbf16>
    %c1_85 = arith.constant 1 : index
    %c0_86 = arith.constant 0 : index
    %c0_87 = arith.constant 0 : index
    %323 = vector.load %arg5[%c1_85, %c0_86, %c0_87] : memref<2x32x32xbf16, #tpu.memory_space<vmem>>, vector<1x32x32xbf16>
    %324 = vector.shape_cast %323 : vector<1x32x32xbf16> to vector<32x32xbf16>
    %cst_88 = arith.constant dense<0.000000e+00> : vector<48x32xf32>
    %325 = tpu.matmul %322, %324, %cst_88 {dimension_numbers = #tpu.dot_dimension_numbers<[1], [0], [0], [1], [0, 0, 1, 1], [], []>} : vector<48x32xbf16>, vector<32x32xbf16>, vector<48x32xf32> -> vector<48x32xf32>
    %326 = vector.broadcast %208 : vector<1x32xf32> to vector<48x32xf32>
    %327 = arith.addf %325, %326 : vector<48x32xf32>
    %328 = arith.addf %202, %327 : vector<48x32xf32>
    %cst_89 = arith.constant dense<0.000000e+00> : vector<48xf32>
    %329 = vector.multi_reduction <add>, %328, %cst_89 [1] : vector<48x32xf32> to vector<48xf32>
    %330 = vector.shape_cast %329 : vector<48xf32> to vector<48x1xf32>
    %cst_90 = arith.constant 3.200000e+01 : f32
    %331 = vector.broadcast %cst_90 : f32 to vector<48x1xf32>
    %332 = arith.divf %330, %331 : vector<48x1xf32>
    %333 = vector.broadcast %332 : vector<48x1xf32> to vector<48x32xf32>
    %334 = arith.subf %328, %333 : vector<48x32xf32>
    %335 = arith.mulf %334, %334 : vector<48x32xf32>
    %cst_91 = arith.constant dense<0.000000e+00> : vector<48xf32>
    %336 = vector.multi_reduction <add>, %335, %cst_91 [1] : vector<48x32xf32> to vector<48xf32>
    %337 = vector.shape_cast %336 : vector<48xf32> to vector<48x1xf32>
    %cst_92 = arith.constant 3.200000e+01 : f32
    %338 = vector.broadcast %cst_92 : f32 to vector<48x1xf32>
    %339 = arith.divf %337, %338 : vector<48x1xf32>
    %340 = vector.broadcast %332 : vector<48x1xf32> to vector<48x32xf32>
    %341 = arith.subf %328, %340 : vector<48x32xf32>
    %cst_93 = arith.constant 9.99999997E-7 : f32
    %342 = vector.broadcast %cst_93 : f32 to vector<48x1xf32>
    %343 = arith.addf %339, %342 : vector<48x1xf32>
    %344 = math.rsqrt %343 : vector<48x1xf32>
    %345 = vector.broadcast %344 : vector<48x1xf32> to vector<48x32xf32>
    %346 = arith.mulf %341, %345 : vector<48x32xf32>
    %347 = vector.broadcast %209 : vector<1x32xf32> to vector<48x32xf32>
    %348 = arith.mulf %346, %347 : vector<48x32xf32>
    %349 = vector.broadcast %210 : vector<1x32xf32> to vector<48x32xf32>
    %350 = arith.addf %348, %349 : vector<48x32xf32>
    %351 = arith.truncf %350 : vector<48x32xf32> to vector<48x32xbf16>
    %c1_94 = arith.constant 1 : index
    %c0_95 = arith.constant 0 : index
    %c0_96 = arith.constant 0 : index
    %352 = vector.load %arg6[%c1_94, %c0_95, %c0_96] : memref<2x32x64xbf16, #tpu.memory_space<vmem>>, vector<1x32x64xbf16>
    %353 = vector.shape_cast %352 : vector<1x32x64xbf16> to vector<32x64xbf16>
    %cst_97 = arith.constant dense<0.000000e+00> : vector<48x64xf32>
    %354 = tpu.matmul %351, %353, %cst_97 {dimension_numbers = #tpu.dot_dimension_numbers<[1], [0], [0], [1], [0, 0, 1, 1], [], []>} : vector<48x32xbf16>, vector<32x64xbf16>, vector<48x64xf32> -> vector<48x64xf32>
    %355 = vector.broadcast %211 : vector<1x64xf32> to vector<48x64xf32>
    %356 = arith.addf %354, %355 : vector<48x64xf32>
    %cst_98 = arith.constant 5.000000e-01 : f32
    %357 = vector.broadcast %cst_98 : f32 to vector<48x64xf32>
    %358 = arith.mulf %357, %356 : vector<48x64xf32>
    %cst_99 = arith.constant 0.707106769 : f32
    %359 = vector.broadcast %cst_99 : f32 to vector<48x64xf32>
    %360 = arith.mulf %356, %359 : vector<48x64xf32>
    %361 = math.erf %360 : vector<48x64xf32>
    %cst_100 = arith.constant 1.000000e+00 : f32
    %362 = vector.broadcast %cst_100 : f32 to vector<48x64xf32>
    %363 = arith.addf %362, %361 : vector<48x64xf32>
    %364 = arith.mulf %358, %363 : vector<48x64xf32>
    %365 = arith.truncf %364 : vector<48x64xf32> to vector<48x64xbf16>
    %c1_101 = arith.constant 1 : index
    %c0_102 = arith.constant 0 : index
    %c0_103 = arith.constant 0 : index
    %366 = vector.load %arg7[%c1_101, %c0_102, %c0_103] : memref<2x64x32xbf16, #tpu.memory_space<vmem>>, vector<1x64x32xbf16>
    %367 = vector.shape_cast %366 : vector<1x64x32xbf16> to vector<64x32xbf16>
    %cst_104 = arith.constant dense<0.000000e+00> : vector<48x32xf32>
    %368 = tpu.matmul %365, %367, %cst_104 {dimension_numbers = #tpu.dot_dimension_numbers<[1], [0], [0], [1], [0, 0, 1, 1], [], []>} : vector<48x64xbf16>, vector<64x32xbf16>, vector<48x32xf32> -> vector<48x32xf32>
    %369 = vector.broadcast %212 : vector<1x32xf32> to vector<48x32xf32>
    %370 = arith.addf %368, %369 : vector<48x32xf32>
    %371 = arith.addf %328, %370 : vector<48x32xf32>
    %c0_105 = arith.constant 0 : index
    %c0_106 = arith.constant 0 : index
    %372 = vector.load %arg9[%c0_105, %c0_106] : memref<48x32xf32, #tpu.memory_space<vmem>>, vector<48x32xf32>
    tpu.vector_store %arg9[%c0_105, %c0_106], %371 {strides = array<i32>} : memref<48x32xf32, #tpu.memory_space<vmem>>, vector<48x32xf32>,
    %c2 = arith.constant 2 : index
    %c0_107 = arith.constant 0 : index
    %c0_108 = arith.constant 0 : index
    %373 = vector.load %arg8[%c2, %c0_107, %c0_108] : memref<3x8x96xf32, #tpu.memory_space<vmem>>, vector<1x8x96xf32>
    %374 = vector.shape_cast %373 : vector<1x8x96xf32> to vector<8x96xf32>
    %375 = vector.extract_strided_slice %374 {offsets = [0, 0], sizes = [1, 32], strides = [1, 1]} : vector<8x96xf32> to vector<1x32xf32>
    %376 = vector.extract_strided_slice %374 {offsets = [1, 0], sizes = [1, 32], strides = [1, 1]} : vector<8x96xf32> to vector<1x32xf32>
    %377 = vector.extract_strided_slice %371 {offsets = [0, 0], sizes = [1, 32], strides = [1, 1]} : vector<48x32xf32> to vector<1x32xf32>
    %378 = vector.extract_strided_slice %371 {offsets = [24, 0], sizes = [1, 32], strides = [1, 1]} : vector<48x32xf32> to vector<1x32xf32>
    %379 = tpu.concatenate %377, %378 in 0 : vector<1x32xf32>, vector<1x32xf32> -> vector<2x32xf32>
    %cst_109 = arith.constant dense<0.000000e+00> : vector<2xf32>
    %380 = vector.multi_reduction <add>, %379, %cst_109 [1] : vector<2x32xf32> to vector<2xf32>
    %381 = vector.shape_cast %380 : vector<2xf32> to vector<2x1xf32>
    %cst_110 = arith.constant 3.200000e+01 : f32
    %382 = vector.broadcast %cst_110 : f32 to vector<2x1xf32>
    %383 = arith.divf %381, %382 : vector<2x1xf32>
    %384 = vector.broadcast %383 : vector<2x1xf32> to vector<2x32xf32>
    %385 = arith.subf %379, %384 : vector<2x32xf32>
    %386 = arith.mulf %385, %385 : vector<2x32xf32>
    %cst_111 = arith.constant dense<0.000000e+00> : vector<2xf32>
    %387 = vector.multi_reduction <add>, %386, %cst_111 [1] : vector<2x32xf32> to vector<2xf32>
    %388 = vector.shape_cast %387 : vector<2xf32> to vector<2x1xf32>
    %cst_112 = arith.constant 3.200000e+01 : f32
    %389 = vector.broadcast %cst_112 : f32 to vector<2x1xf32>
    %390 = arith.divf %388, %389 : vector<2x1xf32>
    %391 = vector.broadcast %383 : vector<2x1xf32> to vector<2x32xf32>
    %392 = arith.subf %379, %391 : vector<2x32xf32>
    %cst_113 = arith.constant 9.99999997E-7 : f32
    %393 = vector.broadcast %cst_113 : f32 to vector<2x1xf32>
    %394 = arith.addf %390, %393 : vector<2x1xf32>
    %395 = math.rsqrt %394 : vector<2x1xf32>
    %396 = vector.broadcast %395 : vector<2x1xf32> to vector<2x32xf32>
    %397 = arith.mulf %392, %396 : vector<2x32xf32>
    %398 = vector.broadcast %375 : vector<1x32xf32> to vector<2x32xf32>
    %399 = arith.mulf %397, %398 : vector<2x32xf32>
    %400 = vector.broadcast %376 : vector<1x32xf32> to vector<2x32xf32>
    %401 = arith.addf %399, %400 : vector<2x32xf32>
    %c0_114 = arith.constant 0 : index
    %c0_115 = arith.constant 0 : index
    %402 = vector.load %arg10[%c0_114, %c0_115] : memref<2x32xf32, #tpu.memory_space<vmem>>, vector<2x32xf32>
    tpu.vector_store %arg10[%c0_114, %c0_115], %401 {strides = array<i32>} : memref<2x32xf32, #tpu.memory_space<vmem>>, vector<2x32xf32>,
    return
  }
  func.func @transform_0(%arg0: i32) -> (i32, i32) {
    %c0_i32 = arith.constant 0 : i32
    %c0_i32_0 = arith.constant 0 : i32
    return %arg0, %c0_i32 : i32, i32
  }
  func.func @transform_1(%arg0: i32) -> (i32, i32) {
    %c0_i32 = arith.constant 0 : i32
    %c0_i32_0 = arith.constant 0 : i32
    %c0_i32_1 = arith.constant 0 : i32
    return %c0_i32, %c0_i32_0 : i32, i32
  }
  func.func @transform_2(%arg0: i32) -> (i32, i32) {
    %c0_i32 = arith.constant 0 : i32
    %c0_i32_0 = arith.constant 0 : i32
    %c0_i32_1 = arith.constant 0 : i32
    return %c0_i32, %c0_i32_0 : i32, i32
  }
  func.func @transform_3(%arg0: i32) -> (i32, i32, i32) {
    %c0_i32 = arith.constant 0 : i32
    %c0_i32_0 = arith.constant 0 : i32
    %c0_i32_1 = arith.constant 0 : i32
    %c0_i32_2 = arith.constant 0 : i32
    return %c0_i32, %c0_i32_0, %c0_i32_1 : i32, i32, i32
  }
  func.func @transform_4(%arg0: i32) -> (i32, i32, i32) {
    %c0_i32 = arith.constant 0 : i32
    %c0_i32_0 = arith.constant 0 : i32
    %c0_i32_1 = arith.constant 0 : i32
    %c0_i32_2 = arith.constant 0 : i32
    return %c0_i32, %c0_i32_0, %c0_i32_1 : i32, i32, i32
  }
  func.func @transform_5(%arg0: i32) -> (i32, i32, i32) {
    %c0_i32 = arith.constant 0 : i32
    %c0_i32_0 = arith.constant 0 : i32
    %c0_i32_1 = arith.constant 0 : i32
    %c0_i32_2 = arith.constant 0 : i32
    return %c0_i32, %c0_i32_0, %c0_i32_1 : i32, i32, i32
  }
  func.func @transform_6(%arg0: i32) -> (i32, i32, i32) {
    %c0_i32 = arith.constant 0 : i32
    %c0_i32_0 = arith.constant 0 : i32
    %c0_i32_1 = arith.constant 0 : i32
    %c0_i32_2 = arith.constant 0 : i32
    return %c0_i32, %c0_i32_0, %c0_i32_1 : i32, i32, i32
  }
  func.func @transform_7(%arg0: i32) -> (i32, i32, i32) {
    %c0_i32 = arith.constant 0 : i32
    %c0_i32_0 = arith.constant 0 : i32
    %c0_i32_1 = arith.constant 0 : i32
    %c0_i32_2 = arith.constant 0 : i32
    return %c0_i32, %c0_i32_0, %c0_i32_1 : i32, i32, i32
  }
  func.func @transform_8(%arg0: i32) -> (i32, i32) {
    %c0_i32 = arith.constant 0 : i32
    %c0_i32_0 = arith.constant 0 : i32
    return %arg0, %c0_i32 : i32, i32
  }
  func.func @transform_9(%arg0: i32) -> (i32, i32) {
    %c0_i32 = arith.constant 0 : i32
    %c0_i32_0 = arith.constant 0 : i32
    return %arg0, %c0_i32 : i32, i32
  }
}

</mosaic_0001>

<bundles_post_ra>
// kernel: vit_forward.1
= control target key start
LH: loop header
LB: loop body
LE: loop exit
PB: predicated region body
PF: predicated region fallthrough
CT: control target
= control target key end

     0   :  { %v4674_v1 = vmov 0.0   ;;  %vm4675_vm0 = vmmov 0   ;;  %vm72_vm1 = vcmask 392192   ;;  %s6362_s0 = inlined_call_operand.vmem [shape: f32[48,48], index: 0, kind: input, shape index: {}]   ;;  %s6363_s1 = inlined_call_operand.vmem [shape: f32[48,32], index: 1, kind: input, shape index: {}]   ;;  %s6364_s2 = inlined_call_operand.vmem [shape: bf16[48,32], index: 2, kind: input, shape index: {}]   ;;  %s6365_s3 = inlined_call_operand.vmem [shape: bf16[2,32,96], index: 3, kind: input, shape index: {}]   ;;  %s6366_s4 = inlined_call_operand.vmem [shape: bf16[2,32,32], index: 4, kind: input, shape index: {}]   ;;  %s6367_s5 = inlined_call_operand.vmem [shape: bf16[2,32,64], index: 5, kind: input, shape index: {}]   ;;  %s6368_s6 = inlined_call_operand.vmem [shape: bf16[2,64,32], index: 6, kind: input, shape index: {}]   ;;  %s6369_s7 = inlined_call_operand.vmem [shape: f32[3,8,96], index: 7, kind: input, shape index: {}]   ;;  %s6370_s8 = inlined_call_operand.vmem [shape: f32[48,32], index: 8, kind: output, shape index: {0}]   ;;  %s6371_s9 = inlined_call_operand.hbm [shape: f32[2,32], index: 9, kind: output, shape index: {1}]  }
   0x1   :  { %v4361_v0 = vld [vmem:[%s6364_s2 + $0x10] sm:$0xff]   ;;  %3807 = vmatprep.subr.bf16.mxu0 %v4674_v1  ;;  %3825 = vmatprep.subr.bf16.mxu1 %v4674_v1  ;;  %v4362_v2 = vld [vmem:[%s6364_s2 + $0x8] sm:$0xff]   ;;  %v4363_v3 = vld [vmem:[%s6364_s2] sm:$0xff]  }
   0x2   :  { %3808 = vmatpush3.bf16.msra.mxu0 %v4361_v0  ;;  %3813 = vmatprep.mubr.msk.bf16.mxu0 %vm4675_vm0, %v4674_v1  ;;  %v33_v4 = vld [vmem:[%s6362_s0] sm:$0xff]  ;;  %v34_v5 = vld [vmem:[%s6362_s0 + $0x8] sm:$0xff]  ;;  %v35_v7 = vld [vmem:[%s6362_s0 + $0x10] sm:$0xff] }
   0x3   :  { %3809 = vmatprep.subr.bf16.mxu0 %v4674_v1  ;;  %3829 = vmatprep.mubr.msk.bf16.mxu1 %vm4675_vm0, %v4674_v1  ;;  %v39_v6 = vpack.c.bf16 %v34_v5, %v33_v4  ;;  %v36_v8 = vld [vmem:[%s6362_s0 + $0x18] sm:$0xff] }
   0x4   :  { %v40_v9 = vpack.c.bf16 %v36_v8, %v35_v7 }
   0x6   :  { %3810 = vmatpush3.bf16.msra.mxu0 %v4362_v2 }
   0x7   :  { %3811 = vmatprep.subr.bf16.mxu0 %v4674_v1 }
   0xa   :  { %3812 = vmatpush3.bf16.msra.mxu0 %v4363_v3 }
   0xb   :  { %3859 = vmatprep.subr.bf16.mxu0 %v4674_v1 }
   0xd   :  { %3814 = vmatmul.mubr.msk.bf16.vlgmr.msra.gmra.mxu0 %vm72_vm1, %v39_v6 }
   0xe   :  { %3817 = vmatprep.mubr.msk.bf16.mxu0 %vm4675_vm0, %v4674_v1 }
   0xf   :  { %15 = vsyncpa [#allocation3], 0  ;;  %v37_v10 = vld [vmem:[%s6362_s0 + $0x20] sm:$0xff]  ;;  %v38_v11 = vld [vmem:[%s6362_s0 + $0x28] sm:$0xff]  ;;  %vm225_vm2 = vcmask 261120   ;;  %s4676_s2 = smov 120  }
  0x10   :  { %v41_v12 = vpack.c.bf16 %v38_v11, %v37_v10  ;;  %v48_v13 = vld [vmem:[%s6363_s1] sm:$0xff]  ;;  %v49_v17 = vld [vmem:[%s6363_s1 + $0x8] sm:$0xff]  ;;  %v50_v22 = vld [vmem:[%s6363_s1 + $0x10] sm:$0xff]  ;;  %s4677_s21 = smov 96   ;;  %s4678_s22 = smov 72   ;;  %vm426_vm3 = vcmask 64512  }
  0x11   :  { %v51_v27 = vld [vmem:[%s6363_s1 + $0x18] sm:$0xff]  ;;  %v52_v32 = vld [vmem:[%s6363_s1 + $0x20] sm:$0xff]  ;;  %v53_v37 = vld [vmem:[%s6363_s1 + $0x28] sm:$0xff]  ;;  %s4679_s23 = smov 104   ;;  %s4680_s24 = smov 48   ;;  %vm1417_vm8 = vcmask 130048  }
  0x12   :  { %v4364_v10 = vld [vmem:[%s6365_s3 + $0x8] sm:$0xff]   ;;  %v4365_v11 = vld [vmem:[%s6365_s3] sm:$0xff]   ;;  %s4681_s25 = smov 80   ;;  %s4682_s26 = smov 56   ;;  %vm1424_vm9 = vcmask 195584   ;;  %vm1782_vm10 = vcmask 523264  }
  0x13   :  { %3826 = vmatpush3.bf16.msra.mxu1 %v4364_v10  ;;  %s4683_s27 = smov 112   ;;  %s4684_s28 = smov 88   ;;  %vm3496_vm11 = vcmask 1040384   ;;  %vm3498_vm12 = vcmask 254976  }
  0x14   :  { %3827 = vmatprep.subr.bf16.mxu1 %v4674_v1  ;;  %s4686_s29 = smov 64   ;;  %s4687_s0 = smov 40  }
  0x15   :  { %3818 = vmatmul.mubr.msk.bf16.gmra.mxu0 %vm72_vm1, %v40_v9  ;;  %s4688_s30 = smov 8   ;;  %s4689_s14 = smov 16  }
  0x16   :  { %3821 = vmatprep.mubr.msk.bf16.mxu0 %vm4675_vm0, %v4674_v1  ;;  %s4690_s15 = smov 24  }
  0x17   :  { %3828 = vmatpush3.bf16.msra.mxu1 %v4365_v11 }
  0x18   :  { %3841 = vmatprep.subr.bf16.mxu1 %v4674_v1 }
  0x1d   :  { %3822 = vmatmul.mubr.msk.bf16.gmra.mxu0 %vm72_vm1, %v41_v12 }
  0x1e   :  { %3865 = vmatprep.mubr.msk.bf16.mxu0 %vm4675_vm0, %v4674_v1 }
  0xcd   :  { %v116_v14 = vpop.f32.mrf.mxu0 }
  0xce   :  { %v4790_v15 = vadd.f32 %v116_v14, %v48_v13 }
  0xcf   :  { %v3815_v16 = vpop.f32.mrf.mxu0 }
  0xd0   :  { %v226_v18 = vsel %vm225_vm2, %v4790_v15, 0.0 }
  0xd1   :  { %227 = vadd.xlane.f32.xlu0 %v226_v18  ;;  %v119_v19 = vpop.f32.mrf.mxu0 }
  0xd2   :  { %v4797_v20 = vadd.f32 %v119_v19, %v49_v17  ;;  %v146_v19 = vlaneseq }
  0xd3   :  { %v3816_v21 = vpop.f32.mrf.mxu0 }
  0xd4   :  { %v229_v23 = vsel %vm225_vm2, %v4797_v20, 0.0 }
  0xd5   :  { %230 = vadd.xlane.f32.xlu0 %v229_v23  ;;  %v124_v24 = vpop.f32.mrf.mxu0 }
  0xd6   :  { %v4804_v25 = vadd.f32 %v124_v24, %v50_v22  ;;  %v4874_v24 = vshrl.u32 %v146_v19, 7 }
  0xd7   :  { %v3819_v26 = vpop.f32.mrf.mxu0 }
  0xd8   :  { %v232_v28 = vsel %vm225_vm2, %v4804_v25, 0.0 }
  0xd9   :  { %233 = vadd.xlane.f32.xlu1 %v232_v28  ;;  %v127_v29 = vpop.f32.mrf.mxu0 }
  0xda   :  { %v4811_v30 = vadd.f32 %v127_v29, %v51_v27  ;;  %v4877_v29 = vsub.s32 0, %v4874_v24 }
  0xdb   :  { %v3820_v31 = vpop.f32.mrf.mxu0 }
  0xdc   :  { %v235_v33 = vsel %vm225_vm2, %v4811_v30, 0.0 }
  0xdd   :  { %236 = vadd.xlane.f32.xlu1 %v235_v33  ;;  %v132_v34 = vpop.f32.mrf.mxu0 }
  0xde   :  { %v4818_v35 = vadd.f32 %v132_v34, %v52_v32  ;;  %v224_v32 = vld [vmem:[%s6369_s7] sm:$0xff] }
  0xdf   :  { %v3823_v36 = vpop.f32.mrf.mxu0 }
  0xe0   :  { %v238_v38 = vsel %vm225_vm2, %v4818_v35, 0.0 }
  0xe1   :  { %239 = vadd.xlane.f32.xlu0 %v238_v38  ;;  %v135_v39 = vpop.f32.mrf.mxu0  ;;  %v308_v38 = vrot.slane %v224_v32, %v4877_v29 }
  0xe2   :  { %v4825_v40 = vadd.f32 %v135_v39, %v53_v37  ;;  %v4885_v39 = vsub.s32 1, %v4874_v24 }
  0xe3   :  { %v3824_v41 = vpop.f32.mrf.mxu0 }
  0xe4   :  { %v241_v42 = vsel %vm225_vm2, %v4825_v40, 0.0 }
  0xe5   :  { %242 = vadd.xlane.f32.xlu1 %v241_v42 }
 0x15a   :  { %v228_v43 = vpop.xlane.xlu0 %227 }
 0x15b   :  { %v245_v44 = vmul.f32 0.03125, %v228_v43 }
 0x15d   :  { %v4830_v45 = vsub.f32 %v4790_v15, %v245_v44 }
 0x15e   :  { %v231_v46 = vpop.xlane.xlu0 %230 }
 0x15f   :  { %v246_v47 = vmul.f32 0.03125, %v231_v46  ;;  %v257_v48 = vmul.f32 %v4830_v45, %v4830_v45 }
 0x161   :  { %v4835_v49 = vsub.f32 %v4797_v20, %v246_v47  ;;  %v263_v50 = vsel %vm225_vm2, %v257_v48, 0.0  ;;  %v318_v48 = vrot.slane %v224_v32, %v4885_v39 }
 0x162   :  { %v234_v51 = vpop.xlane.xlu1 %233  ;;  %264 = vadd.xlane.f32.xlu0 %v263_v50 }
 0x163   :  { %v247_v52 = vmul.f32 0.03125, %v234_v51  ;;  %v258_v53 = vmul.f32 %v4835_v49, %v4835_v49 }
 0x165   :  { %v4841_v54 = vsub.f32 %v4804_v25, %v247_v52  ;;  %v266_v55 = vsel %vm225_vm2, %v258_v53, 0.0 }
 0x166   :  { %v237_v56 = vpop.xlane.xlu1 %236  ;;  %267 = vadd.xlane.f32.xlu1 %v266_v55 }
 0x167   :  { %v248_v57 = vmul.f32 0.03125, %v237_v56  ;;  %v259_v58 = vmul.f32 %v4841_v54, %v4841_v54 }
 0x169   :  { %v4847_v59 = vsub.f32 %v4811_v30, %v248_v57  ;;  %v269_v60 = vsel %vm225_vm2, %v259_v58, 0.0 }
 0x16a   :  { %270 = vadd.xlane.f32.xlu0 %v269_v60  ;;  %v240_v61 = vpop.xlane.xlu0 %239 }
 0x16b   :  { %v249_v62 = vmul.f32 0.03125, %v240_v61  ;;  %v260_v63 = vmul.f32 %v4847_v59, %v4847_v59 }
 0x16d   :  { %v4853_v0 = vsub.f32 %v4818_v35, %v249_v62  ;;  %v272_v2 = vsel %vm225_vm2, %v260_v63, 0.0 }
 0x16e   :  { %273 = vadd.xlane.f32.xlu1 %v272_v2  ;;  %v243_v3 = vpop.xlane.xlu1 %242 }
 0x16f   :  { %v250_v4 = vmul.f32 0.03125, %v243_v3  ;;  %v261_v5 = vmul.f32 %v4853_v0, %v4853_v0 }
 0x171   :  { %v4859_v6 = vsub.f32 %v4825_v40, %v250_v4  ;;  %v275_v7 = vsel %vm225_vm2, %v261_v5, 0.0 }
 0x172   :  { %276 = vadd.xlane.f32.xlu0 %v275_v7 }
 0x173   :  { %v262_v8 = vmul.f32 %v4859_v6, %v4859_v6 }
 0x175   :  { %v278_v9 = vsel %vm225_vm2, %v262_v8, 0.0 }
 0x176   :  { %279 = vadd.xlane.f32.xlu1 %v278_v9 }
 0x1eb   :  { %v265_v12 = vpop.xlane.xlu0 %264 }
 0x1ec   :  { %v281_v13 = vmul.f32 0.03125, %v265_v12  ;;  %v334_v12 = vsub.s32 2, %v4874_v24 }
 0x1ee   :  { %v287_v14 = vadd.f32 1e-06, %v281_v13 }
 0x1ef   :  { %v268_v16 = vpop.xlane.xlu1 %267 }
 0x1f0   :  { %4384 = vrsqrt.f32 %v287_v14  ;;  %v282_v17 = vmul.f32 0.03125, %v268_v16  ;;  %v335_v14 = vrot.slane %v224_v32, %v334_v12 }
 0x1f2   :  { %v288_v18 = vadd.f32 1e-06, %v282_v17 }
 0x1f3   :  { %v271_v21 = vpop.xlane.xlu0 %270 }
 0x1f4   :  { %4386 = vrsqrt.f32 %v288_v18  ;;  %v283_v22 = vmul.f32 0.03125, %v271_v21 }
 0x1f6   :  { %v289_v23 = vadd.f32 1e-06, %v283_v22 }
 0x1f7   :  { %v274_v26 = vpop.xlane.xlu1 %273 }
 0x1f8   :  { %4388 = vrsqrt.f32 %v289_v23  ;;  %v284_v27 = vmul.f32 0.03125, %v274_v26 }
 0x1fa   :  { %v290_v28 = vadd.f32 1e-06, %v284_v27 }
 0x1fb   :  { %v277_v31 = vpop.xlane.xlu0 %276 }
 0x1fc   :  { %4390 = vrsqrt.f32 %v290_v28  ;;  %v285_v33 = vmul.f32 0.03125, %v277_v31 }
 0x1fd   :  { %v4385_v34 = vpop.eup %4384 }
 0x1fe   :  { %v291_v36 = vadd.f32 1e-06, %v285_v33  ;;  %v299_v37 = vmul.f32 %v4385_v34, %v4830_v45 }
 0x1ff   :  { %v280_v41 = vpop.xlane.xlu1 %279 }
 0x200   :  { %4392 = vrsqrt.f32 %v291_v36  ;;  %v286_v42 = vmul.f32 0.03125, %v280_v41  ;;  %v309_v47 = vmul.f32 %v308_v38, %v299_v37 }
 0x201   :  { %v4387_v43 = vpop.eup %4386 }
 0x202   :  { %v292_v44 = vadd.f32 1e-06, %v286_v42  ;;  %v300_v46 = vmul.f32 %v4387_v43, %v4835_v49  ;;  %v319_v52 = vadd.f32 %v318_v48, %v309_v47 }
 0x204   :  { %4394 = vrsqrt.f32 %v292_v44  ;;  %v310_v50 = vmul.f32 %v308_v38, %v300_v46 }
 0x205   :  { %v4389_v51 = vpop.eup %4388 }
 0x206   :  { %v320_v45 = vadd.f32 %v318_v48, %v310_v50  ;;  %v301_v53 = vmul.f32 %v4389_v51, %v4841_v54 }
 0x208   :  { %v325_v55 = vpack.c.bf16 %v320_v45, %v319_v52  ;;  %v311_v58 = vmul.f32 %v308_v38, %v301_v53 }
 0x209   :  { %v4391_v56 = vpop.eup %4390 }
 0x20a   :  { %3830 = vmatmul.mubr.msk.bf16.vlgmr.msra.gmra.mxu1 %vm225_vm2, %v325_v55  ;;  %v302_v57 = vmul.f32 %v4391_v56, %v4847_v59  ;;  %v321_v61 = vadd.f32 %v318_v48, %v311_v58 }
 0x20b   :  { %3833 = vmatprep.mubr.msk.bf16.mxu1 %vm4675_vm0, %v4674_v1 }
 0x20c   :  { %v312_v49 = vmul.f32 %v308_v38, %v302_v57 }
 0x20d   :  { %v4393_v60 = vpop.eup %4392 }
 0x20e   :  { %v322_v62 = vadd.f32 %v318_v48, %v312_v49  ;;  %v303_v63 = vmul.f32 %v4393_v60, %v4853_v0 }
 0x210   :  { %v326_v2 = vpack.c.bf16 %v322_v62, %v321_v61  ;;  %v313_v4 = vmul.f32 %v308_v38, %v303_v63 }
 0x211   :  { %v4395_v3 = vpop.eup %4394 }
 0x212   :  { %3834 = vmatmul.mubr.msk.bf16.gmra.mxu1 %vm225_vm2, %v326_v2  ;;  %v304_v54 = vmul.f32 %v4395_v3, %v4859_v6  ;;  %v323_v5 = vadd.f32 %v318_v48, %v313_v4 }
 0x213   :  { %3837 = vmatprep.mubr.msk.bf16.mxu1 %vm4675_vm0, %v4674_v1 }
 0x214   :  { %v314_v59 = vmul.f32 %v308_v38, %v304_v54 }
 0x216   :  { %v324_v7 = vadd.f32 %v318_v48, %v314_v59 }
 0x218   :  { %v327_v8 = vpack.c.bf16 %v324_v7, %v323_v5 }
 0x21a   :  { %3838 = vmatmul.mubr.msk.bf16.gmra.mxu1 %vm225_vm2, %v327_v8 }
 0x21b   :  { %3847 = vmatprep.mubr.msk.bf16.mxu1 %vm4675_vm0, %v4674_v1 }
 0x2ca   :  { %v391_v0 = vpop.f32.mrf.mxu1 }
 0x2cb   :  { %v392_v27 = vadd.f32 %v391_v0, %v335_v14 }
 0x2cc   :  { %v3831_v9 = vpop.f32.mrf.mxu1 }
 0x2ce   :  { %v394_v10 = vpop.f32.mrf.mxu1 }
 0x2cf   :  { %v395_v22 = vadd.f32 %v394_v10, %v335_v14 }
 0x2d0   :  { %v3832_v11 = vpop.f32.mrf.mxu1 }
 0x2d1   :  { %v4909_v31 = vpack.c.bf16 %v395_v22, %v392_v27 }
 0x2d2   :  { %v399_v6 = vpop.f32.mrf.mxu1 }
 0x2d3   :  { %v400_v17 = vadd.f32 %v399_v6, %v335_v14 }
 0x2d4   :  { %v3835_v13 = vpop.f32.mrf.mxu1 }
 0x2d6   :  { %v402_v16 = vpop.f32.mrf.mxu1 }
 0x2d7   :  { %v403_v18 = vadd.f32 %v402_v16, %v335_v14  ;;  %v4685_v16 = vmov -1e+30  }
 0x2d8   :  { %v3836_v21 = vpop.f32.mrf.mxu1 }
 0x2d9   :  { %v4905_v23 = vpack.c.bf16 %v403_v18, %v400_v17 }
 0x2da   :  { %v407_v26 = vpop.f32.mrf.mxu1 }
 0x2db   :  { %422 = vrot.lane.b32.xlu1 %v4905_v23, %s4676_s2  ;;  %v408_v34 = vadd.f32 %v407_v26, %v335_v14 }
 0x2dc   :  { %v3839_v28 = vpop.f32.mrf.mxu1 }
 0x2de   :  { %v410_v33 = vpop.f32.mrf.mxu1 }
 0x2df   :  { %v411_v36 = vadd.f32 %v410_v33, %v335_v14  ;;  %420 = vrot.lane.b32.xlu1 %v4909_v31, %s4676_s2  ;;  %v147_v14 = vand.u32 127, %v146_v19 }
 0x2e0   :  { %v3840_v32 = vpop.f32.mrf.mxu1 }
 0x2e1   :  { %v4913_v37 = vpack.c.bf16 %v411_v36, %v408_v34  ;;  %vm173_vm4 = vcmp.lt.s32.totalorder %v147_v14, 17  ;;  %vm198_vm5 = vcmp.ge.s32.totalorder %v147_v14, 24  ;;  %vm205_vm6 = vcmp.lt.s32.totalorder %v147_v14, 41 }
 0x2e2   :  { %v5030_v17 = vsel %vm173_vm4, 0.0, %v4685_v16  ;;  %vm209_vm7 = vmand %vm198_vm5, %vm205_vm6 }
 0x2e3   :  { %656 = vrot.lane.b32.xlu1 %v4913_v37, %s4677_s21  ;;  %424 = vrot.lane.b32.xlu0 %v4913_v37, %s4676_s2  ;;  %v5045_v32 = vsel %vm209_vm7, 0.0, %v4685_v16 }
 0x2e7   :  { %652 = vrot.lane.b32.xlu1 %v4909_v31, %s4677_s21  ;;  %654 = vrot.lane.b32.xlu0 %v4905_v23, %s4677_s21 }
 0x2eb   :  { %887 = vrot.lane.b32.xlu1 %v4913_v37, %s4678_s22  ;;  %646 = vrot.lane.b32.xlu0 %v4909_v31, %s4679_s23 }
 0x2ef   :  { %885 = vrot.lane.b32.xlu1 %v4905_v23, %s4678_s22  ;;  %648 = vrot.lane.b32.xlu0 %v4905_v23, %s4679_s23 }
 0x2f3   :  { %883 = vrot.lane.b32.xlu1 %v4909_v31, %s4678_s22  ;;  %650 = vrot.lane.b32.xlu0 %v4913_v37, %s4679_s23 }
 0x2f7   :  { %1118 = vrot.lane.b32.xlu1 %v4913_v37, %s4680_s24  ;;  %877 = vrot.lane.b32.xlu0 %v4909_v31, %s4681_s25 }
 0x2fb   :  { %1116 = vrot.lane.b32.xlu1 %v4905_v23, %s4680_s24  ;;  %879 = vrot.lane.b32.xlu0 %v4905_v23, %s4681_s25 }
 0x2ff   :  { %1114 = vrot.lane.b32.xlu1 %v4909_v31, %s4680_s24  ;;  %881 = vrot.lane.b32.xlu0 %v4913_v37, %s4681_s25 }
 0x303   :  { %1110 = vrot.lane.b32.xlu1 %v4905_v23, %s4682_s26  ;;  %1108 = vrot.lane.b32.xlu0 %v4909_v31, %s4682_s26 }
 0x307   :  { %571 = vrot.lane.b32.xlu1 %v4909_v31, %s4683_s27  ;;  %1112 = vrot.lane.b32.xlu0 %v4913_v37, %s4682_s26 }
 0x30b   :  { %575 = vrot.lane.b32.xlu1 %v4913_v37, %s4683_s27  ;;  %573 = vrot.lane.b32.xlu0 %v4905_v23, %s4683_s27 }
 0x30f   :  { %806 = vrot.lane.b32.xlu1 %v4913_v37, %s4684_s28  ;;  %804 = vrot.lane.b32.xlu0 %v4905_v23, %s4684_s28 }
 0x34d   :  { %v423_v38 = vpop.permute.xlu1 %422 }
 0x34e   :  { %v440_v51 = vsel %vm426_vm3, %v423_v38, 0 }
 0x351   :  { %v421_v41 = vpop.permute.xlu1 %420 }
 0x352   :  { %v437_v56 = vsel %vm426_vm3, %v421_v41, 0 }
 0x355   :  { %v425_v42 = vpop.permute.xlu0 %424  ;;  %v657_v43 = vpop.permute.xlu1 %656 }
 0x356   :  { %v443_v44 = vsel %vm426_vm3, %v425_v42, 0  ;;  %v674_v61 = vsel %vm426_vm3, %v657_v43, 0 }
 0x357   :  { %3842 = vmatpush3.bf16.xpose.msra.mxu1 %v443_v44 }
 0x358   :  { %3843 = vmatprep.subr.bf16.mxu1 %v4674_v1 }
 0x359   :  { %v655_v46 = vpop.permute.xlu0 %654  ;;  %v653_v47 = vpop.permute.xlu1 %652 }
 0x35a   :  { %v671_v54 = vsel %vm426_vm3, %v655_v46, 0  ;;  %v668_v7 = vsel %vm426_vm3, %v653_v47, 0 }
 0x35d   :  { %v647_v48 = vpop.permute.xlu0 %646  ;;  %v888_v50 = vpop.permute.xlu1 %887 }
 0x35e   :  { %v905_v0 = vsel %vm426_vm3, %v888_v50, 0 }
 0x35f   :  { %3844 = vmatpush3.bf16.xpose.msra.mxu1 %v440_v51 }
 0x360   :  { %3845 = vmatprep.subr.bf16.mxu1 %v4674_v1 }
 0x361   :  { %v649_v52 = vpop.permute.xlu0 %648  ;;  %v886_v45 = vpop.permute.xlu1 %885 }
 0x362   :  { %v902_v9 = vsel %vm426_vm3, %v886_v45, 0 }
 0x365   :  { %v651_v53 = vpop.permute.xlu0 %650  ;;  %v884_v55 = vpop.permute.xlu1 %883 }
 0x366   :  { %v899_v10 = vsel %vm426_vm3, %v884_v55, 0 }
 0x367   :  { %3846 = vmatpush3.bf16.xpose.msra.mxu1 %v437_v56 }
 0x368   :  { %3877 = vmatprep.subr.bf16.mxu1 %v4674_v1 }
 0x369   :  { %v878_v57 = vpop.permute.xlu0 %877  ;;  %v1119_v58 = vpop.permute.xlu1 %1118 }
 0x36a   :  { %v1136_v11 = vsel %vm426_vm3, %v1119_v58, 0 }
 0x36d   :  { %v880_v49 = vpop.permute.xlu0 %879  ;;  %v1117_v60 = vpop.permute.xlu1 %1116 }
 0x36e   :  { %3848 = vmatmul.mubr.msk.bf16.vlgmr.msra.gmra.mxu1 %vm426_vm3, %v4909_v31  ;;  %v1133_v6 = vsel %vm426_vm3, %v1117_v60, 0 }
 0x36f   :  { %3878 = vmatpush3.bf16.xpose.msra.mxu1 %v674_v61  ;;  %3851 = vmatprep.mubr.msk.bf16.mxu1 %vm4675_vm0, %v4674_v1 }
 0x370   :  { %3879 = vmatprep.subr.bf16.mxu1 %v4674_v1 }
 0x371   :  { %v882_v62 = vpop.permute.xlu0 %881  ;;  %v1115_v63 = vpop.permute.xlu1 %1114 }
 0x372   :  { %v1130_v13 = vsel %vm426_vm3, %v1115_v63, 0 }
 0x375   :  { %v1109_v2 = vpop.permute.xlu0 %1108  ;;  %v1111_v3 = vpop.permute.xlu1 %1110 }
 0x376   :  { %3852 = vmatmul.mubr.msk.bf16.gmra.mxu1 %vm426_vm3, %v4905_v23 }
 0x377   :  { %3880 = vmatpush3.bf16.xpose.msra.mxu1 %v671_v54  ;;  %3855 = vmatprep.mubr.msk.bf16.mxu1 %vm4675_vm0, %v4674_v1 }
 0x378   :  { %3881 = vmatprep.subr.bf16.mxu1 %v4674_v1 }
 0x379   :  { %v572_v4 = vpop.permute.xlu1 %571  ;;  %v1113_v59 = vpop.permute.xlu0 %1112 }
 0x37d   :  { %v576_v5 = vpop.permute.xlu1 %575  ;;  %v574_v8 = vpop.permute.xlu0 %573 }
 0x37e   :  { %3856 = vmatmul.mubr.msk.bf16.gmra.mxu1 %vm426_vm3, %v4913_v37  ;;  %3860 = vmatpush3.bf16.msra.mxu0 %v576_v5 }
 0x37f   :  { %3882 = vmatpush3.bf16.xpose.msra.mxu1 %v668_v7  ;;  %3861 = vmatprep.subr.bf16.mxu0 %v4674_v1 }
 0x380   :  { %3883 = vmatprep.mubr.msk.bf16.mxu1 %vm4675_vm0, %v4674_v1  ;;  %3913 = vmatprep.subr.bf16.mxu1 %v4674_v1 }
 0x382   :  { %3862 = vmatpush3.bf16.msra.mxu0 %v574_v8 }
 0x383   :  { %3863 = vmatprep.subr.bf16.mxu0 %v4674_v1 }
 0x386   :  { %3864 = vmatpush3.bf16.msra.mxu0 %v572_v4  ;;  %3884 = vmatmul.mubr.msk.bf16.vlgmr.msra.gmra.mxu1 %vm426_vm3, %v647_v48 }
 0x387   :  { %3914 = vmatpush3.bf16.xpose.msra.mxu1 %v905_v0  ;;  %3887 = vmatprep.mubr.msk.bf16.mxu1 %vm4675_vm0, %v4674_v1 }
 0x388   :  { %3915 = vmatprep.subr.bf16.mxu1 %v4674_v1  ;;  %3895 = vmatprep.subr.bf16.mxu0 %v4674_v1 }
 0x38e   :  { %3888 = vmatmul.mubr.msk.bf16.gmra.mxu1 %vm426_vm3, %v649_v52 }
 0x38f   :  { %3916 = vmatpush3.bf16.xpose.msra.mxu1 %v902_v9  ;;  %3891 = vmatprep.mubr.msk.bf16.mxu1 %vm4675_vm0, %v4674_v1 }
 0x390   :  { %3917 = vmatprep.subr.bf16.mxu1 %v4674_v1 }
 0x396   :  { %3892 = vmatmul.mubr.msk.bf16.gmra.mxu1 %vm426_vm3, %v651_v53 }
 0x397   :  { %3918 = vmatpush3.bf16.xpose.msra.mxu1 %v899_v10  ;;  %3919 = vmatprep.mubr.msk.bf16.mxu1 %vm4675_vm0, %v4674_v1 }
 0x398   :  { %3949 = vmatprep.subr.bf16.mxu1 %v4674_v1 }
 0x39e   :  { %3920 = vmatmul.mubr.msk.bf16.vlgmr.msra.gmra.mxu1 %vm426_vm3, %v878_v57 }
 0x39f   :  { %3950 = vmatpush3.bf16.xpose.msra.mxu1 %v1136_v11  ;;  %3923 = vmatprep.mubr.msk.bf16.mxu1 %vm4675_vm0, %v4674_v1 }
 0x3a0   :  { %3951 = vmatprep.subr.bf16.mxu1 %v4674_v1 }
 0x3a6   :  { %3924 = vmatmul.mubr.msk.bf16.gmra.mxu1 %vm426_vm3, %v880_v49 }
 0x3a7   :  { %3952 = vmatpush3.bf16.xpose.msra.mxu1 %v1133_v6  ;;  %3927 = vmatprep.mubr.msk.bf16.mxu1 %vm4675_vm0, %v4674_v1 }
 0x3a8   :  { %3953 = vmatprep.subr.bf16.mxu1 %v4674_v1 }
 0x3ae   :  { %3928 = vmatmul.mubr.msk.bf16.gmra.mxu1 %vm426_vm3, %v882_v62 }
 0x3af   :  { %3954 = vmatpush3.bf16.xpose.msra.mxu1 %v1130_v13  ;;  %3955 = vmatprep.mubr.msk.bf16.mxu1 %vm4675_vm0, %v4674_v1 }
 0x3b0   :  { %4249 = vmatprep.subr.bf16.mxu1 %v4674_v1 }
 0x3b6   :  { %3956 = vmatmul.mubr.msk.bf16.vlgmr.msra.gmra.mxu1 %vm426_vm3, %v1109_v2 }
 0x3b7   :  { %3959 = vmatprep.mubr.msk.bf16.mxu1 %vm4675_vm0, %v4674_v1 }
 0x3be   :  { %3960 = vmatmul.mubr.msk.bf16.gmra.mxu1 %vm426_vm3, %v1111_v3 }
 0x3bf   :  { %3963 = vmatprep.mubr.msk.bf16.mxu1 %vm4675_vm0, %v4674_v1 }
 0x3c6   :  { %3964 = vmatmul.mubr.msk.bf16.gmra.mxu1 %vm426_vm3, %v1113_v59 }
 0x3c7   :  { %3993 = vmatprep.mubr.msk.bf16.mxu1 %vm4675_vm0, %v4674_v1 }
 0x42e   :  { %v479_v18 = vpop.f32.mrf.mxu1 }
 0x42f   :  { %v5033_v21 = vadd.f32 %v479_v18, %v5030_v17 }
 0x430   :  { %v3849_v22 = vpop.f32.mrf.mxu1 }
 0x431   :  { %v502_v26 = vsel %vm72_vm1, %v5033_v21, -inf }
 0x432   :  { %503 = vmax.xlane.f32.xlu1 %v502_v26  ;;  %v482_v27 = vpop.f32.mrf.mxu1 }
 0x433   :  { %v5038_v28 = vadd.f32 %v482_v27, %v5030_v17 }
 0x434   :  { %v3850_v19 = vpop.f32.mrf.mxu1 }
 0x435   :  { %v505_v33 = vsel %vm72_vm1, %v5038_v28, -inf }
 0x436   :  { %506 = vmax.xlane.f32.xlu0 %v505_v33  ;;  %v487_v34 = vpop.f32.mrf.mxu1 }
 0x437   :  { %v5043_v36 = vadd.f32 %v487_v34, %v5030_v17 }
 0x438   :  { %v3853_v38 = vpop.f32.mrf.mxu1 }
 0x439   :  { %v508_v41 = vsel %vm72_vm1, %v5043_v36, -inf }
 0x43a   :  { %509 = vmax.xlane.f32.xlu0 %v508_v41  ;;  %v490_v42 = vpop.f32.mrf.mxu1 }
 0x43b   :  { %v5050_v43 = vadd.f32 %v490_v42, %v5045_v32 }
 0x43c   :  { %v3854_v44 = vpop.f32.mrf.mxu1 }
 0x43d   :  { %v511_v46 = vsel %vm72_vm1, %v5050_v43, -inf }
 0x43e   :  { %512 = vmax.xlane.f32.xlu0 %v511_v46  ;;  %v495_v47 = vpop.f32.mrf.mxu1 }
 0x43f   :  { %v5055_v48 = vadd.f32 %v495_v47, %v5045_v32 }
 0x440   :  { %v3857_v50 = vpop.f32.mrf.mxu1 }
 0x441   :  { %v514_v51 = vsel %vm72_vm1, %v5055_v48, -inf }
 0x442   :  { %515 = vmax.xlane.f32.xlu1 %v514_v51  ;;  %v498_v52 = vpop.f32.mrf.mxu1 }
 0x443   :  { %v5060_v45 = vadd.f32 %v498_v52, %v5045_v32 }
 0x444   :  { %v3858_v53 = vpop.f32.mrf.mxu1 }
 0x445   :  { %v517_v55 = vsel %vm72_vm1, %v5060_v45, -inf }
 0x446   :  { %518 = vmax.xlane.f32.xlu0 %v517_v55  ;;  %v710_v56 = vpop.f32.mrf.mxu1 }
 0x447   :  { %v5065_v57 = vadd.f32 %v710_v56, %v5030_v17 }
 0x448   :  { %v3885_v58 = vpop.f32.mrf.mxu1 }
 0x449   :  { %v733_v49 = vsel %vm72_vm1, %v5065_v57, -inf }
 0x44a   :  { %734 = vmax.xlane.f32.xlu1 %v733_v49  ;;  %v713_v60 = vpop.f32.mrf.mxu1 }
 0x44b   :  { %v5070_v61 = vadd.f32 %v713_v60, %v5030_v17 }
 0x44c   :  { %v3886_v62 = vpop.f32.mrf.mxu1 }
 0x44d   :  { %v736_v63 = vsel %vm72_vm1, %v5070_v61, -inf }
 0x44e   :  { %737 = vmax.xlane.f32.xlu0 %v736_v63  ;;  %v718_v2 = vpop.f32.mrf.mxu1 }
 0x44f   :  { %v5075_v3 = vadd.f32 %v718_v2, %v5030_v17 }
 0x450   :  { %v3889_v54 = vpop.f32.mrf.mxu1 }
 0x451   :  { %v739_v4 = vsel %vm72_vm1, %v5075_v3, -inf }
 0x452   :  { %740 = vmax.xlane.f32.xlu1 %v739_v4  ;;  %v721_v59 = vpop.f32.mrf.mxu1 }
 0x453   :  { %v5080_v5 = vadd.f32 %v721_v59, %v5045_v32 }
 0x454   :  { %v3890_v7 = vpop.f32.mrf.mxu1 }
 0x455   :  { %v742_v8 = vsel %vm72_vm1, %v5080_v5, -inf }
 0x456   :  { %743 = vmax.xlane.f32.xlu0 %v742_v8  ;;  %v726_v0 = vpop.f32.mrf.mxu1 }
 0x457   :  { %v5085_v9 = vadd.f32 %v726_v0, %v5045_v32 }
 0x458   :  { %v3893_v10 = vpop.f32.mrf.mxu1 }
 0x459   :  { %v745_v11 = vsel %vm72_vm1, %v5085_v9, -inf }
 0x45a   :  { %746 = vmax.xlane.f32.xlu1 %v745_v11  ;;  %v729_v6 = vpop.f32.mrf.mxu1 }
 0x45b   :  { %v5096_v49 = vadd.f32 %v729_v6, %v5045_v32 }
 0x45c   :  { %v3894_v13 = vpop.f32.mrf.mxu1 }
 0x45d   :  { %v748_v4 = vsel %vm72_vm1, %v5096_v49, -inf }
 0x45e   :  { %v941_v14 = vpop.f32.mrf.mxu1 }
 0x45f   :  { %v5099_v60 = vadd.f32 %v941_v14, %v5030_v17 }
 0x460   :  { %v3921_v16 = vpop.f32.mrf.mxu1 }
 0x461   :  { %v964_v59 = vsel %vm72_vm1, %v5099_v60, -inf }
 0x462   :  { %v944_v18 = vpop.f32.mrf.mxu1 }
 0x463   :  { %v5102_v2 = vadd.f32 %v944_v18, %v5030_v17 }
 0x464   :  { %v3922_v22 = vpop.f32.mrf.mxu1 }
 0x465   :  { %v967_v0 = vsel %vm72_vm1, %v5102_v2, -inf }
 0x466   :  { %v949_v26 = vpop.f32.mrf.mxu1 }
 0x467   :  { %v5105_v54 = vadd.f32 %v949_v26, %v5030_v17 }
 0x468   :  { %v3925_v27 = vpop.f32.mrf.mxu1 }
 0x469   :  { %v970_v10 = vsel %vm72_vm1, %v5105_v54, -inf }
 0x46a   :  { %v952_v19 = vpop.f32.mrf.mxu1 }
 0x46b   :  { %802 = vrot.lane.b32.xlu1 %v4909_v31, %s4684_s28  ;;  %v5112_v7 = vadd.f32 %v952_v19, %v5045_v32 }
 0x46c   :  { %1037 = vrot.lane.b32.xlu0 %v4913_v37, %s4686_s29  ;;  %v3926_v33 = vpop.f32.mrf.mxu1 }
 0x46d   :  { %v973_v13 = vsel %vm72_vm1, %v5112_v7, -inf }
 0x46e   :  { %v957_v34 = vpop.f32.mrf.mxu1 }
 0x46f   :  { %v5115_v8 = vadd.f32 %v957_v34, %v5045_v32 }
 0x470   :  { %1035 = vrot.lane.b32.xlu0 %v4905_v23, %s4686_s29  ;;  %v3929_v38 = vpop.f32.mrf.mxu1 }
 0x471   :  { %v976_v14 = vsel %vm72_vm1, %v5115_v8, -inf }
 0x472   :  { %v960_v41 = vpop.f32.mrf.mxu1 }
 0x473   :  { %v5122_v11 = vadd.f32 %v960_v41, %v5045_v32 }
 0x474   :  { %v3930_v42 = vpop.f32.mrf.mxu1 }
 0x475   :  { %v979_v22 = vsel %vm72_vm1, %v5122_v11, -inf }
 0x476   :  { %v1172_v44 = vpop.f32.mrf.mxu1 }
 0x477   :  { %v5125_v6 = vadd.f32 %v1172_v44, %v5030_v17 }
 0x478   :  { %v3957_v46 = vpop.f32.mrf.mxu1 }
 0x479   :  { %v1195_v26 = vsel %vm72_vm1, %v5125_v6, -inf  ;;  %v5160_v46 = vpop.permute.xlu1 %806 }
 0x47a   :  { %v1175_v47 = vpop.f32.mrf.mxu1 }
 0x47b   :  { %v5132_v16 = vadd.f32 %v1175_v47, %v5030_v17  ;;  %v5162_v47 = vpop.permute.xlu0 %804 }
 0x47c   :  { %v3958_v50 = vpop.f32.mrf.mxu1 }
 0x47d   :  { %v1198_v33 = vsel %vm72_vm1, %v5132_v16, -inf }
 0x47e   :  { %v1180_v51 = vpop.f32.mrf.mxu1 }
 0x47f   :  { %v5135_v18 = vadd.f32 %v1180_v51, %v5030_v17 }
 0x480   :  { %v3961_v52 = vpop.f32.mrf.mxu1 }
 0x481   :  { %v1201_v34 = vsel %vm72_vm1, %v5135_v18, -inf }
 0x482   :  { %v1183_v53 = vpop.f32.mrf.mxu1 }
 0x483   :  { %v5142_v27 = vadd.f32 %v1183_v53, %v5045_v32 }
 0x484   :  { %v3962_v55 = vpop.f32.mrf.mxu1 }
 0x485   :  { %v1204_v41 = vsel %vm72_vm1, %v5142_v27, -inf }
 0x486   :  { %v1188_v56 = vpop.f32.mrf.mxu1 }
 0x487   :  { %v5145_v19 = vadd.f32 %v1188_v56, %v5045_v32 }
 0x488   :  { %v3965_v58 = vpop.f32.mrf.mxu1 }
 0x489   :  { %v1207_v42 = vsel %vm72_vm1, %v5145_v19, -inf }
 0x48a   :  { %v1191_v62 = vpop.f32.mrf.mxu1 }
 0x48b   :  { %v5152_v38 = vadd.f32 %v1191_v62, %v5045_v32 }
 0x48c   :  { %v3966_v63 = vpop.f32.mrf.mxu1 }
 0x48d   :  { %v1210_v44 = vsel %vm72_vm1, %v5152_v38, -inf }
 0x48f   :  { %749 = vmax.xlane.f32.xlu0 %v748_v4  ;;  %965 = vmax.xlane.f32.xlu1 %v964_v59 }
 0x493   :  { %968 = vmax.xlane.f32.xlu0 %v967_v0  ;;  %971 = vmax.xlane.f32.xlu1 %v970_v10 }
 0x497   :  { %974 = vmax.xlane.f32.xlu0 %v973_v13  ;;  %977 = vmax.xlane.f32.xlu1 %v976_v14 }
 0x49b   :  { %980 = vmax.xlane.f32.xlu0 %v979_v22  ;;  %1196 = vmax.xlane.f32.xlu1 %v1195_v26 }
 0x49f   :  { %1199 = vmax.xlane.f32.xlu0 %v1198_v33  ;;  %1202 = vmax.xlane.f32.xlu1 %v1201_v34 }
 0x4a3   :  { %1205 = vmax.xlane.f32.xlu0 %v1204_v41  ;;  %1208 = vmax.xlane.f32.xlu1 %v1207_v42 }
 0x4a7   :  { %1211 = vmax.xlane.f32.xlu0 %v1210_v44 }
 0x4bb   :  { %v504_v50 = vpop.xlane.xlu1 %503 }
 0x4bc   :  { %v520_v51 = vsub.f32 %v5033_v21, %v504_v50 }
 0x4be   :  { %v526_v52 = vmul.f32 1.442695, %v520_v51 }
 0x4bf   :  { %v507_v53 = vpop.xlane.xlu0 %506 }
 0x4c0   :  { %4396 = vpow2.f32 %v526_v52  ;;  %v521_v55 = vsub.f32 %v5038_v28, %v507_v53 }
 0x4c2   :  { %v528_v56 = vmul.f32 1.442695, %v521_v55 }
 0x4c3   :  { %v510_v58 = vpop.xlane.xlu0 %509 }
 0x4c4   :  { %4398 = vpow2.f32 %v528_v56  ;;  %v522_v62 = vsub.f32 %v5043_v36, %v510_v58 }
 0x4c6   :  { %v530_v63 = vmul.f32 1.442695, %v522_v62 }
 0x4c7   :  { %v513_v4 = vpop.xlane.xlu0 %512 }
 0x4c8   :  { %4400 = vpow2.f32 %v530_v63  ;;  %v523_v59 = vsub.f32 %v5050_v43, %v513_v4 }
 0x4ca   :  { %v532_v0 = vmul.f32 1.442695, %v523_v59 }
 0x4cb   :  { %v516_v10 = vpop.xlane.xlu1 %515 }
 0x4cc   :  { %4402 = vpow2.f32 %v532_v0  ;;  %v524_v21 = vsub.f32 %v5055_v48, %v516_v10 }
 0x4cd   :  { %v5169_v13 = vpop.eup %4396 }
 0x4ce   :  { %v534_v14 = vmul.f32 1.442695, %v524_v21  ;;  %v538_v28 = vsel %vm72_vm1, %v5169_v13, 0.0 }
 0x4cf   :  { %v519_v22 = vpop.xlane.xlu0 %518  ;;  %539 = vadd.xlane.f32.xlu1 %v538_v28 }
 0x4d0   :  { %4404 = vpow2.f32 %v534_v14  ;;  %v525_v36 = vsub.f32 %v5060_v45, %v519_v22 }
 0x4d1   :  { %v5174_v26 = vpop.eup %4398 }
 0x4d2   :  { %v536_v33 = vmul.f32 1.442695, %v525_v36  ;;  %v541_v43 = vsel %vm72_vm1, %v5174_v26, 0.0 }
 0x4d3   :  { %542 = vadd.xlane.f32.xlu0 %v541_v43  ;;  %v735_v34 = vpop.xlane.xlu1 %734 }
 0x4d4   :  { %4406 = vpow2.f32 %v536_v33  ;;  %v751_v48 = vsub.f32 %v5065_v57, %v735_v34 }
 0x4d5   :  { %v5179_v41 = vpop.eup %4400 }
 0x4d6   :  { %v757_v42 = vmul.f32 1.442695, %v751_v48  ;;  %v544_v44 = vsel %vm72_vm1, %v5179_v41, 0.0 }
 0x4d7   :  { %545 = vadd.xlane.f32.xlu1 %v544_v44  ;;  %v738_v58 = vpop.xlane.xlu0 %737 }
 0x4d8   :  { %4408 = vpow2.f32 %v757_v42  ;;  %v752_v62 = vsub.f32 %v5070_v61, %v738_v58 }
 0x4d9   :  { %v5183_v45 = vpop.eup %4402 }
 0x4da   :  { %v547_v50 = vsel %vm72_vm1, %v5183_v45, 0.0  ;;  %v759_v4 = vmul.f32 1.442695, %v752_v62 }
 0x4db   :  { %548 = vadd.xlane.f32.xlu0 %v547_v50  ;;  %v741_v63 = vpop.xlane.xlu1 %740 }
 0x4dc   :  { %v753_v59 = vsub.f32 %v5075_v3, %v741_v63  ;;  %4410 = vpow2.f32 %v759_v4 }
 0x4dd   :  { %v5187_v51 = vpop.eup %4404 }
 0x4de   :  { %v550_v52 = vsel %vm72_vm1, %v5187_v51, 0.0  ;;  %v761_v10 = vmul.f32 1.442695, %v753_v59 }
 0x4df   :  { %551 = vadd.xlane.f32.xlu1 %v550_v52  ;;  %v744_v0 = vpop.xlane.xlu0 %743 }
 0x4e0   :  { %v754_v21 = vsub.f32 %v5080_v5, %v744_v0  ;;  %4412 = vpow2.f32 %v761_v10 }
 0x4e1   :  { %v5191_v57 = vpop.eup %4406 }
 0x4e2   :  { %v553_v53 = vsel %vm72_vm1, %v5191_v57, 0.0  ;;  %v763_v28 = vmul.f32 1.442695, %v754_v21 }
 0x4e3   :  { %554 = vadd.xlane.f32.xlu0 %v553_v53  ;;  %v747_v14 = vpop.xlane.xlu1 %746  ;;  %v5207_v36 = vpop.permute.xlu0 %1037 }
 0x4e4   :  { %v755_v22 = vsub.f32 %v5085_v9, %v747_v14  ;;  %4414 = vpow2.f32 %v763_v28 }
 0x4e5   :  { %v5195_v55 = vpop.eup %4408 }
 0x4e6   :  { %v769_v56 = vsel %vm72_vm1, %v5195_v55, 0.0 }
 0x4e7   :  { %770 = vadd.xlane.f32.xlu1 %v769_v56  ;;  %v5211_v33 = vpop.permute.xlu0 %1035  ;;  %v5213_v3 = vpop.permute.xlu1 %802 }
 0x4e9   :  { %v5209_v61 = vpop.eup %4410 }
 0x4ea   :  { %v772_v43 = vsel %vm72_vm1, %v5209_v61, 0.0 }
 0x4ed   :  { %v5217_v5 = vpop.eup %4412 }
 0x4ee   :  { %v775_v52 = vsel %vm72_vm1, %v5217_v5, 0.0 }
 0x4f1   :  { %v5223_v53 = vpop.eup %4414 }
 0x4f8   :  { %1033 = vrot.lane.b32.xlu1 %v4909_v31, %s4686_s29 }
 0x4f9   :  { %1268 = vrot.lane.b32.xlu0 %v4913_v37, %s4687_s0  ;;  %v765_v37 = vmul.f32 1.442695, %v755_v22 }
 0x4fb   :  { %4416 = vpow2.f32 %v765_v37 }
 0x508   :  { %v5229_v59 = vpop.eup %4416 }
 0x518   :  { %v750_v34 = vpop.xlane.xlu0 %749  ;;  %773 = vadd.xlane.f32.xlu0 %v772_v43  ;;  %v966_v48 = vpop.xlane.xlu1 %965 }
 0x519   :  { %v756_v9 = vsub.f32 %v5096_v49, %v750_v34  ;;  %v982_v42 = vsub.f32 %v5099_v60, %v966_v48  ;;  %v778_v60 = vsel %vm72_vm1, %v5223_v53, 0.0 }
 0x51b   :  { %v767_v44 = vmul.f32 1.442695, %v756_v9  ;;  %v988_v50 = vmul.f32 1.442695, %v982_v42 }
 0x51c   :  { %v969_v56 = vpop.xlane.xlu0 %968  ;;  %776 = vadd.xlane.f32.xlu0 %v775_v52  ;;  %v972_v58 = vpop.xlane.xlu1 %971 }
 0x51d   :  { %4418 = vpow2.f32 %v767_v44  ;;  %v983_v62 = vsub.f32 %v5102_v2, %v969_v56  ;;  %v984_v63 = vsub.f32 %v5105_v54, %v972_v58  ;;  %v781_v54 = vsel %vm72_vm1, %v5229_v59, 0.0 }
 0x51e   :  { %4420 = vpow2.f32 %v988_v50 }
 0x51f   :  { %v990_v4 = vmul.f32 1.442695, %v983_v62  ;;  %v992_v49 = vmul.f32 1.442695, %v984_v63 }
 0x520   :  { %v975_v0 = vpop.xlane.xlu0 %974  ;;  %779 = vadd.xlane.f32.xlu0 %v778_v60  ;;  %v978_v10 = vpop.xlane.xlu1 %977 }
 0x521   :  { %4422 = vpow2.f32 %v990_v4  ;;  %v985_v21 = vsub.f32 %v5112_v7, %v975_v0  ;;  %v986_v14 = vsub.f32 %v5115_v8, %v978_v10 }
 0x522   :  { %4424 = vpow2.f32 %v992_v49 }
 0x523   :  { %v994_v2 = vmul.f32 1.442695, %v985_v21  ;;  %v996_v28 = vmul.f32 1.442695, %v986_v14 }
 0x524   :  { %v981_v22 = vpop.xlane.xlu0 %980  ;;  %782 = vadd.xlane.f32.xlu0 %v781_v54  ;;  %v1197_v37 = vpop.xlane.xlu1 %1196 }
 0x525   :  { %4426 = vpow2.f32 %v994_v2  ;;  %v987_v43 = vsub.f32 %v5122_v11, %v981_v22  ;;  %v1213_v34 = vsub.f32 %v5125_v6, %v1197_v37 }
 0x526   :  { %4428 = vpow2.f32 %v996_v28 }
 0x527   :  { %v998_v48 = vmul.f32 1.442695, %v987_v43  ;;  %v1219_v9 = vmul.f32 1.442695, %v1213_v34 }
 0x528   :  { %v1200_v7 = vpop.xlane.xlu0 %1199  ;;  %v1203_v42 = vpop.xlane.xlu1 %1202 }
 0x529   :  { %v1214_v8 = vsub.f32 %v5132_v16, %v1200_v7  ;;  %v1215_v44 = vsub.f32 %v5135_v18, %v1203_v42  ;;  %4430 = vpow2.f32 %v1219_v9 }
 0x52a   :  { %v5239_v50 = vpop.eup %4418  ;;  %4432 = vpow2.f32 %v998_v48 }
 0x52b   :  { %v5241_v52 = vpop.eup %4420  ;;  %v1221_v56 = vmul.f32 1.442695, %v1214_v8  ;;  %v1223_v58 = vmul.f32 1.442695, %v1215_v44  ;;  %v784_v11 = vsel %vm72_vm1, %v5239_v50, 0.0 }
 0x52c   :  { %v1206_v6 = vpop.xlane.xlu0 %1205  ;;  %785 = vadd.xlane.f32.xlu0 %v784_v11  ;;  %v1000_v62 = vsel %vm72_vm1, %v5241_v52, 0.0  ;;  %v1209_v63 = vpop.xlane.xlu1 %1208 }
 0x52d   :  { %v1216_v16 = vsub.f32 %v5142_v27, %v1206_v6  ;;  %1001 = vadd.xlane.f32.xlu1 %v1000_v62  ;;  %4434 = vpow2.f32 %v1223_v58  ;;  %v1217_v4 = vsub.f32 %v5145_v19, %v1209_v63 }
 0x52e   :  { %v5248_v18 = vpop.eup %4422  ;;  %4436 = vpow2.f32 %v1221_v56 }
 0x52f   :  { %v1225_v49 = vmul.f32 1.442695, %v1216_v16  ;;  %v1003_v60 = vsel %vm72_vm1, %v5248_v18, 0.0  ;;  %v5253_v0 = vpop.eup %4424  ;;  %v1227_v14 = vmul.f32 1.442695, %v1217_v4 }
 0x530   :  { %v1212_v10 = vpop.xlane.xlu0 %1211  ;;  %1004 = vadd.xlane.f32.xlu0 %v1003_v60  ;;  %v1006_v19 = vsel %vm72_vm1, %v5253_v0, 0.0 }
 0x531   :  { %4438 = vpow2.f32 %v1225_v49  ;;  %v1218_v27 = vsub.f32 %v5152_v38, %v1212_v10 }
 0x532   :  { %v5255_v21 = vpop.eup %4426  ;;  %4440 = vpow2.f32 %v1227_v14 }
 0x533   :  { %v1009_v2 = vsel %vm72_vm1, %v5255_v21, 0.0  ;;  %v5262_v28 = vpop.eup %4428  ;;  %v1229_v22 = vmul.f32 1.442695, %v1218_v27 }
 0x534   :  { %1010 = vadd.xlane.f32.xlu1 %v1009_v2  ;;  %1007 = vadd.xlane.f32.xlu0 %v1006_v19  ;;  %v1012_v37 = vsel %vm72_vm1, %v5262_v28, 0.0 }
 0x535   :  { %4442 = vpow2.f32 %v1229_v22 }
 0x536   :  { %v5264_v54 = vpop.eup %4430 }
 0x537   :  { %v5268_v43 = vpop.eup %4432  ;;  %v1231_v38 = vsel %vm72_vm1, %v5264_v54, 0.0 }
 0x538   :  { %1013 = vadd.xlane.f32.xlu0 %v1012_v37  ;;  %1232 = vadd.xlane.f32.xlu1 %v1231_v38  ;;  %v1015_v48 = vsel %vm72_vm1, %v5268_v43, 0.0 }
 0x53a   :  { %v5272_v34 = vpop.eup %4434 }
 0x53b   :  { %v5276_v9 = vpop.eup %4436  ;;  %v1237_v7 = vsel %vm72_vm1, %v5272_v34, 0.0 }
 0x53c   :  { %1016 = vadd.xlane.f32.xlu0 %v1015_v48  ;;  %1238 = vadd.xlane.f32.xlu1 %v1237_v7  ;;  %v1234_v42 = vsel %vm72_vm1, %v5276_v9, 0.0 }
 0x53e   :  { %v5282_v8 = vpop.eup %4438 }
 0x53f   :  { %v1240_v44 = vsel %vm72_vm1, %v5282_v8, 0.0  ;;  %v5286_v56 = vpop.eup %4440 }
 0x540   :  { %1235 = vadd.xlane.f32.xlu0 %v1234_v42  ;;  %v1243_v58 = vsel %vm72_vm1, %v5286_v56, 0.0 }
 0x542   :  { %v5290_v11 = vpop.eup %4442 }
 0x543   :  { %v1246_v6 = vsel %vm72_vm1, %v5290_v11, 0.0 }
 0x544   :  { %1241 = vadd.xlane.f32.xlu0 %v1240_v44 }
 0x548   :  { %1244 = vadd.xlane.f32.xlu0 %v1243_v58 }
 0x54c   :  { %1247 = vadd.xlane.f32.xlu0 %v1246_v6 }
 0x54d   :  { %1266 = vrot.lane.b32.xlu1 %v4905_v23, %s4687_s0 }
 0x558   :  { %v540_v62 = vpop.xlane.xlu1 %539 }
 0x559   :  { %4444 = vrcp.f32 %v540_v62 }
 0x55c   :  { %v543_v63 = vpop.xlane.xlu0 %542 }
 0x55d   :  { %4446 = vrcp.f32 %v543_v63 }
 0x560   :  { %v546_v16 = vpop.xlane.xlu1 %545 }
 0x561   :  { %4448 = vrcp.f32 %v546_v16 }
 0x562   :  { %1264 = vrot.lane.b32.xlu0 %v4909_v31, %s4687_s0 }
 0x564   :  { %v549_v4 = vpop.xlane.xlu0 %548 }
 0x565   :  { %4450 = vrcp.f32 %v549_v4 }
 0x566   :  { %v4445_v49 = vpop.eup %4444 }
 0x567   :  { %v562_v14 = vmul.f32 %v4445_v49, %v5169_v13 }
 0x568   :  { %v552_v60 = vpop.xlane.xlu1 %551 }
 0x569   :  { %4452 = vrcp.f32 %v552_v60 }
 0x56a   :  { %v4447_v10 = vpop.eup %4446 }
 0x56b   :  { %v563_v27 = vmul.f32 %v4447_v10, %v5174_v26 }
 0x56c   :  { %v555_v23 = vpop.xlane.xlu0 %554 }
 0x56d   :  { %4454 = vrcp.f32 %v555_v23  ;;  %v568_v2 = vpack.c.bf16 %v563_v27, %v562_v14 }
 0x56e   :  { %v4449_v19 = vpop.eup %4448 }
 0x56f   :  { %3866 = vmatmul.mubr.msk.bf16.vlgmr.msra.gmra.mxu0 %vm72_vm1, %v568_v2  ;;  %v564_v22 = vmul.f32 %v4449_v19, %v5179_v41 }
 0x570   :  { %3896 = vmatpush3.bf16.msra.mxu0 %v5160_v46  ;;  %3869 = vmatprep.mubr.msk.bf16.mxu0 %vm4675_vm0, %v4674_v1  ;;  %v771_v48 = vpop.xlane.xlu1 %770 }
 0x571   :  { %3897 = vmatprep.subr.bf16.mxu0 %v4674_v1  ;;  %4456 = vrcp.f32 %v771_v48 }
 0x572   :  { %v4451_v31 = vpop.eup %4450 }
 0x573   :  { %v565_v13 = vmul.f32 %v4451_v31, %v5183_v45 }
 0x574   :  { %3898 = vmatpush3.bf16.msra.mxu0 %v5162_v47  ;;  %v5319_v47 = vpop.permute.xlu0 %1268  ;;  %v1034_v16 = vpop.permute.xlu1 %1033 }
 0x575   :  { %3899 = vmatprep.subr.bf16.mxu0 %v4674_v1  ;;  %v569_v26 = vpack.c.bf16 %v565_v13, %v564_v22 }
 0x576   :  { %v4453_v37 = vpop.eup %4452 }
 0x577   :  { %3870 = vmatmul.mubr.msk.bf16.gmra.mxu0 %vm72_vm1, %v569_v26  ;;  %v566_v41 = vmul.f32 %v4453_v37, %v5187_v51 }
 0x578   :  { %3900 = vmatpush3.bf16.msra.mxu0 %v5213_v3  ;;  %3873 = vmatprep.mubr.msk.bf16.mxu0 %vm4675_vm0, %v4674_v1 }
 0x579   :  { %3931 = vmatprep.subr.bf16.mxu0 %v4674_v1 }
 0x57a   :  { %v4455_v46 = vpop.eup %4454 }
 0x57b   :  { %v567_v45 = vmul.f32 %v4455_v46, %v5191_v57 }
 0x57d   :  { %v570_v38 = vpack.c.bf16 %v567_v45, %v566_v41 }
 0x57e   :  { %v4457_v44 = vpop.eup %4456 }
 0x57f   :  { %3874 = vmatmul.mubr.msk.bf16.gmra.mxu0 %vm72_vm1, %v570_v38  ;;  %v793_v57 = vmul.f32 %v4457_v44, %v5195_v55 }
 0x580   :  { %3901 = vmatprep.mubr.msk.bf16.mxu0 %vm4675_vm0, %v4674_v1 }
 0x5a1   :  { %v774_v3 = vpop.xlane.xlu0 %773 }
 0x5a2   :  { %4458 = vrcp.f32 %v774_v3 }
 0x5a5   :  { %v777_v7 = vpop.xlane.xlu0 %776 }
 0x5a6   :  { %4460 = vrcp.f32 %v777_v7 }
 0x5a9   :  { %v780_v42 = vpop.xlane.xlu0 %779 }
 0x5aa   :  { %4462 = vrcp.f32 %v780_v42 }
 0x5ad   :  { %v783_v6 = vpop.xlane.xlu0 %782 }
 0x5ae   :  { %4464 = vrcp.f32 %v783_v6 }
 0x5af   :  { %v4459_v51 = vpop.eup %4458 }
 0x5b0   :  { %v794_v58 = vmul.f32 %v4459_v51, %v5209_v61 }
 0x5b2   :  { %v799_v62 = vpack.c.bf16 %v794_v58, %v793_v57 }
 0x5b3   :  { %v4461_v63 = vpop.eup %4460 }
 0x5b4   :  { %3902 = vmatmul.mubr.msk.bf16.vlgmr.msra.gmra.mxu0 %vm72_vm1, %v799_v62  ;;  %v795_v55 = vmul.f32 %v4461_v63, %v5217_v5 }
 0x5b5   :  { %3932 = vmatpush3.bf16.msra.mxu0 %v5207_v36  ;;  %v786_v4 = vpop.xlane.xlu0 %785  ;;  %3905 = vmatprep.mubr.msk.bf16.mxu0 %vm4675_vm0, %v4674_v1 }
 0x5b6   :  { %4466 = vrcp.f32 %v786_v4  ;;  %3933 = vmatprep.subr.bf16.mxu0 %v4674_v1  ;;  %v1002_v60 = vpop.xlane.xlu1 %1001 }
 0x5b7   :  { %v4463_v49 = vpop.eup %4462 }
 0x5b8   :  { %v796_v61 = vmul.f32 %v4463_v49, %v5223_v53 }
 0x5b9   :  { %3934 = vmatpush3.bf16.msra.mxu0 %v5211_v33  ;;  %v1005_v10 = vpop.xlane.xlu0 %1004 }
 0x5ba   :  { %4468 = vrcp.f32 %v1005_v10  ;;  %3935 = vmatprep.subr.bf16.mxu0 %v4674_v1  ;;  %v800_v36 = vpack.c.bf16 %v796_v61, %v795_v55 }
 0x5bb   :  { %4470 = vrcp.f32 %v1002_v60  ;;  %v4465_v53 = vpop.eup %4464 }
 0x5bc   :  { %3906 = vmatmul.mubr.msk.bf16.gmra.mxu0 %vm72_vm1, %v800_v36  ;;  %v797_v23 = vmul.f32 %v4465_v53, %v5229_v59 }
 0x5bd   :  { %3936 = vmatpush3.bf16.msra.mxu0 %v1034_v16  ;;  %v1008_v14 = vpop.xlane.xlu0 %1007  ;;  %3909 = vmatprep.mubr.msk.bf16.mxu0 %vm4675_vm0, %v4674_v1  ;;  %v1011_v5 = vpop.xlane.xlu1 %1010 }
 0x5be   :  { %3967 = vmatprep.subr.bf16.mxu0 %v4674_v1  ;;  %4472 = vrcp.f32 %v1008_v14 }
 0x5bf   :  { %4474 = vrcp.f32 %v1011_v5 }
 0x5c1   :  { %v1014_v27 = vpop.xlane.xlu0 %1013  ;;  %v1233_v13 = vpop.xlane.xlu1 %1232 }
 0x5c3   :  { %v4467_v33 = vpop.eup %4466 }
 0x5c4   :  { %v798_v2 = vmul.f32 %v4467_v33, %v5239_v50 }
 0x5c5   :  { %v1017_v19 = vpop.xlane.xlu0 %1016  ;;  %v1239_v50 = vpop.xlane.xlu1 %1238 }
 0x5c6   :  { %v801_v31 = vpack.c.bf16 %v798_v2, %v797_v23  ;;  %4476 = vrcp.f32 %v1017_v19 }
 0x5c7   :  { %v4469_v22 = vpop.eup %4468  ;;  %4478 = vrcp.f32 %v1014_v27 }
 0x5c8   :  { %3910 = vmatmul.mubr.msk.bf16.gmra.mxu0 %vm72_vm1, %v801_v31  ;;  %v4471_v26 = vpop.eup %4470  ;;  %v1025_v46 = vmul.f32 %v4469_v22, %v5248_v18 }
 0x5c9   :  { %v1236_v37 = vpop.xlane.xlu0 %1235  ;;  %3937 = vmatprep.mubr.msk.bf16.mxu0 %vm4675_vm0, %v4674_v1  ;;  %v1024_v41 = vmul.f32 %v4471_v26, %v5241_v52  ;;  %v1267_v7 = vpop.permute.xlu1 %1266 }
 0x5ca   :  { %4480 = vrcp.f32 %v1236_v37 }
 0x5cb   :  { %v4473_v45 = vpop.eup %4472  ;;  %v1030_v38 = vpack.c.bf16 %v1025_v46, %v1024_v41  ;;  %4482 = vrcp.f32 %v1233_v13 }
 0x5cc   :  { %v4475_v48 = vpop.eup %4474  ;;  %v1026_v18 = vmul.f32 %v4473_v45, %v5253_v0 }
 0x5cd   :  { %v1242_v59 = vpop.xlane.xlu0 %1241  ;;  %v1027_v52 = vmul.f32 %v4475_v48, %v5255_v21 }
 0x5ce   :  { %4484 = vrcp.f32 %v1242_v59 }
 0x5cf   :  { %v1031_v44 = vpack.c.bf16 %v1027_v52, %v1026_v18  ;;  %4486 = vrcp.f32 %v1239_v50  ;;  %v4366_v52 = vld [vmem:[%s6366_s4 + $0x8] sm:$0xff]  }
 0x5d0   :  { %3938 = vmatmul.mubr.msk.bf16.vlgmr.msra.gmra.mxu0 %vm72_vm1, %v1030_v38  ;;  %4251 = vmatpush3.bf16.msra.mxu1 %v4366_v52 }
 0x5d1   :  { %3968 = vmatpush3.bf16.msra.mxu0 %v5319_v47  ;;  %v1245_v3 = vpop.xlane.xlu0 %1244  ;;  %3941 = vmatprep.mubr.msk.bf16.mxu0 %vm4675_vm0, %v4674_v1 }
 0x5d2   :  { %3969 = vmatprep.subr.bf16.mxu0 %v4674_v1  ;;  %4250 = vmatprep.subr.bf16.mxu1 %v4674_v1 }
 0x5d3   :  { %v4477_v51 = vpop.eup %4476 }
 0x5d4   :  { %v4479_v47 = vpop.eup %4478  ;;  %v1029_v0 = vmul.f32 %v4477_v51, %v5268_v43 }
 0x5d5   :  { %3970 = vmatpush3.bf16.msra.mxu0 %v1267_v7  ;;  %v1248_v42 = vpop.xlane.xlu0 %1247  ;;  %v1028_v21 = vmul.f32 %v4479_v47, %v5262_v28 }
 0x5d6   :  { %3971 = vmatprep.subr.bf16.mxu0 %v4674_v1  ;;  %4488 = vrcp.f32 %v1248_v42  ;;  %v4367_v42 = vld [vmem:[%s6366_s4] sm:$0xff]  }
 0x5d7   :  { %v1032_v58 = vpack.c.bf16 %v1029_v0, %v1028_v21  ;;  %v4481_v6 = vpop.eup %4480  ;;  %4490 = vrcp.f32 %v1245_v3  ;;  %4252 = vmatpush3.bf16.msra.mxu1 %v4367_v42 }
 0x5d8   :  { %3942 = vmatmul.mubr.msk.bf16.gmra.mxu0 %vm72_vm1, %v1031_v44  ;;  %v4483_v62 = vpop.eup %4482  ;;  %v1256_v63 = vmul.f32 %v4481_v6, %v5276_v9  ;;  %4017 = vmatprep.subr.bf16.mxu1 %v4674_v1 }
 0x5d9   :  { %v1265_v57 = vpop.permute.xlu0 %1264  ;;  %3945 = vmatprep.mubr.msk.bf16.mxu0 %vm4675_vm0, %v4674_v1  ;;  %v1255_v16 = vmul.f32 %v4483_v62, %v5264_v54 }
 0x5da   :  { %3972 = vmatpush3.bf16.msra.mxu0 %v1265_v57 }
 0x5db   :  { %3985 = vmatprep.subr.bf16.mxu0 %v4674_v1  ;;  %v1261_v43 = vpack.c.bf16 %v1256_v63, %v1255_v16  ;;  %v4485_v4 = vpop.eup %4484 }
 0x5dc   :  { %v4487_v49 = vpop.eup %4486  ;;  %v1258_v28 = vmul.f32 %v4485_v4, %v5282_v8 }
 0x5dd   :  { %v1257_v55 = vmul.f32 %v4487_v49, %v5272_v34 }
 0x5df   :  { %v1262_v61 = vpack.c.bf16 %v1258_v28, %v1257_v55 }
 0x5e0   :  { %3946 = vmatmul.mubr.msk.bf16.gmra.mxu0 %vm72_vm1, %v1032_v58 }
 0x5e1   :  { %3973 = vmatprep.mubr.msk.bf16.mxu0 %vm4675_vm0, %v4674_v1 }
 0x5e3   :  { %v4489_v60 = vpop.eup %4488 }
 0x5e4   :  { %v4491_v9 = vpop.eup %4490  ;;  %v1260_v54 = vmul.f32 %v4489_v60, %v5290_v11 }
 0x5e5   :  { %v1259_v10 = vmul.f32 %v4491_v9, %v5286_v56 }
 0x5e7   :  { %v1263_v36 = vpack.c.bf16 %v1260_v54, %v1259_v10 }
 0x5e8   :  { %3974 = vmatmul.mubr.msk.bf16.vlgmr.msra.gmra.mxu0 %vm72_vm1, %v1261_v43 }
 0x5e9   :  { %3977 = vmatprep.mubr.msk.bf16.mxu0 %vm4675_vm0, %v4674_v1  ;;  %3986 = vmatpush3.bf16.msra.mxu0 %v4366_v52 }
 0x5ea   :  { %3987 = vmatprep.subr.bf16.mxu0 %v4674_v1 }
 0x5ed   :  { %3988 = vmatpush3.bf16.msra.mxu0 %v4367_v42 }
 0x5ee   :  { %4001 = vmatprep.subr.bf16.mxu0 %v4674_v1 }
 0x5f0   :  { %3978 = vmatmul.mubr.msk.bf16.gmra.mxu0 %vm72_vm1, %v1262_v61 }
 0x5f1   :  { %3981 = vmatprep.mubr.msk.bf16.mxu0 %vm4675_vm0, %v4674_v1 }
 0x5f8   :  { %3982 = vmatmul.mubr.msk.bf16.gmra.mxu0 %vm72_vm1, %v1263_v36 }
 0x5f9   :  { %3989 = vmatprep.mubr.msk.bf16.mxu0 %vm4675_vm0, %v4674_v1 }
 0x62f   :  { %v5375_v8 = vpop.f32.mrf.mxu0 }
 0x631   :  { %v3867_v34 = vpop.f32.mrf.mxu0 }
 0x633   :  { %v5377_v14 = vpop.f32.mrf.mxu0 }
 0x635   :  { %v3868_v5 = vpop.f32.mrf.mxu0 }
 0x637   :  { %v5379_v53 = vpop.f32.mrf.mxu0 }
 0x639   :  { %v3871_v27 = vpop.f32.mrf.mxu0 }
 0x63b   :  { %v5381_v33 = vpop.f32.mrf.mxu0 }
 0x63d   :  { %v3872_v11 = vpop.f32.mrf.mxu0 }
 0x63f   :  { %v5383_v23 = vpop.f32.mrf.mxu0 }
 0x641   :  { %v3875_v56 = vpop.f32.mrf.mxu0 }
 0x643   :  { %v5385_v2 = vpop.f32.mrf.mxu0 }
 0x645   :  { %v3876_v19 = vpop.f32.mrf.mxu0 }
 0x674   :  { %v854_v31 = vpop.f32.mrf.mxu0 }
 0x676   :  { %v3903_v22 = vpop.f32.mrf.mxu0 }
 0x678   :  { %v857_v13 = vpop.f32.mrf.mxu0 }
 0x679   :  { %v4271_v26 = vpack.i.bf16 %v857_v13, %v854_v31 }
 0x67a   :  { %v3904_v37 = vpop.f32.mrf.mxu0 }
 0x67b   :  { %4272 = vrot.lane.b32.xlu0 %v4271_v26, %s4688_s30 }
 0x67c   :  { %v862_v46 = vpop.f32.mrf.mxu0 }
 0x67e   :  { %v3907_v41 = vpop.f32.mrf.mxu0 }
 0x680   :  { %v865_v59 = vpop.f32.mrf.mxu0 }
 0x681   :  { %v4286_v0 = vpack.i.bf16 %v865_v59, %v862_v46 }
 0x682   :  { %v3908_v45 = vpop.f32.mrf.mxu0 }
 0x688   :  { %v870_v50 = vpop.f32.mrf.mxu0 }
 0x68a   :  { %v3911_v38 = vpop.f32.mrf.mxu0 }
 0x68c   :  { %v873_v48 = vpop.f32.mrf.mxu0 }
 0x68d   :  { %v4301_v36 = vpack.i.bf16 %v873_v48, %v870_v50 }
 0x68e   :  { %v3912_v3 = vpop.f32.mrf.mxu0 }
 0x690   :  { %v1085_v18 = vpop.f32.mrf.mxu0 }
 0x692   :  { %v3939_v7 = vpop.f32.mrf.mxu0 }
 0x694   :  { %v1088_v44 = vpop.f32.mrf.mxu0 }
 0x695   :  { %v4276_v51 = vpack.i.bf16 %v1088_v44, %v1085_v18 }
 0x696   :  { %v3940_v47 = vpop.f32.mrf.mxu0 }
 0x697   :  { %4277 = vrot.lane.b32.xlu0 %v4276_v51, %s4689_s14 }
 0x698   :  { %v1093_v57 = vpop.f32.mrf.mxu0 }
 0x69a   :  { %v3943_v21 = vpop.f32.mrf.mxu0 }
 0x69b   :  { %4287 = vrot.lane.b32.xlu0 %v4286_v0, %s4688_s30 }
 0x69c   :  { %v1096_v58 = vpop.f32.mrf.mxu0 }
 0x69d   :  { %v4291_v9 = vpack.i.bf16 %v1096_v58, %v1093_v57 }
 0x69e   :  { %v3944_v6 = vpop.f32.mrf.mxu0 }
 0x6a0   :  { %v1101_v62 = vpop.f32.mrf.mxu0 }
 0x6a2   :  { %v3947_v63 = vpop.f32.mrf.mxu0 }
 0x6a4   :  { %v1104_v16 = vpop.f32.mrf.mxu0 }
 0x6a5   :  { %v4306_v11 = vpack.i.bf16 %v1104_v16, %v1101_v62 }
 0x6a6   :  { %v3948_v43 = vpop.f32.mrf.mxu0 }
 0x6a8   :  { %v1316_v4 = vpop.f32.mrf.mxu0 }
 0x6aa   :  { %v3975_v49 = vpop.f32.mrf.mxu0 }
 0x6ac   :  { %v1319_v28 = vpop.f32.mrf.mxu0 }
 0x6ad   :  { %v4281_v55 = vpack.i.bf16 %v1319_v28, %v1316_v4 }
 0x6ae   :  { %v3976_v61 = vpop.f32.mrf.mxu0 }
 0x6af   :  { %4282 = vrot.lane.b32.xlu1 %v4281_v55, %s4690_s15 }
 0x6b0   :  { %v1324_v60 = vpop.f32.mrf.mxu0 }
 0x6b2   :  { %v3979_v54 = vpop.f32.mrf.mxu0 }
 0x6b3   :  { %4292 = vrot.lane.b32.xlu1 %v4291_v9, %s4689_s14 }
 0x6b4   :  { %v1327_v10 = vpop.f32.mrf.mxu0 }
 0x6b5   :  { %v4296_v34 = vpack.i.bf16 %v1327_v10, %v1324_v60 }
 0x6b6   :  { %v3980_v5 = vpop.f32.mrf.mxu0 }
 0x6b7   :  { %4302 = vrot.lane.b32.xlu1 %v4301_v36, %s4688_s30  ;;  %4297 = vrot.lane.b32.xlu0 %v4296_v34, %s4690_s15 }
 0x6b8   :  { %v1332_v27 = vpop.f32.mrf.mxu0 }
 0x6ba   :  { %v3983_v56 = vpop.f32.mrf.mxu0 }
 0x6bb   :  { %4307 = vrot.lane.b32.xlu0 %v4306_v11, %s4689_s14 }
 0x6bc   :  { %v1335_v19 = vpop.f32.mrf.mxu0 }
 0x6bd   :  { %v4311_v31 = vpack.i.bf16 %v1335_v19, %v1332_v27 }
 0x6be   :  { %v3984_v22 = vpop.f32.mrf.mxu0 }
 0x6bf   :  { %4312 = vrot.lane.b32.xlu1 %v4311_v31, %s4690_s15 }
 0x6ed   :  { %v4273_v13 = vpop.permute.xlu0 %4272 }
 0x6ee   :  { %v4275_v37 = vunpack.i.h.bf16 %v4273_v13  ;;  %v4274_v46 = vunpack.i.l.bf16 %v4273_v13 }
 0x6f0   :  { %v1412_v50 = vsel %vm426_vm3, %v5377_v14, %v4275_v37  ;;  %v1411_v38 = vsel %vm426_vm3, %v5375_v8, %v4274_v46 }
 0x709   :  { %v4278_v26 = vpop.permute.xlu0 %4277 }
 0x70a   :  { %v4280_v41 = vunpack.i.h.bf16 %v4278_v26  ;;  %v4279_v59 = vunpack.i.l.bf16 %v4278_v26 }
 0x70c   :  { %v1419_v18 = vsel %vm1417_vm8, %v1412_v50, %v4280_v41  ;;  %v1418_v52 = vsel %vm1417_vm8, %v1411_v38, %v4279_v59 }
 0x70d   :  { %v4288_v7 = vpop.permute.xlu0 %4287 }
 0x70e   :  { %v4290_v57 = vunpack.i.h.bf16 %v4288_v7  ;;  %v4289_v0 = vunpack.i.l.bf16 %v4288_v7 }
 0x710   :  { %v1414_v58 = vsel %vm426_vm3, %v5381_v33, %v4290_v57  ;;  %v1413_v6 = vsel %vm426_vm3, %v5379_v53, %v4289_v0 }
 0x721   :  { %v4283_v45 = vpop.permute.xlu1 %4282 }
 0x722   :  { %v4285_v48 = vunpack.i.h.bf16 %v4283_v45  ;;  %v4284_v3 = vunpack.i.l.bf16 %v4283_v45 }
 0x724   :  { %v1426_v42 = vsel %vm1424_vm9, %v1419_v18, %v4285_v48  ;;  %v1425_v44 = vsel %vm1424_vm9, %v1418_v52, %v4284_v3 }
 0x725   :  { %v1431_v51 = vpack.c.bf16 %v1426_v42, %v1425_v44  ;;  %v4293_v47 = vpop.permute.xlu1 %4292 }
 0x726   :  { %v4295_v21 = vunpack.i.h.bf16 %v4293_v47  ;;  %v4294_v14 = vunpack.i.l.bf16 %v4293_v47 }
 0x727   :  { %3990 = vmatmul.mubr.msk.bf16.vlgmr.msra.gmra.mxu0 %vm225_vm2, %v1431_v51 }
 0x728   :  { %4005 = vmatprep.mubr.msk.bf16.mxu0 %vm4675_vm0, %v4674_v1  ;;  %v1421_v16 = vsel %vm1417_vm8, %v1414_v58, %v4295_v21  ;;  %v1420_v43 = vsel %vm1417_vm8, %v1413_v6, %v4294_v14 }
 0x729   :  { %v4298_v8 = vpop.permute.xlu0 %4297  ;;  %v4303_v4 = vpop.permute.xlu1 %4302 }
 0x72a   :  { %v4300_v62 = vunpack.i.h.bf16 %v4298_v8  ;;  %v4299_v63 = vunpack.i.l.bf16 %v4298_v8  ;;  %v4305_v60 = vunpack.i.h.bf16 %v4303_v4  ;;  %v4304_v9 = vunpack.i.l.bf16 %v4303_v4 }
 0x72c   :  { %v1428_v49 = vsel %vm1424_vm9, %v1421_v16, %v4300_v62  ;;  %v1427_v28 = vsel %vm1424_vm9, %v1420_v43, %v4299_v63  ;;  %v1416_v10 = vsel %vm426_vm3, %v5385_v2, %v4305_v60  ;;  %v1415_v36 = vsel %vm426_vm3, %v5383_v23, %v4304_v9  ;;  %v5443_v23 = vld [vmem:[%s6369_s7] sm:$0xff] }
 0x72d   :  { %v1432_v55 = vpack.c.bf16 %v1428_v49, %v1427_v28  ;;  %v4308_v61 = vpop.permute.xlu0 %4307  ;;  %v1440_v2 = vsub.s32 3, %v4874_v24 }
 0x72e   :  { %v4310_v54 = vunpack.i.h.bf16 %v4308_v61  ;;  %v4309_v33 = vunpack.i.l.bf16 %v4308_v61 }
 0x72f   :  { %3994 = vmatmul.mubr.msk.bf16.vlgmr.msra.gmra.mxu1 %vm225_vm2, %v1432_v55  ;;  %v1441_v22 = vrot.slane %v5443_v23, %v1440_v2 }
 0x730   :  { %3997 = vmatprep.mubr.msk.bf16.mxu1 %vm4675_vm0, %v4674_v1  ;;  %v1423_v27 = vsel %vm1417_vm8, %v1416_v10, %v4310_v54  ;;  %v1422_v11 = vsel %vm1417_vm8, %v1415_v36, %v4309_v33 }
 0x731   :  { %v4313_v53 = vpop.permute.xlu1 %4312 }
 0x732   :  { %v4315_v34 = vunpack.i.h.bf16 %v4313_v53  ;;  %v4314_v5 = vunpack.i.l.bf16 %v4313_v53 }
 0x734   :  { %v1430_v56 = vsel %vm1424_vm9, %v1423_v27, %v4315_v34  ;;  %v1429_v19 = vsel %vm1424_vm9, %v1422_v11, %v4314_v5 }
 0x735   :  { %v1433_v31 = vpack.c.bf16 %v1430_v56, %v1429_v19 }
 0x737   :  { %3998 = vmatmul.mubr.msk.bf16.gmra.mxu1 %vm225_vm2, %v1433_v31 }
 0x738   :  { %4025 = vmatprep.mubr.msk.bf16.mxu1 %vm4675_vm0, %v4674_v1 }
 0x7e7   :  { %v1497_v13 = vpop.f32.mrf.mxu0 }
 0x7e8   :  { %v1498_v26 = vadd.f32 %v1497_v13, %v1441_v22 }
 0x7e9   :  { %v3991_v37 = vpop.f32.mrf.mxu0 }
 0x7ea   :  { %v5449_v46 = vadd.f32 %v1498_v26, %v4790_v15 }
 0x7eb   :  { %v1500_v41 = vpop.f32.mrf.mxu0 }
 0x7ec   :  { %v1501_v59 = vadd.f32 %v1500_v41, %v1441_v22  ;;  %v1526_v45 = vsel %vm225_vm2, %v5449_v46, 0.0 }
 0x7ed   :  { %1527 = vadd.xlane.f32.xlu0 %v1526_v45  ;;  %v3992_v50 = vpop.f32.mrf.mxu0  ;;  %v4368_v45 = vld [vmem:[%s6367_s5 + $0x8] sm:$0xff]  }
 0x7ee   :  { %v5454_v38 = vadd.f32 %v1501_v59, %v4797_v20  ;;  %4002 = vmatpush3.bf16.msra.mxu0 %v4368_v45  ;;  %v4369_v50 = vld [vmem:[%s6367_s5] sm:$0xff]  }
 0x7ef   :  { %v1505_v48 = vpop.f32.mrf.mxu1  ;;  %4003 = vmatprep.subr.bf16.mxu0 %v4674_v1 }
 0x7f0   :  { %v1506_v3 = vadd.f32 %v1505_v48, %v1441_v22  ;;  %v1529_v18 = vsel %vm225_vm2, %v5454_v38, 0.0 }
 0x7f1   :  { %v3995_v52 = vpop.f32.mrf.mxu1  ;;  %1530 = vadd.xlane.f32.xlu1 %v1529_v18 }
 0x7f2   :  { %v5459_v15 = vadd.f32 %v1506_v3, %v4804_v25  ;;  %4004 = vmatpush3.bf16.msra.mxu0 %v4369_v50 }
 0x7f3   :  { %v1508_v7 = vpop.f32.mrf.mxu1  ;;  %4037 = vmatprep.subr.bf16.mxu0 %v4674_v1 }
 0x7f4   :  { %v1509_v42 = vadd.f32 %v1508_v7, %v1441_v22  ;;  %v1532_v44 = vsel %vm225_vm2, %v5459_v15, 0.0 }
 0x7f5   :  { %v3996_v51 = vpop.f32.mrf.mxu1  ;;  %1533 = vadd.xlane.f32.xlu0 %v1532_v44 }
 0x7f6   :  { %v5464_v20 = vadd.f32 %v1509_v42, %v4811_v30 }
 0x7f7   :  { %v1513_v47 = vpop.f32.mrf.mxu1 }
 0x7f8   :  { %v1514_v57 = vadd.f32 %v1513_v47, %v1441_v22  ;;  %v1535_v0 = vsel %vm225_vm2, %v5464_v20, 0.0 }
 0x7f9   :  { %v3999_v21 = vpop.f32.mrf.mxu1  ;;  %1536 = vadd.xlane.f32.xlu0 %v1535_v0 }
 0x7fa   :  { %v5469_v25 = vadd.f32 %v1514_v57, %v4818_v35 }
 0x7fb   :  { %v1516_v14 = vpop.f32.mrf.mxu1 }
 0x7fc   :  { %v1517_v8 = vadd.f32 %v1516_v14, %v1441_v22  ;;  %v1538_v58 = vsel %vm225_vm2, %v5469_v25, 0.0  ;;  %v1606_v14 = vsub.s32 4, %v4874_v24 }
 0x7fd   :  { %v4000_v6 = vpop.f32.mrf.mxu1  ;;  %1539 = vadd.xlane.f32.xlu1 %v1538_v58 }
 0x7fe   :  { %v5474_v30 = vadd.f32 %v1517_v8, %v4825_v40 }
 0x800   :  { %v1541_v62 = vsel %vm225_vm2, %v5474_v30, 0.0 }
 0x801   :  { %1542 = vadd.xlane.f32.xlu0 %v1541_v62 }
 0x876   :  { %v1528_v63 = vpop.xlane.xlu0 %1527 }
 0x877   :  { %v1544_v16 = vmul.f32 0.03125, %v1528_v63 }
 0x879   :  { %v1550_v43 = vsub.f32 %v5449_v46, %v1544_v16  ;;  %v1607_v16 = vrot.slane %v5443_v23, %v1606_v14 }
 0x87a   :  { %v1531_v35 = vpop.xlane.xlu1 %1530 }
 0x87b   :  { %v1545_v4 = vmul.f32 0.03125, %v1531_v35  ;;  %v1556_v49 = vmul.f32 %v1550_v43, %v1550_v43  ;;  %v1616_v35 = vsub.s32 5, %v4874_v24 }
 0x87d   :  { %v5480_v28 = vsub.f32 %v5454_v38, %v1545_v4  ;;  %v1562_v55 = vsel %vm225_vm2, %v1556_v49, 0.0 }
 0x87e   :  { %v1534_v61 = vpop.xlane.xlu0 %1533  ;;  %1563 = vadd.xlane.f32.xlu1 %v1562_v55 }
 0x87f   :  { %v1546_v40 = vmul.f32 0.03125, %v1534_v61  ;;  %v1557_v60 = vmul.f32 %v5480_v28, %v5480_v28 }
 0x881   :  { %v5486_v9 = vsub.f32 %v5459_v15, %v1546_v40  ;;  %v1565_v54 = vsel %vm225_vm2, %v1557_v60, 0.0 }
 0x882   :  { %v1537_v33 = vpop.xlane.xlu0 %1536  ;;  %1566 = vadd.xlane.f32.xlu0 %v1565_v54  ;;  %v1617_v54 = vrot.slane %v5443_v23, %v1616_v35 }
 0x883   :  { %v1547_v53 = vmul.f32 0.03125, %v1537_v33  ;;  %v1558_v10 = vmul.f32 %v5486_v9, %v5486_v9 }
 0x885   :  { %v5492_v36 = vsub.f32 %v5464_v20, %v1547_v53  ;;  %v1568_v34 = vsel %vm225_vm2, %v1558_v10, 0.0 }
 0x886   :  { %1569 = vadd.xlane.f32.xlu1 %v1568_v34  ;;  %v1540_v5 = vpop.xlane.xlu1 %1539 }
 0x887   :  { %v1548_v27 = vmul.f32 0.03125, %v1540_v5  ;;  %v1559_v11 = vmul.f32 %v5492_v36, %v5492_v36 }
 0x889   :  { %v5498_v56 = vsub.f32 %v5469_v25, %v1548_v27  ;;  %v1571_v19 = vsel %vm225_vm2, %v1559_v11, 0.0 }
 0x88a   :  { %v1543_v31 = vpop.xlane.xlu0 %1542  ;;  %1572 = vadd.xlane.f32.xlu0 %v1571_v19 }
 0x88b   :  { %v1549_v22 = vmul.f32 0.03125, %v1543_v31  ;;  %v1560_v13 = vmul.f32 %v5498_v56, %v5498_v56 }
 0x88d   :  { %v5504_v26 = vsub.f32 %v5474_v30, %v1549_v22  ;;  %v1574_v37 = vsel %vm225_vm2, %v1560_v13, 0.0 }
 0x88e   :  { %1575 = vadd.xlane.f32.xlu1 %v1574_v37 }
 0x88f   :  { %v1561_v41 = vmul.f32 %v5504_v26, %v5504_v26 }
 0x891   :  { %v1577_v59 = vsel %vm225_vm2, %v1561_v41, 0.0 }
 0x892   :  { %1578 = vadd.xlane.f32.xlu0 %v1577_v59 }
 0x907   :  { %v1564_v48 = vpop.xlane.xlu1 %1563 }
 0x908   :  { %v1580_v3 = vmul.f32 0.03125, %v1564_v48 }
 0x90a   :  { %v1586_v18 = vadd.f32 1e-06, %v1580_v3 }
 0x90b   :  { %v1567_v52 = vpop.xlane.xlu0 %1566 }
 0x90c   :  { %4492 = vrsqrt.f32 %v1586_v18  ;;  %v1581_v7 = vmul.f32 0.03125, %v1567_v52  ;;  %v4372_v18 = vld [vmem:[%s6368_s6 + $0x8] sm:$0xff]   ;;  %v4373_v52 = vld [vmem:[%s6368_s6] sm:$0xff]  }
 0x90e   :  { %v1587_v42 = vadd.f32 1e-06, %v1581_v7  ;;  %v1633_v7 = vsub.s32 6, %v4874_v24 }
 0x90f   :  { %v1570_v44 = vpop.xlane.xlu1 %1569 }
 0x910   :  { %4494 = vrsqrt.f32 %v1587_v42  ;;  %v1582_v51 = vmul.f32 0.03125, %v1570_v44  ;;  %v1634_v42 = vrot.slane %v5443_v23, %v1633_v7 }
 0x912   :  { %v1588_v47 = vadd.f32 1e-06, %v1582_v51 }
 0x913   :  { %v1573_v57 = vpop.xlane.xlu0 %1572 }
 0x914   :  { %4496 = vrsqrt.f32 %v1588_v47  ;;  %v1583_v0 = vmul.f32 0.03125, %v1573_v57 }
 0x916   :  { %v1589_v21 = vadd.f32 1e-06, %v1583_v0 }
 0x917   :  { %v1576_v8 = vpop.xlane.xlu1 %1575 }
 0x918   :  { %4498 = vrsqrt.f32 %v1589_v21  ;;  %v1584_v58 = vmul.f32 0.03125, %v1576_v8 }
 0x919   :  { %v4493_v6 = vpop.eup %4492 }
 0x91a   :  { %v1598_v62 = vmul.f32 %v4493_v6, %v1550_v43  ;;  %v1590_v63 = vadd.f32 1e-06, %v1584_v58 }
 0x91b   :  { %v1579_v4 = vpop.xlane.xlu0 %1578 }
 0x91c   :  { %4500 = vrsqrt.f32 %v1590_v63  ;;  %v1585_v49 = vmul.f32 0.03125, %v1579_v4  ;;  %v1608_v60 = vmul.f32 %v1607_v16, %v1598_v62 }
 0x91d   :  { %v4495_v55 = vpop.eup %4494 }
 0x91e   :  { %v1599_v61 = vmul.f32 %v4495_v55, %v5480_v28  ;;  %v1591_v40 = vadd.f32 1e-06, %v1585_v49  ;;  %v1618_v53 = vadd.f32 %v1617_v54, %v1608_v60 }
 0x920   :  { %4502 = vrsqrt.f32 %v1591_v40  ;;  %v1609_v43 = vmul.f32 %v1607_v16, %v1599_v61 }
 0x921   :  { %v4497_v33 = vpop.eup %4496 }
 0x922   :  { %v1619_v10 = vadd.f32 %v1617_v54, %v1609_v43  ;;  %v1600_v34 = vmul.f32 %v4497_v33, %v5486_v9 }
 0x924   :  { %v1624_v5 = vpack.c.bf16 %v1619_v10, %v1618_v53  ;;  %v1610_v28 = vmul.f32 %v1607_v16, %v1600_v34 }
 0x925   :  { %v4499_v27 = vpop.eup %4498 }
 0x926   :  { %4006 = vmatmul.mubr.msk.bf16.vlgmr.msra.gmra.mxu0 %vm225_vm2, %v1624_v5  ;;  %v1601_v11 = vmul.f32 %v4499_v27, %v5492_v36  ;;  %v1620_v22 = vadd.f32 %v1617_v54, %v1610_v28 }
 0x927   :  { %4009 = vmatprep.mubr.msk.bf16.mxu0 %vm4675_vm0, %v4674_v1 }
 0x928   :  { %v1611_v19 = vmul.f32 %v1607_v16, %v1601_v11 }
 0x929   :  { %v4501_v31 = vpop.eup %4500 }
 0x92a   :  { %v1621_v13 = vadd.f32 %v1617_v54, %v1611_v19  ;;  %v1602_v37 = vmul.f32 %v4501_v31, %v5498_v56  ;;  %v4370_v56 = vld [vmem:[%s6368_s6 + $0x18] sm:$0xff]  }
 0x92b   :  { %4018 = vmatpush3.bf16.msra.mxu1 %v4370_v56 }
 0x92c   :  { %v1625_v41 = vpack.c.bf16 %v1621_v13, %v1620_v22  ;;  %v1612_v45 = vmul.f32 %v1607_v16, %v1602_v37  ;;  %4019 = vmatprep.subr.bf16.mxu1 %v4674_v1 }
 0x92d   :  { %v4503_v59 = vpop.eup %4502 }
 0x92e   :  { %4010 = vmatmul.mubr.msk.bf16.gmra.mxu0 %vm225_vm2, %v1625_v41  ;;  %v1603_v9 = vmul.f32 %v4503_v59, %v5504_v26  ;;  %v1622_v50 = vadd.f32 %v1617_v54, %v1612_v45  ;;  %v4371_v26 = vld [vmem:[%s6368_s6 + $0x10] sm:$0xff]  }
 0x92f   :  { %4013 = vmatprep.mubr.msk.bf16.mxu0 %vm4675_vm0, %v4674_v1  ;;  %4020 = vmatpush3.bf16.msra.mxu1 %v4371_v26 }
 0x930   :  { %v1613_v36 = vmul.f32 %v1607_v16, %v1603_v9  ;;  %4021 = vmatprep.subr.bf16.mxu1 %v4674_v1 }
 0x932   :  { %v1623_v48 = vadd.f32 %v1617_v54, %v1613_v36 }
 0x933   :  { %4022 = vmatpush3.bf16.msra.mxu1 %v4372_v18 }
 0x934   :  { %v1626_v3 = vpack.c.bf16 %v1623_v48, %v1622_v50  ;;  %4023 = vmatprep.subr.bf16.mxu1 %v4674_v1 }
 0x936   :  { %4014 = vmatmul.mubr.msk.bf16.gmra.mxu0 %vm225_vm2, %v1626_v3 }
 0x937   :  { %4041 = vmatprep.mubr.msk.bf16.mxu0 %vm4675_vm0, %v4674_v1  ;;  %4024 = vmatpush3.bf16.msra.mxu1 %v4373_v52 }
 0x938   :  { %4053 = vmatprep.subr.bf16.mxu1 %v4674_v1 }
 0x9e6   :  { %v1690_v44 = vpop.f32.mrf.mxu0 }
 0x9e7   :  { %v1691_v51 = vadd.f32 %v1690_v44, %v1634_v42 }
 0x9e8   :  { %v4007_v47 = vpop.f32.mrf.mxu0 }
 0x9e9   :  { %v1719_v57 = vmul.f32 0.70710677, %v1691_v51  ;;  %v1713_v11 = vmul.f32 0.5, %v1691_v51 }
 0x9ea   :  { %v1693_v0 = vpop.f32.mrf.mxu0 }
 0x9eb   :  { %4504 = verf.f32 %v1719_v57  ;;  %v1694_v21 = vadd.f32 %v1693_v0, %v1634_v42 }
 0x9ec   :  { %v4008_v8 = vpop.f32.mrf.mxu0 }
 0x9ed   :  { %v1720_v58 = vmul.f32 0.70710677, %v1694_v21  ;;  %v1714_v28 = vmul.f32 0.5, %v1694_v21  ;;  %v1756_v21 = vsub.s32 7, %v4874_v24 }
 0x9ee   :  { %v1698_v6 = vpop.f32.mrf.mxu0 }
 0x9ef   :  { %4506 = verf.f32 %v1720_v58  ;;  %v1699_v62 = vadd.f32 %v1698_v6, %v1634_v42  ;;  %v1757_v8 = vrot.slane %v5443_v23, %v1756_v21 }
 0x9f0   :  { %v4011_v63 = vpop.f32.mrf.mxu0 }
 0x9f1   :  { %v1721_v16 = vmul.f32 0.70710677, %v1699_v62  ;;  %v1715_v45 = vmul.f32 0.5, %v1699_v62 }
 0x9f2   :  { %v1701_v4 = vpop.f32.mrf.mxu0 }
 0x9f3   :  { %4508 = verf.f32 %v1721_v16  ;;  %v1702_v49 = vadd.f32 %v1701_v4, %v1634_v42 }
 0x9f4   :  { %v4012_v55 = vpop.f32.mrf.mxu0 }
 0x9f5   :  { %v1722_v61 = vmul.f32 0.70710677, %v1702_v49  ;;  %v1716_v36 = vmul.f32 0.5, %v1702_v49 }
 0x9f6   :  { %v1706_v40 = vpop.f32.mrf.mxu0 }
 0x9f7   :  { %4510 = verf.f32 %v1722_v61  ;;  %v1707_v60 = vadd.f32 %v1706_v40, %v1634_v42 }
 0x9f8   :  { %v4505_v54 = vpop.eup %4504  ;;  %v4015_v43 = vpop.f32.mrf.mxu0 }
 0x9f9   :  { %v1723_v33 = vmul.f32 0.70710677, %v1707_v60  ;;  %v1731_v10 = vadd.f32 1.0, %v4505_v54 }
 0x9fa   :  { %v1709_v53 = vpop.f32.mrf.mxu0 }
 0x9fb   :  { %4512 = verf.f32 %v1723_v33  ;;  %v1710_v34 = vadd.f32 %v1709_v53, %v1634_v42  ;;  %v1737_v22 = vmul.f32 %v1731_v10, %v1713_v11  ;;  %v1717_v42 = vmul.f32 0.5, %v1707_v60 }
 0x9fc   :  { %v4507_v5 = vpop.eup %4506  ;;  %v4016_v27 = vpop.f32.mrf.mxu0 }
 0x9fd   :  { %v1732_v19 = vadd.f32 1.0, %v4507_v5  ;;  %v1724_v31 = vmul.f32 0.70710677, %v1710_v34  ;;  %v1718_v44 = vmul.f32 0.5, %v1710_v34 }
 0x9ff   :  { %v1738_v13 = vmul.f32 %v1732_v19, %v1714_v28  ;;  %4514 = verf.f32 %v1724_v31 }
 0xa00   :  { %v4509_v37 = vpop.eup %4508 }
 0xa01   :  { %v1743_v41 = vpack.c.bf16 %v1738_v13, %v1737_v22  ;;  %v1733_v59 = vadd.f32 1.0, %v4509_v37 }
 0xa03   :  { %4026 = vmatmul.mubr.msk.bf16.vlgmr.msra.gmra.mxu1 %vm1782_vm10, %v1743_v41  ;;  %v1739_v48 = vmul.f32 %v1733_v59, %v1715_v45 }
 0xa04   :  { %v4511_v9 = vpop.eup %4510  ;;  %4029 = vmatprep.mubr.msk.bf16.mxu1 %vm4675_vm0, %v4674_v1 }
 0xa05   :  { %v1734_v50 = vadd.f32 1.0, %v4511_v9 }
 0xa07   :  { %v1740_v3 = vmul.f32 %v1734_v50, %v1716_v36 }
 0xa08   :  { %v4513_v56 = vpop.eup %4512 }
 0xa09   :  { %v1744_v26 = vpack.c.bf16 %v1740_v3, %v1739_v48  ;;  %v1735_v18 = vadd.f32 1.0, %v4513_v56 }
 0xa0b   :  { %4030 = vmatmul.mubr.msk.bf16.gmra.mxu1 %vm1782_vm10, %v1744_v26  ;;  %v1741_v47 = vmul.f32 %v1735_v18, %v1717_v42 }
 0xa0c   :  { %v4515_v52 = vpop.eup %4514  ;;  %4033 = vmatprep.mubr.msk.bf16.mxu1 %vm4675_vm0, %v4674_v1 }
 0xa0d   :  { %v1736_v51 = vadd.f32 1.0, %v4515_v52 }
 0xa0f   :  { %v1742_v57 = vmul.f32 %v1736_v51, %v1718_v44 }
 0xa11   :  { %v1745_v0 = vpack.c.bf16 %v1742_v57, %v1741_v47 }
 0xa13   :  { %4034 = vmatmul.mubr.msk.bf16.gmra.mxu1 %vm1782_vm10, %v1745_v0 }
 0xa14   :  { %4059 = vmatprep.mubr.msk.bf16.mxu1 %vm4675_vm0, %v4674_v1 }
 0xac3   :  { %v1826_v58 = vpop.f32.mrf.mxu1 }
 0xac4   :  { %v1827_v6 = vadd.f32 %v1826_v58, %v1757_v8 }
 0xac5   :  { %v4027_v62 = vpop.f32.mrf.mxu1 }
 0xac6   :  { %v5574_v63 = vadd.f32 %v1827_v6, %v5449_v46 }
 0xac7   :  { %v1829_v16 = vpop.f32.mrf.mxu1 }
 0xac8   :  { %v1830_v4 = vadd.f32 %v1829_v16, %v1757_v8  ;;  %v1857_v49 = vsel %vm225_vm2, %v5574_v63, 0.0 }
 0xac9   :  { %1858 = vadd.xlane.f32.xlu1 %v1857_v49  ;;  %v4028_v55 = vpop.f32.mrf.mxu1 }
 0xaca   :  { %v5579_v61 = vadd.f32 %v1830_v4, %v5454_v38 }
 0xacb   :  { %v1834_v40 = vpop.f32.mrf.mxu1 }
 0xacc   :  { %v1835_v60 = vadd.f32 %v1834_v40, %v1757_v8  ;;  %v1860_v23 = vsel %vm225_vm2, %v5579_v61, 0.0 }
 0xacd   :  { %1861 = vadd.xlane.f32.xlu0 %v1860_v23  ;;  %v4031_v54 = vpop.f32.mrf.mxu1  ;;  %v4375_v23 = vld [vmem:[%s6365_s3 + $0x10] sm:$0xff]  }
 0xace   :  { %v5584_v46 = vadd.f32 %v1835_v60, %v5459_v15  ;;  %v4374_v60 = vld [vmem:[%s6365_s3 + $0x18] sm:$0xff]  }
 0xacf   :  { %v1837_v43 = vpop.f32.mrf.mxu1  ;;  %4038 = vmatpush3.bf16.msra.mxu0 %v4374_v60 }
 0xad0   :  { %v1838_v33 = vadd.f32 %v1837_v43, %v1757_v8  ;;  %v1863_v53 = vsel %vm225_vm2, %v5584_v46, 0.0  ;;  %4039 = vmatprep.subr.bf16.mxu0 %v4674_v1 }
 0xad1   :  { %1864 = vadd.xlane.f32.xlu1 %v1863_v53  ;;  %v4032_v10 = vpop.f32.mrf.mxu1 }
 0xad2   :  { %v5589_v38 = vadd.f32 %v1838_v33, %v5464_v20 }
 0xad3   :  { %v1842_v34 = vpop.f32.mrf.mxu1  ;;  %4040 = vmatpush3.bf16.msra.mxu0 %v4375_v23 }
 0xad4   :  { %v1843_v5 = vadd.f32 %v1842_v34, %v1757_v8  ;;  %v1866_v27 = vsel %vm225_vm2, %v5589_v38, 0.0  ;;  %4071 = vmatprep.subr.bf16.mxu0 %v4674_v1 }
 0xad5   :  { %1867 = vadd.xlane.f32.xlu0 %v1866_v27  ;;  %v4035_v11 = vpop.f32.mrf.mxu1 }
 0xad6   :  { %v5594_v15 = vadd.f32 %v1843_v5, %v5469_v25 }
 0xad7   :  { %v1845_v28 = vpop.f32.mrf.mxu1 }
 0xad8   :  { %v1846_v19 = vadd.f32 %v1845_v28, %v1757_v8  ;;  %v1869_v31 = vsel %vm225_vm2, %v5594_v15, 0.0 }
 0xad9   :  { %1870 = vadd.xlane.f32.xlu1 %v1869_v31  ;;  %v4036_v22 = vpop.f32.mrf.mxu1 }
 0xada   :  { %v5599_v20 = vadd.f32 %v1846_v19, %v5474_v30  ;;  %v3593_v22 = vld [vmem:[%s6369_s7 + $0x8] sm:$0xff] }
 0xadc   :  { %v1872_v13 = vsel %vm225_vm2, %v5599_v20, 0.0 }
 0xadd   :  { %1873 = vadd.xlane.f32.xlu0 %v1872_v13 }
 0xb52   :  { %v1859_v37 = vpop.xlane.xlu1 %1858 }
 0xb53   :  { %v1875_v41 = vmul.f32 0.03125, %v1859_v37 }
 0xb55   :  { %v1881_v59 = vsub.f32 %v5574_v63, %v1875_v41 }
 0xb56   :  { %v1862_v25 = vpop.xlane.xlu0 %1861 }
 0xb57   :  { %v1876_v9 = vmul.f32 0.03125, %v1862_v25  ;;  %v1887_v45 = vmul.f32 %v1881_v59, %v1881_v59  ;;  %v1938_v25 = vrot.slane %v3593_v22, %v4877_v29 }
 0xb59   :  { %v5605_v36 = vsub.f32 %v5579_v61, %v1876_v9  ;;  %v1893_v50 = vsel %vm225_vm2, %v1887_v45, 0.0 }
 0xb5a   :  { %v1865_v48 = vpop.xlane.xlu1 %1864  ;;  %1894 = vadd.xlane.f32.xlu1 %v1893_v50 }
 0xb5b   :  { %v1877_v30 = vmul.f32 0.03125, %v1865_v48  ;;  %v1888_v3 = vmul.f32 %v5605_v36, %v5605_v36 }
 0xb5d   :  { %v5611_v56 = vsub.f32 %v5584_v46, %v1877_v30  ;;  %v1896_v26 = vsel %vm225_vm2, %v1888_v3, 0.0  ;;  %v1948_v3 = vrot.slane %v3593_v22, %v4885_v39 }
 0xb5e   :  { %v1868_v18 = vpop.xlane.xlu0 %1867  ;;  %1897 = vadd.xlane.f32.xlu0 %v1896_v26 }
 0xb5f   :  { %v1878_v52 = vmul.f32 0.03125, %v1868_v18  ;;  %v1889_v42 = vmul.f32 %v5611_v56, %v5611_v56 }
 0xb61   :  { %v5617_v44 = vsub.f32 %v5589_v38, %v1878_v52  ;;  %v1899_v51 = vsel %vm225_vm2, %v1889_v42, 0.0 }
 0xb62   :  { %1900 = vadd.xlane.f32.xlu1 %v1899_v51  ;;  %v1871_v47 = vpop.xlane.xlu1 %1870 }
 0xb63   :  { %v1879_v57 = vmul.f32 0.03125, %v1871_v47  ;;  %v1890_v0 = vmul.f32 %v5617_v44, %v5617_v44 }
 0xb65   :  { %v5623_v8 = vsub.f32 %v5594_v15, %v1879_v57  ;;  %v1902_v58 = vsel %vm225_vm2, %v1890_v0, 0.0 }
 0xb66   :  { %1903 = vadd.xlane.f32.xlu0 %v1902_v58  ;;  %v1874_v6 = vpop.xlane.xlu0 %1873 }
 0xb67   :  { %v1880_v62 = vmul.f32 0.03125, %v1874_v6  ;;  %v1891_v16 = vmul.f32 %v5623_v8, %v5623_v8 }
 0xb69   :  { %v5629_v4 = vsub.f32 %v5599_v20, %v1880_v62  ;;  %v1905_v49 = vsel %vm225_vm2, %v1891_v16, 0.0 }
 0xb6a   :  { %1906 = vadd.xlane.f32.xlu1 %v1905_v49 }
 0xb6b   :  { %v1892_v55 = vmul.f32 %v5629_v4, %v5629_v4 }
 0xb6d   :  { %v1908_v40 = vsel %vm225_vm2, %v1892_v55, 0.0 }
 0xb6e   :  { %1909 = vadd.xlane.f32.xlu0 %v1908_v40 }
 0xbe3   :  { %v1895_v54 = vpop.xlane.xlu1 %1894 }
 0xbe4   :  { %v1911_v43 = vmul.f32 0.03125, %v1895_v54 }
 0xbe6   :  { %v1917_v33 = vadd.f32 1e-06, %v1911_v43 }
 0xbe7   :  { %v1898_v53 = vpop.xlane.xlu0 %1897 }
 0xbe8   :  { %4516 = vrsqrt.f32 %v1917_v33  ;;  %v1912_v10 = vmul.f32 0.03125, %v1898_v53 }
 0xbea   :  { %v1918_v34 = vadd.f32 1e-06, %v1912_v10 }
 0xbeb   :  { %v1901_v5 = vpop.xlane.xlu1 %1900 }
 0xbec   :  { %4518 = vrsqrt.f32 %v1918_v34  ;;  %v1913_v27 = vmul.f32 0.03125, %v1901_v5 }
 0xbee   :  { %v1919_v11 = vadd.f32 1e-06, %v1913_v27 }
 0xbef   :  { %v1904_v28 = vpop.xlane.xlu0 %1903 }
 0xbf0   :  { %4520 = vrsqrt.f32 %v1919_v11  ;;  %v1914_v19 = vmul.f32 0.03125, %v1904_v28 }
 0xbf2   :  { %v1920_v31 = vadd.f32 1e-06, %v1914_v19 }
 0xbf3   :  { %v1907_v13 = vpop.xlane.xlu1 %1906 }
 0xbf4   :  { %4522 = vrsqrt.f32 %v1920_v31  ;;  %v1915_v37 = vmul.f32 0.03125, %v1907_v13 }
 0xbf5   :  { %v4517_v41 = vpop.eup %4516 }
 0xbf6   :  { %v1929_v9 = vmul.f32 %v4517_v41, %v1881_v59  ;;  %v1921_v45 = vadd.f32 1e-06, %v1915_v37 }
 0xbf7   :  { %v1910_v50 = vpop.xlane.xlu0 %1909 }
 0xbf8   :  { %4524 = vrsqrt.f32 %v1921_v45  ;;  %v1916_v48 = vmul.f32 0.03125, %v1910_v50  ;;  %v1939_v26 = vmul.f32 %v1938_v25, %v1929_v9 }
 0xbf9   :  { %v4519_v30 = vpop.eup %4518 }
 0xbfa   :  { %v1930_v18 = vmul.f32 %v4519_v30, %v5605_v36  ;;  %v1922_v52 = vadd.f32 1e-06, %v1916_v48  ;;  %v1949_v47 = vadd.f32 %v1948_v3, %v1939_v26 }
 0xbfc   :  { %v1940_v42 = vmul.f32 %v1938_v25, %v1930_v18  ;;  %4526 = vrsqrt.f32 %v1922_v52 }
 0xbfd   :  { %v4521_v51 = vpop.eup %4520 }
 0xbfe   :  { %v1950_v57 = vadd.f32 %v1948_v3, %v1940_v42  ;;  %v1931_v0 = vmul.f32 %v4521_v51, %v5611_v56 }
 0xc00   :  { %v1955_v58 = vpack.c.bf16 %v1950_v57, %v1949_v47  ;;  %v1941_v62 = vmul.f32 %v1938_v25, %v1931_v0 }
 0xc01   :  { %v4523_v59 = vpop.eup %4522 }
 0xc02   :  { %4042 = vmatmul.mubr.msk.bf16.vlgmr.msra.gmra.mxu0 %vm225_vm2, %v1955_v58  ;;  %v1932_v6 = vmul.f32 %v4523_v59, %v5617_v44  ;;  %v1951_v49 = vadd.f32 %v1948_v3, %v1941_v62 }
 0xc03   :  { %4045 = vmatprep.mubr.msk.bf16.mxu0 %vm4675_vm0, %v4674_v1 }
 0xc04   :  { %v1942_v16 = vmul.f32 %v1938_v25, %v1932_v6 }
 0xc05   :  { %v4525_v36 = vpop.eup %4524 }
 0xc06   :  { %v1952_v55 = vadd.f32 %v1948_v3, %v1942_v16  ;;  %v1933_v40 = vmul.f32 %v4525_v36, %v5623_v8 }
 0xc08   :  { %v1956_v60 = vpack.c.bf16 %v1952_v55, %v1951_v49  ;;  %v1943_v54 = vmul.f32 %v1938_v25, %v1933_v40 }
 0xc09   :  { %v4527_v23 = vpop.eup %4526 }
 0xc0a   :  { %4046 = vmatmul.mubr.msk.bf16.gmra.mxu0 %vm225_vm2, %v1956_v60  ;;  %v1934_v56 = vmul.f32 %v4527_v23, %v5629_v4  ;;  %v1953_v43 = vadd.f32 %v1948_v3, %v1943_v54  ;;  %v1966_v4 = vrot.slane %v3593_v22, %v334_v12 }
 0xc0b   :  { %4049 = vmatprep.mubr.msk.bf16.mxu0 %vm4675_vm0, %v4674_v1 }
 0xc0c   :  { %v1944_v44 = vmul.f32 %v1938_v25, %v1934_v56 }
 0xc0e   :  { %v1954_v33 = vadd.f32 %v1948_v3, %v1944_v44 }
 0xc10   :  { %v1957_v53 = vpack.c.bf16 %v1954_v33, %v1953_v43 }
 0xc12   :  { %4050 = vmatmul.mubr.msk.bf16.gmra.mxu0 %vm225_vm2, %v1957_v53 }
 0xc13   :  { %4077 = vmatprep.mubr.msk.bf16.mxu0 %vm4675_vm0, %v4674_v1 }
 0xcc2   :  { %v2022_v8 = vpop.f32.mrf.mxu0 }
 0xcc3   :  { %v2023_v50 = vadd.f32 %v2022_v8, %v1966_v4 }
 0xcc4   :  { %v4043_v10 = vpop.f32.mrf.mxu0 }
 0xcc6   :  { %v2025_v34 = vpop.f32.mrf.mxu0 }
 0xcc7   :  { %v2026_v9 = vadd.f32 %v2025_v34, %v1966_v4 }
 0xcc8   :  { %v4044_v5 = vpop.f32.mrf.mxu0 }
 0xcc9   :  { %v5670_v22 = vpack.c.bf16 %v2026_v9, %v2023_v50 }
 0xcca   :  { %v2030_v27 = vpop.f32.mrf.mxu0 }
 0xccb   :  { %v2031_v19 = vadd.f32 %v2030_v27, %v1966_v4 }
 0xccc   :  { %v4047_v11 = vpop.f32.mrf.mxu0 }
 0xcce   :  { %v2033_v28 = vpop.f32.mrf.mxu0 }
 0xccf   :  { %v2034_v31 = vadd.f32 %v2033_v28, %v1966_v4 }
 0xcd0   :  { %v4048_v13 = vpop.f32.mrf.mxu0 }
 0xcd1   :  { %v5664_v37 = vpack.c.bf16 %v2034_v31, %v2031_v19 }
 0xcd2   :  { %v2038_v41 = vpop.f32.mrf.mxu0 }
 0xcd3   :  { %2053 = vrot.lane.b32.xlu0 %v5664_v37, %s4676_s2  ;;  %v2039_v48 = vadd.f32 %v2038_v41, %v1966_v4 }
 0xcd4   :  { %v4051_v25 = vpop.f32.mrf.mxu0 }
 0xcd6   :  { %v2041_v45 = vpop.f32.mrf.mxu0 }
 0xcd7   :  { %v2042_v30 = vadd.f32 %v2041_v45, %v1966_v4  ;;  %2284 = vrot.lane.b32.xlu0 %v5664_v37, %s4677_s21 }
 0xcd8   :  { %v4052_v12 = vpop.f32.mrf.mxu0 }
 0xcd9   :  { %v5672_v3 = vpack.c.bf16 %v2042_v30, %v2039_v48 }
 0xcdb   :  { %2276 = vrot.lane.b32.xlu0 %v5670_v22, %s4679_s23  ;;  %2055 = vrot.lane.b32.xlu1 %v5672_v3, %s4676_s2 }
 0xcdf   :  { %2278 = vrot.lane.b32.xlu0 %v5664_v37, %s4679_s23  ;;  %2051 = vrot.lane.b32.xlu1 %v5670_v22, %s4676_s2 }
 0xce3   :  { %2280 = vrot.lane.b32.xlu0 %v5672_v3, %s4679_s23  ;;  %2286 = vrot.lane.b32.xlu1 %v5672_v3, %s4677_s21 }
 0xce7   :  { %2507 = vrot.lane.b32.xlu0 %v5670_v22, %s4681_s25  ;;  %2282 = vrot.lane.b32.xlu1 %v5670_v22, %s4677_s21 }
 0xceb   :  { %2509 = vrot.lane.b32.xlu0 %v5664_v37, %s4681_s25  ;;  %2517 = vrot.lane.b32.xlu1 %v5672_v3, %s4678_s22 }
 0xcef   :  { %2511 = vrot.lane.b32.xlu0 %v5672_v3, %s4681_s25  ;;  %2515 = vrot.lane.b32.xlu1 %v5664_v37, %s4678_s22 }
 0xcf3   :  { %2738 = vrot.lane.b32.xlu0 %v5670_v22, %s4682_s26  ;;  %2513 = vrot.lane.b32.xlu1 %v5670_v22, %s4678_s22 }
 0xcf7   :  { %2201 = vrot.lane.b32.xlu0 %v5670_v22, %s4683_s27  ;;  %2748 = vrot.lane.b32.xlu1 %v5672_v3, %s4680_s24 }
 0xcfb   :  { %2434 = vrot.lane.b32.xlu0 %v5664_v37, %s4684_s28  ;;  %2746 = vrot.lane.b32.xlu1 %v5664_v37, %s4680_s24 }
 0xcff   :  { %2742 = vrot.lane.b32.xlu0 %v5672_v3, %s4682_s26  ;;  %2744 = vrot.lane.b32.xlu1 %v5670_v22, %s4680_s24 }
 0xd03   :  { %2205 = vrot.lane.b32.xlu0 %v5672_v3, %s4683_s27  ;;  %2740 = vrot.lane.b32.xlu1 %v5664_v37, %s4682_s26 }
 0xd07   :  { %2203 = vrot.lane.b32.xlu1 %v5664_v37, %s4683_s27 }
 0xd0b   :  { %2436 = vrot.lane.b32.xlu1 %v5672_v3, %s4684_s28 }
 0xd45   :  { %v2054_v26 = vpop.permute.xlu0 %2053 }
 0xd46   :  { %v2070_v59 = vsel %vm426_vm3, %v2054_v26, 0 }
 0xd49   :  { %v2285_v18 = vpop.permute.xlu0 %2284 }
 0xd4a   :  { %v2301_v53 = vsel %vm426_vm3, %v2285_v18, 0 }
 0xd4d   :  { %v2277_v52 = vpop.permute.xlu0 %2276  ;;  %v2056_v42 = vpop.permute.xlu1 %2055 }
 0xd4e   :  { %v2073_v51 = vsel %vm426_vm3, %v2056_v42, 0 }
 0xd4f   :  { %4054 = vmatpush3.bf16.xpose.msra.mxu1 %v2073_v51 }
 0xd50   :  { %4055 = vmatprep.subr.bf16.mxu1 %v4674_v1 }
 0xd51   :  { %v2279_v47 = vpop.permute.xlu0 %2278  ;;  %v2052_v57 = vpop.permute.xlu1 %2051 }
 0xd52   :  { %v2067_v49 = vsel %vm426_vm3, %v2052_v57, 0 }
 0xd55   :  { %v2281_v0 = vpop.permute.xlu0 %2280  ;;  %v2287_v58 = vpop.permute.xlu1 %2286 }
 0xd56   :  { %v2304_v56 = vsel %vm426_vm3, %v2287_v58, 0 }
 0xd57   :  { %4056 = vmatpush3.bf16.xpose.msra.mxu1 %v2070_v59 }
 0xd58   :  { %4057 = vmatprep.subr.bf16.mxu1 %v4674_v1 }
 0xd59   :  { %v2508_v6 = vpop.permute.xlu0 %2507  ;;  %v2283_v62 = vpop.permute.xlu1 %2282 }
 0xd5a   :  { %v2298_v27 = vsel %vm426_vm3, %v2283_v62, 0 }
 0xd5d   :  { %v2510_v16 = vpop.permute.xlu0 %2509  ;;  %v2518_v36 = vpop.permute.xlu1 %2517 }
 0xd5e   :  { %v2535_v4 = vsel %vm426_vm3, %v2518_v36, 0 }
 0xd5f   :  { %4058 = vmatpush3.bf16.xpose.msra.mxu1 %v2067_v49 }
 0xd60   :  { %4089 = vmatprep.subr.bf16.mxu1 %v4674_v1 }
 0xd61   :  { %v2512_v55 = vpop.permute.xlu0 %2511  ;;  %v2516_v40 = vpop.permute.xlu1 %2515 }
 0xd62   :  { %v2532_v28 = vsel %vm426_vm3, %v2516_v40, 0 }
 0xd65   :  { %v2739_v60 = vpop.permute.xlu0 %2738  ;;  %v2514_v23 = vpop.permute.xlu1 %2513 }
 0xd66   :  { %4060 = vmatmul.mubr.msk.bf16.vlgmr.msra.gmra.mxu1 %vm426_vm3, %v5670_v22  ;;  %v2529_v19 = vsel %vm426_vm3, %v2514_v23, 0 }
 0xd67   :  { %4090 = vmatpush3.bf16.xpose.msra.mxu1 %v2304_v56  ;;  %4063 = vmatprep.mubr.msk.bf16.mxu1 %vm4675_vm0, %v4674_v1 }
 0xd68   :  { %4091 = vmatprep.subr.bf16.mxu1 %v4674_v1 }
 0xd69   :  { %v2202_v54 = vpop.permute.xlu0 %2201  ;;  %v2749_v44 = vpop.permute.xlu1 %2748 }
 0xd6a   :  { %v2766_v31 = vsel %vm426_vm3, %v2749_v44, 0 }
 0xd6d   :  { %v5734_v43 = vpop.permute.xlu0 %2434  ;;  %v2747_v33 = vpop.permute.xlu1 %2746 }
 0xd6e   :  { %4064 = vmatmul.mubr.msk.bf16.gmra.mxu1 %vm426_vm3, %v5664_v37  ;;  %v2763_v13 = vsel %vm426_vm3, %v2747_v33, 0 }
 0xd6f   :  { %4092 = vmatpush3.bf16.xpose.msra.mxu1 %v2301_v53  ;;  %4067 = vmatprep.mubr.msk.bf16.mxu1 %vm4675_vm0, %v4674_v1 }
 0xd70   :  { %4093 = vmatprep.subr.bf16.mxu1 %v4674_v1 }
 0xd71   :  { %v2743_v8 = vpop.permute.xlu0 %2742  ;;  %v2745_v10 = vpop.permute.xlu1 %2744 }
 0xd72   :  { %v2760_v41 = vsel %vm426_vm3, %v2745_v10, 0 }
 0xd75   :  { %v2206_v34 = vpop.permute.xlu0 %2205  ;;  %v2741_v5 = vpop.permute.xlu1 %2740 }
 0xd76   :  { %4068 = vmatmul.mubr.msk.bf16.gmra.mxu1 %vm426_vm3, %v5672_v3  ;;  %4072 = vmatpush3.bf16.msra.mxu0 %v2206_v34 }
 0xd77   :  { %4094 = vmatpush3.bf16.xpose.msra.mxu1 %v2298_v27  ;;  %4073 = vmatprep.subr.bf16.mxu0 %v4674_v1 }
 0xd78   :  { %4095 = vmatprep.mubr.msk.bf16.mxu1 %vm4675_vm0, %v4674_v1  ;;  %4125 = vmatprep.subr.bf16.mxu1 %v4674_v1 }
 0xd79   :  { %v2204_v11 = vpop.permute.xlu1 %2203 }
 0xd7a   :  { %4074 = vmatpush3.bf16.msra.mxu0 %v2204_v11 }
 0xd7b   :  { %4075 = vmatprep.subr.bf16.mxu0 %v4674_v1 }
 0xd7e   :  { %4076 = vmatpush3.bf16.msra.mxu0 %v2202_v54  ;;  %4096 = vmatmul.mubr.msk.bf16.vlgmr.msra.gmra.mxu1 %vm426_vm3, %v2277_v52 }
 0xd7f   :  { %4126 = vmatpush3.bf16.xpose.msra.mxu1 %v2535_v4  ;;  %4099 = vmatprep.mubr.msk.bf16.mxu1 %vm4675_vm0, %v4674_v1 }
 0xd80   :  { %4127 = vmatprep.subr.bf16.mxu1 %v4674_v1  ;;  %4107 = vmatprep.subr.bf16.mxu0 %v4674_v1 }
 0xd86   :  { %4100 = vmatmul.mubr.msk.bf16.gmra.mxu1 %vm426_vm3, %v2279_v47 }
 0xd87   :  { %4128 = vmatpush3.bf16.xpose.msra.mxu1 %v2532_v28  ;;  %4103 = vmatprep.mubr.msk.bf16.mxu1 %vm4675_vm0, %v4674_v1 }
 0xd88   :  { %4129 = vmatprep.subr.bf16.mxu1 %v4674_v1 }
 0xd8e   :  { %4104 = vmatmul.mubr.msk.bf16.gmra.mxu1 %vm426_vm3, %v2281_v0 }
 0xd8f   :  { %4130 = vmatpush3.bf16.xpose.msra.mxu1 %v2529_v19  ;;  %4131 = vmatprep.mubr.msk.bf16.mxu1 %vm4675_vm0, %v4674_v1 }
 0xd90   :  { %4161 = vmatprep.subr.bf16.mxu1 %v4674_v1 }
 0xd96   :  { %4132 = vmatmul.mubr.msk.bf16.vlgmr.msra.gmra.mxu1 %vm426_vm3, %v2508_v6 }
 0xd97   :  { %4162 = vmatpush3.bf16.xpose.msra.mxu1 %v2766_v31  ;;  %4135 = vmatprep.mubr.msk.bf16.mxu1 %vm4675_vm0, %v4674_v1 }
 0xd98   :  { %4163 = vmatprep.subr.bf16.mxu1 %v4674_v1 }
 0xd9e   :  { %4136 = vmatmul.mubr.msk.bf16.gmra.mxu1 %vm426_vm3, %v2510_v16 }
 0xd9f   :  { %4164 = vmatpush3.bf16.xpose.msra.mxu1 %v2763_v13  ;;  %4139 = vmatprep.mubr.msk.bf16.mxu1 %vm4675_vm0, %v4674_v1 }
 0xda0   :  { %4165 = vmatprep.subr.bf16.mxu1 %v4674_v1 }
 0xda6   :  { %4140 = vmatmul.mubr.msk.bf16.gmra.mxu1 %vm426_vm3, %v2512_v55 }
 0xda7   :  { %4166 = vmatpush3.bf16.xpose.msra.mxu1 %v2760_v41  ;;  %4167 = vmatprep.mubr.msk.bf16.mxu1 %vm4675_vm0, %v4674_v1 }
 0xda8   :  { %4197 = vmatprep.subr.bf16.mxu1 %v4674_v1 }
 0xdae   :  { %4168 = vmatmul.mubr.msk.bf16.vlgmr.msra.gmra.mxu1 %vm426_vm3, %v2739_v60 }
 0xdaf   :  { %4171 = vmatprep.mubr.msk.bf16.mxu1 %vm4675_vm0, %v4674_v1 }
 0xdb6   :  { %4172 = vmatmul.mubr.msk.bf16.gmra.mxu1 %vm426_vm3, %v2741_v5 }
 0xdb7   :  { %4175 = vmatprep.mubr.msk.bf16.mxu1 %vm4675_vm0, %v4674_v1 }
 0xdbe   :  { %4176 = vmatmul.mubr.msk.bf16.gmra.mxu1 %vm426_vm3, %v2743_v8 }
 0xdbf   :  { %4201 = vmatprep.mubr.msk.bf16.mxu1 %vm4675_vm0, %v4674_v1 }
 0xe26   :  { %v2109_v25 = vpop.f32.mrf.mxu1 }
 0xe27   :  { %v5791_v9 = vadd.f32 %v2109_v25, %v5030_v17 }
 0xe28   :  { %v4061_v45 = vpop.f32.mrf.mxu1 }
 0xe29   :  { %v2132_v50 = vsel %vm72_vm1, %v5791_v9, -inf }
 0xe2a   :  { %2133 = vmax.xlane.f32.xlu1 %v2132_v50  ;;  %v2112_v48 = vpop.f32.mrf.mxu1 }
 0xe2b   :  { %v5796_v30 = vadd.f32 %v2112_v48, %v5030_v17 }
 0xe2c   :  { %v4062_v12 = vpop.f32.mrf.mxu1 }
 0xe2d   :  { %v2135_v26 = vsel %vm72_vm1, %v5796_v30, -inf }
 0xe2e   :  { %2136 = vmax.xlane.f32.xlu0 %v2135_v26  ;;  %v2117_v18 = vpop.f32.mrf.mxu1 }
 0xe2f   :  { %v5801_v52 = vadd.f32 %v2117_v18, %v5030_v17 }
 0xe30   :  { %v4065_v42 = vpop.f32.mrf.mxu1 }
 0xe31   :  { %v2138_v51 = vsel %vm72_vm1, %v5801_v52, -inf }
 0xe32   :  { %2139 = vmax.xlane.f32.xlu0 %v2138_v51  ;;  %v2120_v47 = vpop.f32.mrf.mxu1 }
 0xe33   :  { %v5806_v57 = vadd.f32 %v2120_v47, %v5045_v32 }
 0xe34   :  { %v4066_v0 = vpop.f32.mrf.mxu1 }
 0xe35   :  { %v2141_v58 = vsel %vm72_vm1, %v5806_v57, -inf }
 0xe36   :  { %2142 = vmax.xlane.f32.xlu1 %v2141_v58  ;;  %v2125_v59 = vpop.f32.mrf.mxu1 }
 0xe37   :  { %v5811_v6 = vadd.f32 %v2125_v59, %v5045_v32 }
 0xe38   :  { %v4069_v62 = vpop.f32.mrf.mxu1 }
 0xe39   :  { %v2144_v16 = vsel %vm72_vm1, %v5811_v6, -inf }
 0xe3a   :  { %2145 = vmax.xlane.f32.xlu0 %v2144_v16  ;;  %v2128_v36 = vpop.f32.mrf.mxu1 }
 0xe3b   :  { %v5816_v49 = vadd.f32 %v2128_v36, %v5045_v32 }
 0xe3c   :  { %v4070_v55 = vpop.f32.mrf.mxu1 }
 0xe3d   :  { %v2147_v40 = vsel %vm72_vm1, %v5816_v49, -inf }
 0xe3e   :  { %2148 = vmax.xlane.f32.xlu1 %v2147_v40  ;;  %v2340_v60 = vpop.f32.mrf.mxu1 }
 0xe3f   :  { %v5821_v23 = vadd.f32 %v2340_v60, %v5030_v17 }
 0xe40   :  { %v4097_v56 = vpop.f32.mrf.mxu1 }
 0xe41   :  { %v2363_v54 = vsel %vm72_vm1, %v5821_v23, -inf }
 0xe42   :  { %2364 = vmax.xlane.f32.xlu0 %v2363_v54  ;;  %v2343_v44 = vpop.f32.mrf.mxu1 }
 0xe43   :  { %v5826_v33 = vadd.f32 %v2343_v44, %v5030_v17 }
 0xe44   :  { %v4098_v53 = vpop.f32.mrf.mxu1 }
 0xe45   :  { %v2366_v8 = vsel %vm72_vm1, %v5826_v33, -inf }
 0xe46   :  { %2367 = vmax.xlane.f32.xlu1 %v2366_v8  ;;  %v2348_v10 = vpop.f32.mrf.mxu1 }
 0xe47   :  { %v5831_v34 = vadd.f32 %v2348_v10, %v5030_v17 }
 0xe48   :  { %v4101_v5 = vpop.f32.mrf.mxu1 }
 0xe49   :  { %v2369_v27 = vsel %vm72_vm1, %v5831_v34, -inf }
 0xe4a   :  { %2370 = vmax.xlane.f32.xlu0 %v2369_v27  ;;  %v2351_v11 = vpop.f32.mrf.mxu1 }
 0xe4b   :  { %v5836_v4 = vadd.f32 %v2351_v11, %v5045_v32 }
 0xe4c   :  { %v4102_v28 = vpop.f32.mrf.mxu1 }
 0xe4d   :  { %v2372_v19 = vsel %vm72_vm1, %v5836_v4, -inf }
 0xe4e   :  { %2373 = vmax.xlane.f32.xlu1 %v2372_v19  ;;  %v2356_v31 = vpop.f32.mrf.mxu1 }
 0xe4f   :  { %v5841_v13 = vadd.f32 %v2356_v31, %v5045_v32 }
 0xe50   :  { %v4105_v41 = vpop.f32.mrf.mxu1 }
 0xe51   :  { %v2375_v25 = vsel %vm72_vm1, %v5841_v13, -inf }
 0xe52   :  { %2376 = vmax.xlane.f32.xlu0 %v2375_v25  ;;  %v2359_v45 = vpop.f32.mrf.mxu1 }
 0xe53   :  { %v5846_v50 = vadd.f32 %v2359_v45, %v5045_v32 }
 0xe54   :  { %v4106_v48 = vpop.f32.mrf.mxu1 }
 0xe55   :  { %v2378_v12 = vsel %vm72_vm1, %v5846_v50, -inf }
 0xe56   :  { %2379 = vmax.xlane.f32.xlu1 %v2378_v12  ;;  %v2571_v26 = vpop.f32.mrf.mxu1 }
 0xe57   :  { %v5851_v18 = vadd.f32 %v2571_v26, %v5030_v17 }
 0xe58   :  { %v4133_v42 = vpop.f32.mrf.mxu1 }
 0xe59   :  { %v2594_v51 = vsel %vm72_vm1, %v5851_v18, -inf }
 0xe5a   :  { %2595 = vmax.xlane.f32.xlu0 %v2594_v51  ;;  %v2574_v47 = vpop.f32.mrf.mxu1 }
 0xe5b   :  { %v5856_v0 = vadd.f32 %v2574_v47, %v5030_v17 }
 0xe5c   :  { %v4134_v58 = vpop.f32.mrf.mxu1 }
 0xe5d   :  { %v2597_v59 = vsel %vm72_vm1, %v5856_v0, -inf }
 0xe5e   :  { %2598 = vmax.xlane.f32.xlu1 %v2597_v59  ;;  %v2579_v62 = vpop.f32.mrf.mxu1 }
 0xe5f   :  { %v5861_v16 = vadd.f32 %v2579_v62, %v5030_v17 }
 0xe60   :  { %v4137_v36 = vpop.f32.mrf.mxu1 }
 0xe61   :  { %v2600_v55 = vsel %vm72_vm1, %v5861_v16, -inf }
 0xe62   :  { %2601 = vmax.xlane.f32.xlu0 %v2600_v55  ;;  %v2582_v40 = vpop.f32.mrf.mxu1 }
 0xe63   :  { %v5866_v60 = vadd.f32 %v2582_v40, %v5045_v32 }
 0xe64   :  { %v4138_v56 = vpop.f32.mrf.mxu1 }
 0xe65   :  { %v2603_v54 = vsel %vm72_vm1, %v5866_v60, -inf }
 0xe66   :  { %2604 = vmax.xlane.f32.xlu1 %v2603_v54  ;;  %v2587_v44 = vpop.f32.mrf.mxu1 }
 0xe67   :  { %v5871_v53 = vadd.f32 %v2587_v44, %v5045_v32  ;;  %v5908_v44 = vpop.permute.xlu1 %2436 }
 0xe68   :  { %v4141_v8 = vpop.f32.mrf.mxu1 }
 0xe69   :  { %v2606_v10 = vsel %vm72_vm1, %v5871_v53, -inf }
 0xe6a   :  { %2607 = vmax.xlane.f32.xlu0 %v2606_v10  ;;  %v2590_v5 = vpop.f32.mrf.mxu1 }
 0xe6b   :  { %v5876_v27 = vadd.f32 %v2590_v5, %v5045_v32 }
 0xe6c   :  { %v4142_v11 = vpop.f32.mrf.mxu1 }
 0xe6d   :  { %v2609_v28 = vsel %vm72_vm1, %v5876_v27, -inf }
 0xe6e   :  { %2610 = vmax.xlane.f32.xlu1 %v2609_v28  ;;  %v2802_v19 = vpop.f32.mrf.mxu1 }
 0xe6f   :  { %v5881_v31 = vadd.f32 %v2802_v19, %v5030_v17 }
 0xe70   :  { %v4169_v41 = vpop.f32.mrf.mxu1 }
 0xe71   :  { %v2825_v25 = vsel %vm72_vm1, %v5881_v31, -inf }
 0xe72   :  { %2826 = vmax.xlane.f32.xlu0 %v2825_v25  ;;  %v2805_v45 = vpop.f32.mrf.mxu1 }
 0xe73   :  { %v5886_v48 = vadd.f32 %v2805_v45, %v5030_v17 }
 0xe74   :  { %v4170_v12 = vpop.f32.mrf.mxu1 }
 0xe75   :  { %v2828_v26 = vsel %vm72_vm1, %v5886_v48, -inf }
 0xe76   :  { %2829 = vmax.xlane.f32.xlu1 %v2828_v26  ;;  %v2810_v42 = vpop.f32.mrf.mxu1 }
 0xe77   :  { %v5891_v51 = vadd.f32 %v2810_v42, %v5030_v17 }
 0xe78   :  { %v4173_v47 = vpop.f32.mrf.mxu1 }
 0xe79   :  { %v2831_v58 = vsel %vm72_vm1, %v5891_v51, -inf }
 0xe7a   :  { %2832 = vmax.xlane.f32.xlu0 %v2831_v58  ;;  %v2813_v59 = vpop.f32.mrf.mxu1 }
 0xe7b   :  { %v5896_v62 = vadd.f32 %v2813_v59, %v5045_v32 }
 0xe7c   :  { %v4174_v36 = vpop.f32.mrf.mxu1 }
 0xe7d   :  { %v2834_v55 = vsel %vm72_vm1, %v5896_v62, -inf }
 0xe7e   :  { %2835 = vmax.xlane.f32.xlu1 %v2834_v55  ;;  %v5900_v40 = vpop.f32.mrf.mxu1 }
 0xe80   :  { %v4177_v56 = vpop.f32.mrf.mxu1 }
 0xe82   :  { %v5902_v54 = vpop.f32.mrf.mxu1 }
 0xe84   :  { %v4178_v17 = vpop.f32.mrf.mxu1 }
 0xe8f   :  { %2667 = vrot.lane.b32.xlu1 %v5672_v3, %s4686_s29 }
 0xe93   :  { %2665 = vrot.lane.b32.xlu1 %v5664_v37, %s4686_s29 }
 0xeb3   :  { %v2134_v8 = vpop.xlane.xlu1 %2133 }
 0xeb4   :  { %v2150_v10 = vsub.f32 %v5791_v9, %v2134_v8 }
 0xeb6   :  { %v2156_v5 = vmul.f32 1.442695, %v2150_v10 }
 0xeb7   :  { %v2137_v11 = vpop.xlane.xlu0 %2136 }
 0xeb8   :  { %4528 = vpow2.f32 %v2156_v5  ;;  %v2151_v28 = vsub.f32 %v5796_v30, %v2137_v11 }
 0xeba   :  { %v2158_v19 = vmul.f32 1.442695, %v2151_v28 }
 0xebb   :  { %v2140_v12 = vpop.xlane.xlu0 %2139 }
 0xebc   :  { %4530 = vpow2.f32 %v2158_v19 }
 0xebf   :  { %v2143_v41 = vpop.xlane.xlu1 %2142 }
 0xec0   :  { %v2153_v25 = vsub.f32 %v5806_v57, %v2143_v41 }
 0xec2   :  { %v2162_v45 = vmul.f32 1.442695, %v2153_v25 }
 0xec3   :  { %v2146_v47 = vpop.xlane.xlu0 %2145 }
 0xec4   :  { %4532 = vpow2.f32 %v2162_v45 }
 0xec5   :  { %v5913_v26 = vpop.eup %4528 }
 0xec6   :  { %v2168_v42 = vsel %vm72_vm1, %v5913_v26, 0.0 }
 0xec7   :  { %2169 = vadd.xlane.f32.xlu0 %v2168_v42  ;;  %v2149_v9 = vpop.xlane.xlu1 %2148 }
 0xec8   :  { %v2155_v58 = vsub.f32 %v5816_v49, %v2149_v9 }
 0xec9   :  { %v5918_v59 = vpop.eup %4530 }
 0xeca   :  { %v2166_v30 = vmul.f32 1.442695, %v2155_v58  ;;  %v2171_v36 = vsel %vm72_vm1, %v5918_v59, 0.0 }
 0xecb   :  { %v2365_v57 = vpop.xlane.xlu0 %2364  ;;  %2172 = vadd.xlane.f32.xlu1 %v2171_v36 }
 0xecc   :  { %4534 = vpow2.f32 %v2166_v30  ;;  %v2381_v55 = vsub.f32 %v5821_v23, %v2365_v57  ;;  %v2152_v57 = vsub.f32 %v5801_v52, %v2140_v12 }
 0xece   :  { %v2387_v56 = vmul.f32 1.442695, %v2381_v55 }
 0xecf   :  { %v2368_v10 = vpop.xlane.xlu1 %2367 }
 0xed0   :  { %4536 = vpow2.f32 %v2387_v56  ;;  %v2160_v56 = vmul.f32 1.442695, %v2152_v57 }
 0xed1   :  { %v5923_v17 = vpop.eup %4532 }
 0xed2   :  { %v2177_v8 = vsel %vm72_vm1, %v5923_v17, 0.0 }
 0xed3   :  { %v2371_v49 = vpop.xlane.xlu0 %2370  ;;  %2178 = vadd.xlane.f32.xlu1 %v2177_v8  ;;  %v2154_v8 = vsub.f32 %v5811_v6, %v2146_v47 }
 0xed4   :  { %v2383_v5 = vsub.f32 %v5831_v34, %v2371_v49 }
 0xed5   :  { %v2164_v12 = vmul.f32 1.442695, %v2154_v8 }
 0xed6   :  { %v2391_v11 = vmul.f32 1.442695, %v2383_v5 }
 0xed7   :  { %v2374_v28 = vpop.xlane.xlu1 %2373 }
 0xed8   :  { %4538 = vpow2.f32 %v2391_v11  ;;  %v2384_v19 = vsub.f32 %v5836_v4, %v2374_v28 }
 0xed9   :  { %v5929_v41 = vpop.eup %4534 }
 0xeda   :  { %v2393_v23 = vmul.f32 1.442695, %v2384_v19  ;;  %v2183_v25 = vsel %vm72_vm1, %v5929_v41, 0.0  ;;  %v2382_v19 = vsub.f32 %v5826_v33, %v2368_v10 }
 0xedb   :  { %v2377_v45 = vpop.xlane.xlu0 %2376  ;;  %2184 = vadd.xlane.f32.xlu1 %v2183_v25 }
 0xedc   :  { %4540 = vpow2.f32 %v2393_v23  ;;  %v2385_v42 = vsub.f32 %v5841_v13, %v2377_v45  ;;  %v2389_v45 = vmul.f32 1.442695, %v2382_v19 }
 0xedd   :  { %v5934_v9 = vpop.eup %4536  ;;  %2432 = vrot.lane.b32.xlu0 %v5670_v22, %s4684_s28 }
 0xede   :  { %v2395_v34 = vmul.f32 1.442695, %v2385_v42  ;;  %v2399_v4 = vsel %vm72_vm1, %v5934_v9, 0.0 }
 0xedf   :  { %2400 = vadd.xlane.f32.xlu1 %v2399_v4  ;;  %v2380_v58 = vpop.xlane.xlu1 %2379 }
 0xee0   :  { %4542 = vpow2.f32 %v2395_v34  ;;  %v2386_v30 = vsub.f32 %v5846_v50, %v2380_v58 }
 0xee2   :  { %v2397_v36 = vmul.f32 1.442695, %v2386_v30 }
 0xee3   :  { %v2596_v49 = vpop.xlane.xlu0 %2595 }
 0xee4   :  { %4544 = vpow2.f32 %v2397_v36  ;;  %v2612_v42 = vsub.f32 %v5851_v18, %v2596_v49 }
 0xee5   :  { %v5942_v55 = vpop.eup %4538  ;;  %4546 = vpow2.f32 %v2160_v56 }
 0xee6   :  { %v2405_v13 = vsel %vm72_vm1, %v5942_v55, 0.0  ;;  %v2618_v58 = vmul.f32 1.442695, %v2612_v42 }
 0xee7   :  { %2406 = vadd.xlane.f32.xlu1 %v2405_v13  ;;  %v2599_v5 = vpop.xlane.xlu1 %2598 }
 0xee8   :  { %v2613_v11 = vsub.f32 %v5856_v0, %v2599_v5 }
 0xee9   :  { %v5948_v28 = vpop.eup %4540 }
 0xeea   :  { %v2620_v50 = vmul.f32 1.442695, %v2613_v11  ;;  %v2408_v52 = vsel %vm72_vm1, %v5948_v28, 0.0 }
 0xeeb   :  { %v2602_v23 = vpop.xlane.xlu0 %2601  ;;  %2409 = vadd.xlane.f32.xlu1 %v2408_v52 }
 0xeec   :  { %4548 = vpow2.f32 %v2620_v50  ;;  %v2614_v6 = vsub.f32 %v5861_v16, %v2602_v23 }
 0xeed   :  { %v5954_v47 = vpop.eup %4542  ;;  %4550 = vpow2.f32 %v2164_v12 }
 0xeee   :  { %v2622_v25 = vmul.f32 1.442695, %v2614_v6  ;;  %v2411_v0 = vsel %vm72_vm1, %v5954_v47, 0.0 }
 0xeef   :  { %2412 = vadd.xlane.f32.xlu1 %v2411_v0  ;;  %v2605_v34 = vpop.xlane.xlu1 %2604 }
 0xef0   :  { %4552 = vpow2.f32 %v2622_v25  ;;  %v2615_v33 = vsub.f32 %v5866_v60, %v2605_v34 }
 0xef1   :  { %v5960_v10 = vpop.eup %4544  ;;  %4554 = vpow2.f32 %v2389_v45 }
 0xef2   :  { %v2624_v4 = vmul.f32 1.442695, %v2615_v33  ;;  %v2414_v16 = vsel %vm72_vm1, %v5960_v10, 0.0  ;;  %v5965_v13 = vpop.eup %4546 }
 0xef3   :  { %v2608_v30 = vpop.xlane.xlu0 %2607  ;;  %2415 = vadd.xlane.f32.xlu1 %v2414_v16  ;;  %v2174_v11 = vsel %vm72_vm1, %v5965_v13, 0.0 }
 0xef4   :  { %4556 = vpow2.f32 %v2624_v4  ;;  %v2616_v36 = vsub.f32 %v5871_v53, %v2608_v30 }
 0xef5   :  { %4558 = vpow2.f32 %v2618_v58 }
 0xef6   :  { %v2626_v57 = vmul.f32 1.442695, %v2616_v36 }
 0xef7   :  { %v2611_v18 = vpop.xlane.xlu1 %2610 }
 0xef8   :  { %4560 = vpow2.f32 %v2626_v57  ;;  %v2617_v60 = vsub.f32 %v5876_v27, %v2611_v18 }
 0xef9   :  { %v5968_v56 = vpop.eup %4548 }
 0xefa   :  { %v2628_v8 = vmul.f32 1.442695, %v2617_v60  ;;  %v2633_v49 = vsel %vm72_vm1, %v5968_v56, 0.0  ;;  %v5974_v53 = vpop.eup %4550 }
 0xefb   :  { %v2827_v5 = vpop.xlane.xlu0 %2826  ;;  %2634 = vadd.xlane.f32.xlu1 %v2633_v49  ;;  %v2180_v23 = vsel %vm72_vm1, %v5974_v53, 0.0 }
 0xefc   :  { %4562 = vpow2.f32 %v2628_v8  ;;  %v2843_v50 = vsub.f32 %v5881_v31, %v2827_v5  ;;  %2175 = vadd.xlane.f32.xlu0 %v2174_v11 }
 0xefd   :  { %v5977_v52 = vpop.eup %4552 }
 0xefe   :  { %v2849_v27 = vmul.f32 1.442695, %v2843_v50  ;;  %v2636_v12 = vsel %vm72_vm1, %v5977_v52, 0.0  ;;  %v5983_v6 = vpop.eup %4554 }
 0xeff   :  { %2637 = vadd.xlane.f32.xlu1 %v2636_v12  ;;  %v2830_v19 = vpop.xlane.xlu1 %2829  ;;  %v2402_v42 = vsel %vm72_vm1, %v5983_v6, 0.0 }
 0xf00   :  { %4564 = vpow2.f32 %v2849_v27  ;;  %v2844_v25 = vsub.f32 %v5886_v48, %v2830_v19  ;;  %2181 = vadd.xlane.f32.xlu0 %v2180_v23 }
 0xf01   :  { %v5986_v0 = vpop.eup %4556 }
 0xf02   :  { %v2851_v31 = vmul.f32 1.442695, %v2844_v25  ;;  %v2639_v45 = vsel %vm72_vm1, %v5986_v0, 0.0  ;;  %v5992_v34 = vpop.eup %4558 }
 0xf03   :  { %2640 = vadd.xlane.f32.xlu1 %v2639_v45  ;;  %v2630_v4 = vsel %vm72_vm1, %v5992_v34, 0.0  ;;  %v2833_v60 = vpop.xlane.xlu0 %2832 }
 0xf04   :  { %4566 = vpow2.f32 %v2851_v31  ;;  %2403 = vadd.xlane.f32.xlu0 %v2402_v42  ;;  %v2845_v49 = vsub.f32 %v5891_v51, %v2833_v60 }
 0xf05   :  { %v5994_v33 = vpop.eup %4560 }
 0xf06   :  { %v2642_v48 = vsel %vm72_vm1, %v5994_v33, 0.0  ;;  %v2853_v11 = vmul.f32 1.442695, %v2845_v49 }
 0xf07   :  { %2643 = vadd.xlane.f32.xlu1 %v2642_v48  ;;  %v2836_v8 = vpop.xlane.xlu1 %2835 }
 0xf08   :  { %2631 = vadd.xlane.f32.xlu0 %v2630_v4  ;;  %v2846_v5 = vsub.f32 %v5896_v62, %v2836_v8  ;;  %4568 = vpow2.f32 %v2853_v11 }
 0xf09   :  { %v6000_v16 = vpop.eup %4562 }
 0xf0a   :  { %v2645_v58 = vsel %vm72_vm1, %v6000_v16, 0.0  ;;  %v2855_v50 = vmul.f32 1.442695, %v2846_v5 }
 0xf0b   :  { %v6032_v62 = vpop.permute.xlu1 %2667 }
 0xf0c   :  { %2646 = vadd.xlane.f32.xlu0 %v2645_v58  ;;  %4570 = vpow2.f32 %v2855_v50 }
 0xf0d   :  { %v6004_v30 = vpop.eup %4564 }
 0xf0e   :  { %v2861_v36 = vsel %vm72_vm1, %v6004_v30, 0.0 }
 0xf0f   :  { %2862 = vadd.xlane.f32.xlu1 %v2861_v36  ;;  %v6036_v23 = vpop.permute.xlu1 %2665 }
 0xf11   :  { %v6008_v57 = vpop.eup %4566 }
 0xf12   :  { %v2864_v18 = vsel %vm72_vm1, %v6008_v57, 0.0 }
 0xf13   :  { %2865 = vadd.xlane.f32.xlu0 %v2864_v18 }
 0xf15   :  { %v6020_v27 = vpop.eup %4568 }
 0xf19   :  { %v6022_v12 = vpop.eup %4570 }
 0xf1a   :  { %v2870_v51 = vsel %vm72_vm1, %v6022_v12, 0.0 }
 0xf20   :  { %2898 = vrot.lane.b32.xlu1 %v5672_v3, %s4687_s0  ;;  %v2867_v3 = vsel %vm72_vm1, %v6020_v27, 0.0 }
 0xf24   :  { %2896 = vrot.lane.b32.xlu1 %v5664_v37, %s4687_s0  ;;  %v6026_v37 = vadd.f32 %v5900_v40, %v5045_v32 }
 0xf26   :  { %v2837_v19 = vsel %vm72_vm1, %v6026_v37, -inf }
 0xf29   :  { %2663 = vrot.lane.b32.xlu0 %v5670_v22, %s4686_s29 }
 0xf48   :  { %2868 = vadd.xlane.f32.xlu0 %v2867_v3  ;;  %2871 = vadd.xlane.f32.xlu1 %v2870_v51 }
 0xf4c   :  { %2838 = vmax.xlane.f32.xlu0 %v2837_v19 }
 0xf50   :  { %v2170_v25 = vpop.xlane.xlu0 %2169 }
 0xf51   :  { %4572 = vrcp.f32 %v2170_v25 }
 0xf54   :  { %v2173_v40 = vpop.xlane.xlu1 %2172 }
 0xf55   :  { %4574 = vrcp.f32 %v2173_v40 }
 0xf59   :  { %2894 = vrot.lane.b32.xlu1 %v5670_v22, %s4687_s0  ;;  %v2433_v22 = vpop.permute.xlu0 %2432 }
 0xf5e   :  { %v4573_v31 = vpop.eup %4572 }
 0xf5f   :  { %v2192_v42 = vmul.f32 %v4573_v31, %v5913_v26  ;;  %v6052_v26 = vadd.f32 %v5902_v54, %v5045_v32 }
 0xf62   :  { %v4575_v45 = vpop.eup %4574 }
 0xf63   :  { %v2193_v48 = vmul.f32 %v4575_v45, %v5918_v59  ;;  %v2179_v59 = vpop.xlane.xlu1 %2178 }
 0xf64   :  { %4576 = vrcp.f32 %v2179_v59 }
 0xf65   :  { %v2198_v4 = vpack.c.bf16 %v2193_v48, %v2192_v42 }
 0xf67   :  { %4078 = vmatmul.mubr.msk.bf16.vlgmr.msra.gmra.mxu0 %vm72_vm1, %v2198_v4  ;;  %v2185_v58 = vpop.xlane.xlu1 %2184 }
 0xf68   :  { %4108 = vmatpush3.bf16.msra.mxu0 %v5908_v44  ;;  %4081 = vmatprep.mubr.msk.bf16.mxu0 %vm4675_vm0, %v4674_v1  ;;  %v2840_v44 = vsel %vm72_vm1, %v6052_v26, -inf }
 0xf69   :  { %4109 = vmatprep.subr.bf16.mxu0 %v4674_v1 }
 0xf6c   :  { %4110 = vmatpush3.bf16.msra.mxu0 %v5734_v43  ;;  %v2401_v43 = vpop.xlane.xlu1 %2400 }
 0xf6d   :  { %4111 = vmatprep.subr.bf16.mxu0 %v4674_v1 }
 0xf70   :  { %4112 = vmatpush3.bf16.msra.mxu0 %v2433_v22  ;;  %v2407_v60 = vpop.xlane.xlu1 %2406 }
 0xf71   :  { %4143 = vmatprep.subr.bf16.mxu0 %v4674_v1  ;;  %v4577_v49 = vpop.eup %4576 }
 0xf72   :  { %v2195_v11 = vmul.f32 %v4577_v49, %v5923_v17 }
 0xf74   :  { %v2410_v5 = vpop.xlane.xlu1 %2409 }
 0xf78   :  { %v2413_v51 = vpop.xlane.xlu1 %2412 }
 0xf7c   :  { %v2416_v31 = vpop.xlane.xlu1 %2415 }
 0xf7d   :  { %2841 = vmax.xlane.f32.xlu1 %v2840_v44 }
 0xf84   :  { %v2635_v48 = vpop.xlane.xlu1 %2634 }
 0xf85   :  { %v2176_v36 = vpop.xlane.xlu0 %2175 }
 0xf86   :  { %4578 = vrcp.f32 %v2176_v36 }
 0xf88   :  { %v2638_v59 = vpop.xlane.xlu1 %2637 }
 0xf89   :  { %v2182_v18 = vpop.xlane.xlu0 %2181 }
 0xf8a   :  { %4580 = vrcp.f32 %v2182_v18 }
 0xf8b   :  { %4582 = vrcp.f32 %v2185_v58 }
 0xf8d   :  { %v2404_v8 = vpop.xlane.xlu0 %2403 }
 0xf8e   :  { %4584 = vrcp.f32 %v2404_v8 }
 0xf8f   :  { %4586 = vrcp.f32 %v2401_v43  ;;  %v2641_v43 = vpop.xlane.xlu1 %2640 }
 0xf90   :  { %4588 = vrcp.f32 %v2410_v5 }
 0xf91   :  { %4590 = vrcp.f32 %v2407_v60  ;;  %v2632_v42 = vpop.xlane.xlu0 %2631 }
 0xf92   :  { %4592 = vrcp.f32 %v2416_v31 }
 0xf93   :  { %v4579_v32 = vpop.eup %4578  ;;  %4594 = vrcp.f32 %v2413_v51 }
 0xf94   :  { %v2194_v54 = vmul.f32 %v4579_v32, %v5965_v13  ;;  %4596 = vrcp.f32 %v2632_v42 }
 0xf95   :  { %v2647_v44 = vpop.xlane.xlu0 %2646  ;;  %4598 = vrcp.f32 %v2635_v48 }
 0xf96   :  { %v2199_v50 = vpack.c.bf16 %v2195_v11, %v2194_v54  ;;  %4600 = vrcp.f32 %v2641_v43 }
 0xf97   :  { %v4581_v3 = vpop.eup %4580  ;;  %4602 = vrcp.f32 %v2638_v59 }
 0xf98   :  { %4082 = vmatmul.mubr.msk.bf16.gmra.mxu0 %vm72_vm1, %v2199_v50  ;;  %v4583_v19 = vpop.eup %4582  ;;  %v2196_v25 = vmul.f32 %v4581_v3, %v5974_v53  ;;  %4604 = vrcp.f32 %v2647_v44 }
 0xf99   :  { %4085 = vmatprep.mubr.msk.bf16.mxu0 %vm4675_vm0, %v4674_v1  ;;  %v2197_v40 = vmul.f32 %v4583_v19, %v5929_v41 }
 0xf9b   :  { %v2200_v45 = vpack.c.bf16 %v2197_v40, %v2196_v25  ;;  %v4585_v13 = vpop.eup %4584 }
 0xf9c   :  { %v4587_v17 = vpop.eup %4586  ;;  %v2424_v4 = vmul.f32 %v4585_v13, %v5983_v6  ;;  %v2866_v36 = vpop.xlane.xlu0 %2865 }
 0xf9d   :  { %v2423_v22 = vmul.f32 %v4587_v17, %v5934_v9  ;;  %v4589_v41 = vpop.eup %4588 }
 0xf9e   :  { %v4591_v58 = vpop.eup %4590  ;;  %v2426_v6 = vmul.f32 %v4589_v41, %v5948_v28 }
 0xf9f   :  { %v2429_v53 = vpack.c.bf16 %v2424_v4, %v2423_v22  ;;  %v2425_v9 = vmul.f32 %v4591_v58, %v5942_v55  ;;  %v4593_v60 = vpop.eup %4592  ;;  %v2644_v55 = vpop.xlane.xlu1 %2643 }
 0xfa0   :  { %4086 = vmatmul.mubr.msk.bf16.gmra.mxu0 %vm72_vm1, %v2200_v45  ;;  %v4595_v8 = vpop.eup %4594  ;;  %v2428_v28 = vmul.f32 %v4593_v60, %v5960_v10  ;;  %4606 = vrcp.f32 %v2644_v55 }
 0xfa1   :  { %4113 = vmatprep.mubr.msk.bf16.mxu0 %vm4675_vm0, %v4674_v1  ;;  %v2430_v18 = vpack.c.bf16 %v2426_v6, %v2425_v9  ;;  %v4597_v5 = vpop.eup %4596  ;;  %4608 = vrcp.f32 %v2866_v36 }
 0xfa2   :  { %v4599_v54 = vpop.eup %4598  ;;  %v2654_v11 = vmul.f32 %v4597_v5, %v5992_v34 }
 0xfa3   :  { %v2863_v32 = vpop.xlane.xlu1 %2862  ;;  %v2655_v10 = vmul.f32 %v4599_v54, %v5968_v56  ;;  %v4601_v51 = vpop.eup %4600 }
 0xfa4   :  { %v2657_v19 = vmul.f32 %v4601_v51, %v5986_v0  ;;  %4610 = vrcp.f32 %v2863_v32 }
 0xfa5   :  { %v2660_v50 = vpack.c.bf16 %v2655_v10, %v2654_v11 }
 0xfa7   :  { %v2899_v3 = vpop.permute.xlu1 %2898 }
 0xfa8   :  { %4114 = vmatmul.mubr.msk.bf16.vlgmr.msra.gmra.mxu0 %vm72_vm1, %v2429_v53 }
 0xfa9   :  { %4144 = vmatpush3.bf16.msra.mxu0 %v6032_v62  ;;  %4117 = vmatprep.mubr.msk.bf16.mxu0 %vm4675_vm0, %v4674_v1  ;;  %v2664_v62 = vpop.permute.xlu0 %2663 }
 0xfaa   :  { %4145 = vmatprep.subr.bf16.mxu0 %v4674_v1 }
 0xfab   :  { %v2897_v34 = vpop.permute.xlu1 %2896 }
 0xfad   :  { %4146 = vmatpush3.bf16.msra.mxu0 %v6036_v23  ;;  %v2427_v23 = vmul.f32 %v4595_v8, %v5954_v47  ;;  %v4603_v47 = vpop.eup %4602 }
 0xfae   :  { %4147 = vmatprep.subr.bf16.mxu0 %v4674_v1  ;;  %v2656_v25 = vmul.f32 %v4603_v47, %v5977_v52  ;;  %v4605_v40 = vpop.eup %4604 }
 0xfaf   :  { %v2431_v49 = vpack.c.bf16 %v2428_v28, %v2427_v23  ;;  %v4607_v31 = vpop.eup %4606  ;;  %v2659_v45 = vmul.f32 %v4605_v40, %v6000_v16 }
 0xfb0   :  { %4118 = vmatmul.mubr.msk.bf16.gmra.mxu0 %vm72_vm1, %v2430_v18  ;;  %v2661_v56 = vpack.c.bf16 %v2657_v19, %v2656_v25  ;;  %v2658_v0 = vmul.f32 %v4607_v31, %v5994_v33  ;;  %v4609_v42 = vpop.eup %4608 }
 0xfb1   :  { %4148 = vmatpush3.bf16.msra.mxu0 %v2664_v62  ;;  %4121 = vmatprep.mubr.msk.bf16.mxu0 %vm4675_vm0, %v4674_v1  ;;  %v4611_v48 = vpop.eup %4610  ;;  %v2886_v4 = vmul.f32 %v4609_v42, %v6008_v57 }
 0xfb2   :  { %4179 = vmatprep.subr.bf16.mxu0 %v4674_v1  ;;  %v2662_v13 = vpack.c.bf16 %v2659_v45, %v2658_v0  ;;  %v2885_v22 = vmul.f32 %v4611_v48, %v6004_v30 }
 0xfb4   :  { %v2891_v44 = vpack.c.bf16 %v2886_v4, %v2885_v22  ;;  %v4377_v22 = vld [vmem:[%s6366_s4 + $0x10] sm:$0xff]  }
 0xfb8   :  { %4122 = vmatmul.mubr.msk.bf16.gmra.mxu0 %vm72_vm1, %v2431_v49 }
 0xfb9   :  { %4149 = vmatprep.mubr.msk.bf16.mxu0 %vm4675_vm0, %v4674_v1 }
 0xfc0   :  { %4150 = vmatmul.mubr.msk.bf16.vlgmr.msra.gmra.mxu0 %vm72_vm1, %v2660_v50 }
 0xfc1   :  { %4180 = vmatpush3.bf16.msra.mxu0 %v2899_v3  ;;  %4153 = vmatprep.mubr.msk.bf16.mxu0 %vm4675_vm0, %v4674_v1 }
 0xfc2   :  { %4181 = vmatprep.subr.bf16.mxu0 %v4674_v1 }
 0xfc5   :  { %4182 = vmatpush3.bf16.msra.mxu0 %v2897_v34 }
 0xfc6   :  { %4183 = vmatprep.subr.bf16.mxu0 %v4674_v1 }
 0xfc8   :  { %4154 = vmatmul.mubr.msk.bf16.gmra.mxu0 %vm72_vm1, %v2661_v56 }
 0xfc9   :  { %4157 = vmatprep.mubr.msk.bf16.mxu0 %vm4675_vm0, %v4674_v1 }
 0xfd0   :  { %4158 = vmatmul.mubr.msk.bf16.gmra.mxu0 %vm72_vm1, %v2662_v13 }
 0xfd1   :  { %v2869_v52 = vpop.xlane.xlu0 %2868  ;;  %v2872_v17 = vpop.xlane.xlu1 %2871  ;;  %4185 = vmatprep.mubr.msk.bf16.mxu0 %vm4675_vm0, %v4674_v1 }
 0xfd2   :  { %4612 = vrcp.f32 %v2869_v52 }
 0xfd3   :  { %4614 = vrcp.f32 %v2872_v17  ;;  %v4376_v17 = vld [vmem:[%s6366_s4 + $0x18] sm:$0xff]   ;;  %s4691_s4 = smov [#allocation2]  }
 0xfd4   :  { %4198 = vmatpush3.bf16.msra.mxu1 %v4376_v17  ;;  %s3531_s24 = sshll.u32 %s4691_s4, 4  ;;  %s3532_s24 = int_to_ptr.vmem [resolvable:$true] %s3531_s24 }
 0xfd5   :  { %v2839_v53 = vpop.xlane.xlu0 %2838  ;;  %v2895_v16 = vpop.permute.xlu1 %2894  ;;  %4199 = vmatprep.subr.bf16.mxu1 %v4674_v1  ;;  %p4657_p1 = scmp.lt.s32.totalorder %s3532_s24, %s3532_s24 }
 0xfd6   :  { %v2847_v33 = vsub.f32 %v6026_v37, %v2839_v53  ;;  %4184 = vmatpush3.bf16.msra.mxu0 %v2895_v16 }
 0xfd7   :  { %4213 = vmatprep.subr.bf16.mxu0 %v4674_v1 }
 0xfd8   :  { %v2857_v41 = vmul.f32 1.442695, %v2847_v33  ;;  %4200 = vmatpush3.bf16.msra.mxu1 %v4377_v22 }
 0xfd9   :  { %4186 = vmatmul.mubr.msk.bf16.vlgmr.msra.gmra.mxu0 %vm72_vm1, %v2891_v44  ;;  %4229 = vmatprep.subr.bf16.mxu1 %v4674_v1 }
 0xfda   :  { %4616 = vpow2.f32 %v2857_v41  ;;  %4189 = vmatprep.mubr.msk.bf16.mxu0 %vm4675_vm0, %v4674_v1 }
 0xfdf   :  { %v4613_v59 = vpop.eup %4612 }
 0xfe0   :  { %v4615_v57 = vpop.eup %4614  ;;  %v2887_v58 = vmul.f32 %v4613_v59, %v6020_v27 }
 0xfe1   :  { %v2888_v30 = vmul.f32 %v4615_v57, %v6022_v12 }
 0xfe3   :  { %v2892_v36 = vpack.c.bf16 %v2888_v30, %v2887_v58 }
 0xfe5   :  { %4190 = vmatmul.mubr.msk.bf16.gmra.mxu0 %vm72_vm1, %v2892_v36 }
 0xfe6   :  { %4193 = vmatprep.mubr.msk.bf16.mxu0 %vm4675_vm0, %v4674_v1 }
 0xfe7   :  { %v6115_v37 = vpop.eup %4616 }
 0xfe8   :  { %v2873_v6 = vsel %vm72_vm1, %v6115_v37, 0.0 }
 0xfe9   :  { %2874 = vadd.xlane.f32.xlu0 %v2873_v6 }
0x1006   :  { %v2842_v9 = vpop.xlane.xlu1 %2841 }
0x1007   :  { %v2848_v43 = vsub.f32 %v6052_v26, %v2842_v9 }
0x1009   :  { %v2859_v18 = vmul.f32 1.442695, %v2848_v43 }
0x100b   :  { %4618 = vpow2.f32 %v2859_v18 }
0x1018   :  { %v6120_v27 = vpop.eup %4618 }
0x1019   :  { %v2876_v12 = vsel %vm72_vm1, %v6120_v27, 0.0 }
0x101a   :  { %2877 = vadd.xlane.f32.xlu0 %v2876_v12 }
0x1027   :  { %v6124_v60 = vpop.f32.mrf.mxu0 }
0x1029   :  { %v4079_v62 = vpop.f32.mrf.mxu0 }
0x102b   :  { %v6126_v8 = vpop.f32.mrf.mxu0 }
0x102d   :  { %v4080_v28 = vpop.f32.mrf.mxu0 }
0x1058   :  { %v6128_v55 = vpop.f32.mrf.mxu0 }
0x105a   :  { %v4083_v23 = vpop.f32.mrf.mxu0 }
0x105c   :  { %v6130_v49 = vpop.f32.mrf.mxu0 }
0x105e   :  { %v4084_v26 = vpop.f32.mrf.mxu0 }
0x1060   :  { %v6132_v5 = vpop.f32.mrf.mxu0 }
0x1062   :  { %v4087_v32 = vpop.f32.mrf.mxu0 }
0x1064   :  { %v6134_v54 = vpop.f32.mrf.mxu0 }
0x1066   :  { %v4088_v11 = vpop.f32.mrf.mxu0 }
0x1068   :  { %v2484_v10 = vpop.f32.mrf.mxu0 }
0x106a   :  { %v4115_v50 = vpop.f32.mrf.mxu0 }
0x106c   :  { %v2487_v3 = vpop.f32.mrf.mxu0 }
0x106d   :  { %v4316_v51 = vpack.i.bf16 %v2487_v3, %v2484_v10 }
0x106e   :  { %v4116_v47 = vpop.f32.mrf.mxu0 }
0x106f   :  { %4317 = vrot.lane.b32.xlu0 %v4316_v51, %s4688_s30 }
0x1070   :  { %v2492_v19 = vpop.f32.mrf.mxu0 }
0x1072   :  { %v4119_v34 = vpop.f32.mrf.mxu0  ;;  %v2875_v12 = vpop.xlane.xlu0 %2874 }
0x1073   :  { %4620 = vrcp.f32 %v2875_v12 }
0x1074   :  { %v2495_v25 = vpop.f32.mrf.mxu0 }
0x1075   :  { %v4331_v16 = vpack.i.bf16 %v2495_v25, %v2492_v19 }
0x1076   :  { %v4120_v56 = vpop.f32.mrf.mxu0 }
0x1078   :  { %v2500_v40 = vpop.f32.mrf.mxu0 }
0x107a   :  { %v4123_v31 = vpop.f32.mrf.mxu0 }
0x107c   :  { %v2503_v45 = vpop.f32.mrf.mxu0 }
0x107d   :  { %v4346_v50 = vpack.i.bf16 %v2503_v45, %v2500_v40 }
0x107e   :  { %v4124_v0 = vpop.f32.mrf.mxu0 }
0x1080   :  { %v2715_v13 = vpop.f32.mrf.mxu0  ;;  %v4621_v3 = vpop.eup %4620 }
0x1081   :  { %v2889_v19 = vmul.f32 %v4621_v3, %v6115_v37 }
0x1082   :  { %v4151_v42 = vpop.f32.mrf.mxu0 }
0x1084   :  { %v2718_v52 = vpop.f32.mrf.mxu0 }
0x1085   :  { %v4321_v48 = vpack.i.bf16 %v2718_v52, %v2715_v13 }
0x1086   :  { %v4152_v4 = vpop.f32.mrf.mxu0 }
0x1087   :  { %4322 = vrot.lane.b32.xlu0 %v4321_v48, %s4689_s14 }
0x1088   :  { %v2723_v53 = vpop.f32.mrf.mxu0 }
0x108a   :  { %v4155_v33 = vpop.f32.mrf.mxu0 }
0x108b   :  { %4332 = vrot.lane.b32.xlu0 %v4331_v16, %s4688_s30 }
0x108c   :  { %v2726_v44 = vpop.f32.mrf.mxu0 }
0x108d   :  { %v4336_v41 = vpack.i.bf16 %v2726_v44, %v2723_v53 }
0x108e   :  { %v4156_v59 = vpop.f32.mrf.mxu0 }
0x108f   :  { %4337 = vrot.lane.b32.xlu0 %v4336_v41, %s4689_s14 }
0x1090   :  { %v2731_v57 = vpop.f32.mrf.mxu0 }
0x1092   :  { %v4159_v58 = vpop.f32.mrf.mxu0 }
0x1094   :  { %v2734_v30 = vpop.f32.mrf.mxu0 }
0x1095   :  { %v4351_v47 = vpack.i.bf16 %v2734_v30, %v2731_v57 }
0x1096   :  { %v4160_v36 = vpop.f32.mrf.mxu0 }
0x1099   :  { %v2946_v6 = vpop.f32.mrf.mxu0 }
0x109b   :  { %v4187_v9 = vpop.f32.mrf.mxu0 }
0x109d   :  { %v2949_v43 = vpop.f32.mrf.mxu0 }
0x109e   :  { %v4326_v18 = vpack.i.bf16 %v2949_v43, %v2946_v6 }
0x109f   :  { %v4188_v62 = vpop.f32.mrf.mxu0 }
0x10a0   :  { %4327 = vrot.lane.b32.xlu1 %v4326_v18, %s4690_s15 }
0x10a3   :  { %v2878_v28 = vpop.xlane.xlu0 %2877 }
0x10a4   :  { %4622 = vrcp.f32 %v2878_v28 }
0x10a5   :  { %v2954_v23 = vpop.f32.mrf.mxu0 }
0x10a7   :  { %v4191_v26 = vpop.f32.mrf.mxu0 }
0x10a9   :  { %v2957_v32 = vpop.f32.mrf.mxu0 }
0x10aa   :  { %v4341_v11 = vpack.i.bf16 %v2957_v32, %v2954_v23  ;;  %v6183_v32 = vld [vmem:[%s6369_s7 + $0x8] sm:$0xff] }
0x10ab   :  { %v4192_v10 = vpop.f32.mrf.mxu0 }
0x10ac   :  { %4342 = vrot.lane.b32.xlu0 %v4341_v11, %s4690_s15  ;;  %v6188_v11 = vrot.slane %v6183_v32, %v1440_v2 }
0x10b0   :  { %4347 = vrot.lane.b32.xlu0 %v4346_v50, %s4688_s30 }
0x10b1   :  { %v4623_v51 = vpop.eup %4622 }
0x10b2   :  { %v2890_v34 = vmul.f32 %v4623_v51, %v6120_v27 }
0x10b4   :  { %4352 = vrot.lane.b32.xlu0 %v4351_v47, %s4689_s14  ;;  %v2893_v25 = vpack.c.bf16 %v2890_v34, %v2889_v19 }
0x10b6   :  { %4194 = vmatmul.mubr.msk.bf16.gmra.mxu0 %vm72_vm1, %v2893_v25 }
0x10b7   :  { %4217 = vmatprep.mubr.msk.bf16.mxu0 %vm4675_vm0, %v4674_v1 }
0x10e1   :  { %v4318_v56 = vpop.permute.xlu0 %4317 }
0x10e2   :  { %v4320_v40 = vunpack.i.h.bf16 %v4318_v56  ;;  %v4319_v45 = vunpack.i.l.bf16 %v4318_v56 }
0x10e4   :  { %v3042_v37 = vsel %vm426_vm3, %v6126_v8, %v4320_v40  ;;  %v3041_v27 = vsel %vm426_vm3, %v6124_v60, %v4319_v45 }
0x10f9   :  { %v4323_v31 = vpop.permute.xlu0 %4322 }
0x10fa   :  { %v4325_v0 = vunpack.i.h.bf16 %v4323_v31  ;;  %v4324_v13 = vunpack.i.l.bf16 %v4323_v31 }
0x10fc   :  { %v3048_v4 = vsel %vm1417_vm8, %v3042_v37, %v4325_v0  ;;  %v3047_v22 = vsel %vm1417_vm8, %v3041_v27, %v4324_v13 }
0x10fd   :  { %v4333_v52 = vpop.permute.xlu0 %4332 }
0x10fe   :  { %v4335_v8 = vunpack.i.h.bf16 %v4333_v52  ;;  %v4334_v60 = vunpack.i.l.bf16 %v4333_v52 }
0x1100   :  { %v3044_v58 = vsel %vm426_vm3, %v6130_v49, %v4335_v8  ;;  %v3043_v30 = vsel %vm426_vm3, %v6128_v55, %v4334_v60 }
0x1101   :  { %v4338_v44 = vpop.permute.xlu0 %4337 }
0x1102   :  { %v4340_v41 = vunpack.i.h.bf16 %v4338_v44  ;;  %v4339_v59 = vunpack.i.l.bf16 %v4338_v44 }
0x1104   :  { %v3050_v9 = vsel %vm1417_vm8, %v3044_v58, %v4340_v41  ;;  %v3049_v43 = vsel %vm1417_vm8, %v3043_v30, %v4339_v59 }
0x1112   :  { %v4328_v42 = vpop.permute.xlu1 %4327 }
0x1113   :  { %v4330_v17 = vunpack.i.h.bf16 %v4328_v42  ;;  %v4329_v48 = vunpack.i.l.bf16 %v4328_v42 }
0x1115   :  { %v3054_v53 = vsel %vm1424_vm9, %v3048_v4, %v4330_v17  ;;  %v3053_v16 = vsel %vm1424_vm9, %v3047_v22, %v4329_v48 }
0x1116   :  { %v3059_v33 = vpack.c.bf16 %v3054_v53, %v3053_v16 }
0x1118   :  { %4202 = vmatmul.mubr.msk.bf16.vlgmr.msra.gmra.mxu1 %vm225_vm2, %v3059_v33 }
0x1119   :  { %4205 = vmatprep.mubr.msk.bf16.mxu1 %vm4675_vm0, %v4674_v1 }
0x111e   :  { %v4343_v57 = vpop.permute.xlu0 %4342 }
0x111f   :  { %v4345_v36 = vunpack.i.h.bf16 %v4343_v57  ;;  %v4344_v6 = vunpack.i.l.bf16 %v4343_v57 }
0x1121   :  { %v3056_v18 = vsel %vm1424_vm9, %v3050_v9, %v4345_v36  ;;  %v3055_v12 = vsel %vm1424_vm9, %v3049_v43, %v4344_v6 }
0x1122   :  { %v3060_v62 = vpack.c.bf16 %v3056_v18, %v3055_v12  ;;  %v4348_v31 = vpop.permute.xlu0 %4347 }
0x1123   :  { %v4350_v17 = vunpack.i.h.bf16 %v4348_v31  ;;  %v4349_v48 = vunpack.i.l.bf16 %v4348_v31 }
0x1124   :  { %4206 = vmatmul.mubr.msk.bf16.gmra.mxu1 %vm225_vm2, %v3060_v62 }
0x1125   :  { %4209 = vmatprep.mubr.msk.bf16.mxu1 %vm4675_vm0, %v4674_v1  ;;  %v3046_v16 = vsel %vm426_vm3, %v6134_v54, %v4350_v17  ;;  %v3045_v33 = vsel %vm426_vm3, %v6132_v5, %v4349_v48 }
0x1176   :  { %v2962_v49 = vpop.f32.mrf.mxu0 }
0x1178   :  { %v4195_v28 = vpop.f32.mrf.mxu0 }
0x117a   :  { %v2965_v23 = vpop.f32.mrf.mxu0 }
0x117b   :  { %v4356_v55 = vpack.i.bf16 %v2965_v23, %v2962_v49 }
0x117c   :  { %v4196_v26 = vpop.f32.mrf.mxu0 }
0x117d   :  { %4357 = vrot.lane.b32.xlu1 %v4356_v55, %s4690_s15 }
0x11d8   :  { %v3126_v10 = vpop.f32.mrf.mxu1 }
0x11d9   :  { %v3127_v50 = vadd.f32 %v3126_v10, %v6188_v11 }
0x11da   :  { %v4203_v3 = vpop.f32.mrf.mxu1 }
0x11db   :  { %v6192_v51 = vadd.f32 %v3127_v50, %v5574_v63 }
0x11dc   :  { %v3129_v47 = vpop.f32.mrf.mxu1 }
0x11dd   :  { %v3130_v19 = vadd.f32 %v3129_v47, %v6188_v11  ;;  %v3155_v34 = vsel %vm225_vm2, %v6192_v51, 0.0 }
0x11de   :  { %v4204_v25 = vpop.f32.mrf.mxu1  ;;  %3156 = vadd.xlane.f32.xlu0 %v3155_v34  ;;  %v4379_v34 = vld [vmem:[%s6367_s5 + $0x10] sm:$0xff]  }
0x11df   :  { %v6198_v56 = vadd.f32 %v3130_v19, %v5579_v61  ;;  %v4353_v61 = vpop.permute.xlu0 %4352  ;;  %v4378_v19 = vld [vmem:[%s6367_s5 + $0x18] sm:$0xff]  }
0x11e0   :  { %v4355_v4 = vunpack.i.h.bf16 %v4353_v61  ;;  %v4354_v22 = vunpack.i.l.bf16 %v4353_v61  ;;  %4214 = vmatpush3.bf16.msra.mxu0 %v4378_v19 }
0x11e1   :  { %v3158_v2 = vsel %vm225_vm2, %v6198_v56, 0.0  ;;  %4215 = vmatprep.subr.bf16.mxu0 %v4674_v1 }
0x11e2   :  { %3159 = vadd.xlane.f32.xlu1 %v3158_v2  ;;  %v3052_v60 = vsel %vm1417_vm8, %v3046_v16, %v4355_v4 }
0x11e4   :  { %v3134_v40 = vpop.f32.mrf.mxu1  ;;  %4216 = vmatpush3.bf16.msra.mxu0 %v4379_v34  ;;  %v4380_v34 = vld [vmem:[%s6368_s6 + $0x38] sm:$0xff]  }
0x11e5   :  { %v3135_v63 = vadd.f32 %v3134_v40, %v6188_v11  ;;  %4230 = vmatpush3.bf16.msra.mxu1 %v4380_v34 }
0x11e6   :  { %v4207_v45 = vpop.f32.mrf.mxu1  ;;  %4231 = vmatprep.subr.bf16.mxu1 %v4674_v1 }
0x11e7   :  { %v6204_v0 = vadd.f32 %v3135_v63, %v5584_v46 }
0x11e8   :  { %v3137_v13 = vpop.f32.mrf.mxu1 }
0x11e9   :  { %v3138_v42 = vadd.f32 %v3137_v13, %v6188_v11  ;;  %v3161_v37 = vsel %vm225_vm2, %v6204_v0, 0.0 }
0x11ea   :  { %3162 = vadd.xlane.f32.xlu0 %v3161_v37  ;;  %v4208_v27 = vpop.f32.mrf.mxu1 }
0x11eb   :  { %v6210_v52 = vadd.f32 %v3138_v42, %v5589_v38  ;;  %v3051_v38 = vsel %vm1417_vm8, %v3045_v33, %v4354_v22 }
0x11ed   :  { %v3164_v46 = vsel %vm225_vm2, %v6210_v52, 0.0 }
0x11ee   :  { %3165 = vadd.xlane.f32.xlu0 %v3164_v46 }
0x11ef   :  { %v4358_v53 = vpop.permute.xlu1 %4357 }
0x11f0   :  { %v4360_v44 = vunpack.i.h.bf16 %v4358_v53  ;;  %v4359_v8 = vunpack.i.l.bf16 %v4358_v53 }
0x11f2   :  { %v3058_v41 = vsel %vm1424_vm9, %v3052_v60, %v4360_v44  ;;  %v3057_v59 = vsel %vm1424_vm9, %v3051_v38, %v4359_v8  ;;  %v6255_v44 = vrot.slane %v6183_v32, %v1606_v14 }
0x11f3   :  { %v3061_v57 = vpack.c.bf16 %v3058_v41, %v3057_v59  ;;  %v6260_v41 = vrot.slane %v6183_v32, %v1616_v35 }
0x11f5   :  { %4210 = vmatmul.mubr.msk.bf16.gmra.mxu1 %vm225_vm2, %v3061_v57 }
0x11f6   :  { %4237 = vmatprep.mubr.msk.bf16.mxu1 %vm4675_vm0, %v4674_v1 }
0x1267   :  { %v3157_v54 = vpop.xlane.xlu0 %3156 }
0x1268   :  { %v3173_v58 = vmul.f32 0.03125, %v3157_v54 }
0x126a   :  { %v3179_v5 = vsub.f32 %v6192_v51, %v3173_v58 }
0x126b   :  { %v3160_v30 = vpop.xlane.xlu1 %3159 }
0x126c   :  { %v3174_v36 = vmul.f32 0.03125, %v3160_v30  ;;  %v3185_v6 = vmul.f32 %v3179_v5, %v3179_v5 }
0x126e   :  { %v3180_v9 = vsub.f32 %v6198_v56, %v3174_v36  ;;  %v3191_v43 = vsel %vm225_vm2, %v3185_v6, 0.0 }
0x126f   :  { %3192 = vadd.xlane.f32.xlu1 %v3191_v43 }
0x1270   :  { %v3186_v18 = vmul.f32 %v3180_v9, %v3180_v9 }
0x1272   :  { %v3194_v12 = vsel %vm225_vm2, %v3186_v18, 0.0 }
0x1273   :  { %v3163_v62 = vpop.xlane.xlu0 %3162  ;;  %3195 = vadd.xlane.f32.xlu0 %v3194_v12 }
0x1274   :  { %v3175_v49 = vmul.f32 0.03125, %v3163_v62 }
0x1276   :  { %v3181_v28 = vsub.f32 %v6204_v0, %v3175_v49 }
0x1277   :  { %v3166_v23 = vpop.xlane.xlu0 %3165 }
0x1278   :  { %v3176_v55 = vmul.f32 0.03125, %v3166_v23  ;;  %v3187_v26 = vmul.f32 %v3181_v28, %v3181_v28 }
0x127a   :  { %v3182_v10 = vsub.f32 %v6210_v52, %v3176_v55  ;;  %v3197_v50 = vsel %vm225_vm2, %v3187_v26, 0.0 }
0x127b   :  { %3198 = vadd.xlane.f32.xlu1 %v3197_v50 }
0x127c   :  { %v3188_v3 = vmul.f32 %v3182_v10, %v3182_v10 }
0x127e   :  { %v3200_v47 = vsel %vm225_vm2, %v3188_v3, 0.0 }
0x127f   :  { %3201 = vadd.xlane.f32.xlu0 %v3200_v47 }
0x12b5   :  { %v3142_v25 = vpop.f32.mrf.mxu1 }
0x12b6   :  { %v3143_v2 = vadd.f32 %v3142_v25, %v6188_v11  ;;  %v4381_v25 = vld [vmem:[%s6368_s6 + $0x30] sm:$0xff]  }
0x12b7   :  { %v4211_v31 = vpop.f32.mrf.mxu1  ;;  %4232 = vmatpush3.bf16.msra.mxu1 %v4381_v25 }
0x12b8   :  { %v6242_v40 = vadd.f32 %v3143_v2, %v5594_v15  ;;  %4233 = vmatprep.subr.bf16.mxu1 %v4674_v1  ;;  %v4382_v2 = vld [vmem:[%s6368_s6 + $0x28] sm:$0xff]   ;;  %v4383_v31 = vld [vmem:[%s6368_s6 + $0x20] sm:$0xff]  }
0x12b9   :  { %v3145_v63 = vpop.f32.mrf.mxu1 }
0x12ba   :  { %v3146_v45 = vadd.f32 %v3145_v63, %v6188_v11  ;;  %v3167_v13 = vsel %vm225_vm2, %v6242_v40, 0.0  ;;  %v6298_v63 = vrot.slane %v6183_v32, %v1633_v7 }
0x12bb   :  { %3168 = vadd.xlane.f32.xlu1 %v3167_v13  ;;  %v4212_v42 = vpop.f32.mrf.mxu1  ;;  %4234 = vmatpush3.bf16.msra.mxu1 %v4382_v2 }
0x12bc   :  { %v6248_v37 = vadd.f32 %v3146_v45, %v5599_v20  ;;  %4235 = vmatprep.subr.bf16.mxu1 %v4674_v1 }
0x12be   :  { %v3170_v61 = vsel %vm225_vm2, %v6248_v37, 0.0 }
0x12bf   :  { %3171 = vadd.xlane.f32.xlu0 %v3170_v61  ;;  %4236 = vmatpush3.bf16.msra.mxu1 %v4383_v31 }
0x12f8   :  { %v3193_v27 = vpop.xlane.xlu1 %3192 }
0x12f9   :  { %v3209_v17 = vmul.f32 0.03125, %v3193_v27 }
0x12fb   :  { %v3215_v48 = vadd.f32 1e-06, %v3209_v17 }
0x12fc   :  { %v3196_v15 = vpop.xlane.xlu0 %3195 }
0x12fd   :  { %4624 = vrsqrt.f32 %v3215_v48  ;;  %v3210_v4 = vmul.f32 0.03125, %v3196_v15 }
0x12ff   :  { %v3216_v22 = vadd.f32 1e-06, %v3210_v4 }
0x1301   :  { %4626 = vrsqrt.f32 %v3216_v22 }
0x1304   :  { %v3199_v11 = vpop.xlane.xlu1 %3198 }
0x1305   :  { %v3211_v46 = vmul.f32 0.03125, %v3199_v11 }
0x1307   :  { %v3217_v53 = vadd.f32 1e-06, %v3211_v46 }
0x1308   :  { %v3202_v16 = vpop.xlane.xlu0 %3201 }
0x1309   :  { %4628 = vrsqrt.f32 %v3217_v53  ;;  %v3212_v33 = vmul.f32 0.03125, %v3202_v16 }
0x130a   :  { %v4625_v20 = vpop.eup %4624 }
0x130b   :  { %v3227_v8 = vmul.f32 %v4625_v20, %v3179_v5  ;;  %v3218_v38 = vadd.f32 1e-06, %v3212_v33 }
0x130d   :  { %4630 = vrsqrt.f32 %v3218_v38  ;;  %v3237_v59 = vmul.f32 %v6255_v44, %v3227_v8 }
0x130e   :  { %v4627_v60 = vpop.eup %4626 }
0x130f   :  { %v3228_v57 = vmul.f32 %v4627_v60, %v3180_v9  ;;  %v3247_v58 = vadd.f32 %v6260_v41, %v3237_v59 }
0x1311   :  { %v3238_v54 = vmul.f32 %v6255_v44, %v3228_v57 }
0x1313   :  { %v3248_v30 = vadd.f32 %v6260_v41, %v3238_v54 }
0x1315   :  { %v3253_v14 = vpack.c.bf16 %v3248_v30, %v3247_v58 }
0x1316   :  { %v4629_v36 = vpop.eup %4628 }
0x1317   :  { %v3229_v5 = vmul.f32 %v4629_v36, %v3181_v28  ;;  %4218 = vmatmul.mubr.msk.bf16.vlgmr.msra.gmra.mxu0 %vm225_vm2, %v3253_v14 }
0x1318   :  { %4221 = vmatprep.mubr.msk.bf16.mxu0 %vm4675_vm0, %v4674_v1 }
0x1319   :  { %v3239_v43 = vmul.f32 %v6255_v44, %v3229_v5 }
0x131a   :  { %v4631_v6 = vpop.eup %4630 }
0x131b   :  { %v3230_v35 = vmul.f32 %v4631_v6, %v3182_v10  ;;  %v3249_v18 = vadd.f32 %v6260_v41, %v3239_v43 }
0x131d   :  { %v3240_v9 = vmul.f32 %v6255_v44, %v3230_v35 }
0x131f   :  { %v3250_v12 = vadd.f32 %v6260_v41, %v3240_v9 }
0x1321   :  { %v3254_v62 = vpack.c.bf16 %v3250_v12, %v3249_v18 }
0x1323   :  { %4222 = vmatmul.mubr.msk.bf16.gmra.mxu0 %vm225_vm2, %v3254_v62 }
0x1324   :  { %4225 = vmatprep.mubr.msk.bf16.mxu0 %vm4675_vm0, %v4674_v1 }
0x1344   :  { %v3169_v49 = vpop.xlane.xlu1 %3168 }
0x1345   :  { %v3177_v28 = vmul.f32 0.03125, %v3169_v49 }
0x1347   :  { %v3183_v23 = vsub.f32 %v6242_v40, %v3177_v28 }
0x1348   :  { %v3172_v55 = vpop.xlane.xlu0 %3171 }
0x1349   :  { %v3178_v26 = vmul.f32 0.03125, %v3172_v55  ;;  %v3189_v10 = vmul.f32 %v3183_v23, %v3183_v23 }
0x134b   :  { %v3184_v50 = vsub.f32 %v6248_v37, %v3178_v26  ;;  %v3203_v3 = vsel %vm225_vm2, %v3189_v10, 0.0 }
0x134c   :  { %3204 = vadd.xlane.f32.xlu1 %v3203_v3 }
0x134d   :  { %v3190_v47 = vmul.f32 %v3184_v50, %v3184_v50 }
0x134f   :  { %v3206_v19 = vsel %vm225_vm2, %v3190_v47, 0.0 }
0x1350   :  { %3207 = vadd.xlane.f32.xlu0 %v3206_v19 }
0x13d5   :  { %v3205_v45 = vpop.xlane.xlu1 %3204 }
0x13d6   :  { %v3213_v13 = vmul.f32 0.03125, %v3205_v45 }
0x13d7   :  { %v3320_v42 = vpop.f32.mrf.mxu0 }
0x13d8   :  { %v3219_v61 = vadd.f32 1e-06, %v3213_v13  ;;  %v3321_v27 = vadd.f32 %v3320_v42, %v6298_v63 }
0x13d9   :  { %v3208_v17 = vpop.xlane.xlu0 %3207  ;;  %v4219_v48 = vpop.f32.mrf.mxu0 }
0x13da   :  { %4632 = vrsqrt.f32 %v3219_v61  ;;  %v3349_v15 = vmul.f32 0.70710677, %v3321_v27  ;;  %v3214_v4 = vmul.f32 0.03125, %v3208_v17  ;;  %v3343_v43 = vmul.f32 0.5, %v3321_v27 }
0x13db   :  { %v3323_v22 = vpop.f32.mrf.mxu0 }
0x13dc   :  { %4634 = verf.f32 %v3349_v15  ;;  %v3220_v11 = vadd.f32 1e-06, %v3214_v4  ;;  %v3324_v46 = vadd.f32 %v3323_v22, %v6298_v63 }
0x13dd   :  { %v4220_v53 = vpop.f32.mrf.mxu0 }
0x13de   :  { %4636 = vrsqrt.f32 %v3220_v11  ;;  %v3350_v7 = vmul.f32 0.70710677, %v3324_v46  ;;  %v3344_v9 = vmul.f32 0.5, %v3324_v46 }
0x13e0   :  { %4638 = verf.f32 %v3350_v7 }
0x13e3   :  { %v3328_v16 = vpop.f32.mrf.mxu0 }
0x13e4   :  { %v3329_v33 = vadd.f32 %v3328_v16, %v6298_v63 }
0x13e5   :  { %v4223_v20 = vpop.f32.mrf.mxu0 }
0x13e6   :  { %v3351_v8 = vmul.f32 0.70710677, %v3329_v33  ;;  %v3345_v47 = vmul.f32 0.5, %v3329_v33 }
0x13e7   :  { %v4633_v38 = vpop.eup %4632  ;;  %v3331_v60 = vpop.f32.mrf.mxu0 }
0x13e8   :  { %v3231_v59 = vmul.f32 %v4633_v38, %v3183_v23  ;;  %4640 = verf.f32 %v3351_v8  ;;  %v3332_v57 = vadd.f32 %v3331_v60, %v6298_v63 }
0x13e9   :  { %v4635_v54 = vpop.eup %4634  ;;  %v4224_v58 = vpop.f32.mrf.mxu0 }
0x13ea   :  { %v3352_v30 = vmul.f32 0.70710677, %v3332_v57  ;;  %v3361_v36 = vadd.f32 1.0, %v4635_v54  ;;  %v3241_v6 = vmul.f32 %v6255_v44, %v3231_v59 }
0x13eb   :  { %v4637_v14 = vpop.eup %4636 }
0x13ec   :  { %v3232_v5 = vmul.f32 %v4637_v14, %v3184_v50  ;;  %4642 = verf.f32 %v3352_v30  ;;  %v3367_v62 = vmul.f32 %v3361_v36, %v3343_v43  ;;  %v3251_v28 = vadd.f32 %v6260_v41, %v3241_v6 }
0x13ed   :  { %v4639_v35 = vpop.eup %4638 }
0x13ee   :  { %v3362_v18 = vadd.f32 1.0, %v4639_v35  ;;  %v3242_v12 = vmul.f32 %v6255_v44, %v3232_v5  ;;  %v3346_v44 = vmul.f32 0.5, %v3332_v57 }
0x13f0   :  { %v3368_v49 = vmul.f32 %v3362_v18, %v3344_v9  ;;  %v3252_v23 = vadd.f32 %v6260_v41, %v3242_v12  ;;  %v3388_v41 = vrot.slane %v6183_v32, %v1756_v21 }
0x13f2   :  { %v3373_v55 = vpack.c.bf16 %v3368_v49, %v3367_v62  ;;  %v3255_v26 = vpack.c.bf16 %v3252_v23, %v3251_v28 }
0x13f4   :  { %4226 = vmatmul.mubr.msk.bf16.gmra.mxu0 %vm225_vm2, %v3255_v26  ;;  %4238 = vmatmul.mubr.msk.bf16.vlgmr.msra.gmra.mxu1 %vm1782_vm10, %v3373_v55 }
0x13f5   :  { %v4641_v10 = vpop.eup %4640  ;;  %4241 = vmatprep.mubr.msk.bf16.mxu1 %vm4675_vm0, %v4674_v1 }
0x13f6   :  { %v3363_v50 = vadd.f32 1.0, %v4641_v10 }
0x13f8   :  { %v3369_v34 = vmul.f32 %v3363_v50, %v3345_v47 }
0x13f9   :  { %v4643_v3 = vpop.eup %4642 }
0x13fa   :  { %v3364_v19 = vadd.f32 1.0, %v4643_v3 }
0x13fc   :  { %v3370_v25 = vmul.f32 %v3364_v19, %v3346_v44 }
0x13fe   :  { %v3374_v2 = vpack.c.bf16 %v3370_v25, %v3369_v34 }
0x1400   :  { %4242 = vmatmul.mubr.msk.bf16.gmra.mxu1 %vm1782_vm10, %v3374_v2 }
0x1401   :  { %4245 = vmatprep.mubr.msk.bf16.mxu1 %vm4675_vm0, %v4674_v1 }
0x14b4   :  { %v3336_v31 = vpop.f32.mrf.mxu0  ;;  %v3456_v45 = vpop.f32.mrf.mxu1 }
0x14b5   :  { %v3337_v13 = vadd.f32 %v3336_v31, %v6298_v63  ;;  %v3457_v42 = vadd.f32 %v3456_v45, %v3388_v41 }
0x14b6   :  { %v4227_v61 = vpop.f32.mrf.mxu0  ;;  %v4239_v27 = vpop.f32.mrf.mxu1 }
0x14b7   :  { %v3353_v17 = vmul.f32 0.70710677, %v3337_v13  ;;  %v3479_v48 = vadd.f32 %v3457_v42, %v6192_v51  ;;  %v3347_v60 = vmul.f32 0.5, %v3337_v13 }
0x14b8   :  { %v3339_v15 = vpop.f32.mrf.mxu0  ;;  %v3459_v4 = vpop.f32.mrf.mxu1 }
0x14b9   :  { %4644 = verf.f32 %v3353_v17  ;;  %3485 = vst.msk [vmem:[%s6370_s8] sm:$0xff] %vm225_vm2, %v3479_v48  ;;  %v3340_v1 = vadd.f32 %v3339_v15, %v6298_v63  ;;  %v3460_v24 = vadd.f32 %v3459_v4, %v3388_v41 }
0x14ba   :  { %v4228_v21 = vpop.f32.mrf.mxu0  ;;  %v4240_v32 = vpop.f32.mrf.mxu1 }
0x14bb   :  { %v3354_v22 = vmul.f32 0.70710677, %v3340_v1  ;;  %v3480_v11 = vadd.f32 %v3460_v24, %v6198_v56  ;;  %v3348_v59 = vmul.f32 0.5, %v3340_v1 }
0x14bd   :  { %4646 = verf.f32 %v3354_v22  ;;  %3486 = vst.msk [vmem:[%s6370_s8 + $0x8] sm:$0xff] %vm225_vm2, %v3480_v11 }
0x14c0   :  { %v3464_v51 = vpop.f32.mrf.mxu1 }
0x14c1   :  { %v3465_v46 = vadd.f32 %v3464_v51, %v3388_v41 }
0x14c2   :  { %v4243_v53 = vpop.f32.mrf.mxu1 }
0x14c3   :  { %v3481_v7 = vadd.f32 %v3465_v46, %v6204_v0 }
0x14c4   :  { %v3467_v16 = vpop.f32.mrf.mxu1 }
0x14c5   :  { %3487 = vst.msk [vmem:[%s6370_s8 + $0x10] sm:$0xff] %vm225_vm2, %v3481_v7  ;;  %v3468_v63 = vadd.f32 %v3467_v16, %v3388_v41 }
0x14c6   :  { %v4645_v33 = vpop.eup %4644  ;;  %v4244_v56 = vpop.f32.mrf.mxu1 }
0x14c7   :  { %v3482_v20 = vadd.f32 %v3468_v63, %v6210_v52  ;;  %v3365_v8 = vadd.f32 1.0, %v4645_v33 }
0x14c9   :  { %3488 = vst.msk [vmem:[%s6370_s8 + $0x18] sm:$0xff] %vm225_vm2, %v3482_v20  ;;  %v3494_v38 = vrot.slane %v3482_v20, 7  ;;  %v3371_v30 = vmul.f32 %v3365_v8, %v3347_v60 }
0x14ca   :  { %v4647_v0 = vpop.eup %4646 }
0x14cb   :  { %v3366_v57 = vadd.f32 1.0, %v4647_v0  ;;  %v3497_v54 = vsel %vm3496_vm11, %v3479_v48, %v3494_v38 }
0x14cc   :  { %v3499_v58 = vsel %vm3498_vm12, %v3497_v54, 0.0 }
0x14cd   :  { %v3372_v14 = vmul.f32 %v3366_v57, %v3348_v59  ;;  %3500 = vadd.xlane.f32.xlu1 %v3499_v58 }
0x14cf   :  { %v3375_v52 = vpack.c.bf16 %v3372_v14, %v3371_v30 }
0x14d1   :  { %4246 = vmatmul.mubr.msk.bf16.gmra.mxu1 %vm1782_vm10, %v3375_v52 }
0x1556   :  { %v3501_v36 = vpop.xlane.xlu1 %3500 }
0x1557   :  { %v3502_v5 = vmul.f32 0.03125, %v3501_v36 }
0x1559   :  { %v3503_v6 = vsub.f32 %v3497_v54, %v3502_v5 }
0x155b   :  { %v3504_v35 = vmul.f32 %v3503_v6, %v3503_v6 }
0x155d   :  { %v3505_v43 = vsel %vm3498_vm12, %v3504_v35, 0.0 }
0x155e   :  { %3506 = vadd.xlane.f32.xlu0 %v3505_v43 }
0x1591   :  { %v3472_v9 = vpop.f32.mrf.mxu1 }
0x1592   :  { %v3473_v18 = vadd.f32 %v3472_v9, %v3388_v41 }
0x1593   :  { %v4247_v12 = vpop.f32.mrf.mxu1 }
0x1594   :  { %v3483_v62 = vadd.f32 %v3473_v18, %v6242_v40  ;;  %v3660_v40 = vld [vmem:[%s6369_s7 + $0x10] sm:$0xff] }
0x1595   :  { %v3475_v49 = vpop.f32.mrf.mxu1  ;;  %v3515_v3 = vrot.slane %v3660_v40, %v4877_v29  ;;  %v3520_v19 = vrot.slane %v3660_v40, %v4885_v39 }
0x1596   :  { %3489 = vst.msk [vmem:[%s6370_s8 + $0x20] sm:$0xff] %vm225_vm2, %v3483_v62  ;;  %v3476_v28 = vadd.f32 %v3475_v49, %v3388_v41 }
0x1597   :  { %v4248_v23 = vpop.f32.mrf.mxu1 }
0x1598   :  { %v3484_v55 = vadd.f32 %v3476_v28, %v6248_v37 }
0x159a   :  { %3490 = vst.msk [vmem:[%s6370_s8 + $0x28] sm:$0xff] %vm225_vm2, %v3484_v55  ;;  %s4652_s8 = scalar_lea.vmem %s3532_s24, 32 }
0x159b   :  { %p4653_p0 = scmp.ne.s32.totalorder %s3532_s24, %s4652_s8  ;;  %p4658_p2 = scmp.lt.s32.totalorder %s4652_s8, %s4652_s8 }
0x159d   :  { %p4659_p3 = por %p4658_p2, %p4657_p1 }
0x159f   :  { %p4660_p4 = pnand %p4659_p3, %p4653_p0 }
0x15e7   :  { %v3507_v26 = vpop.xlane.xlu0 %3506 }
0x15e8   :  { %v3508_v10 = vmul.f32 0.03125, %v3507_v26 }
0x15ea   :  { %v3509_v50 = vadd.f32 1e-06, %v3508_v10 }
0x15ec   :  { %4648 = vrsqrt.f32 %v3509_v50 }
0x15f9   :  { %v4649_v47 = vpop.eup %4648 }
0x15fa   :  { %v3511_v44 = vmul.f32 %v4649_v47, %v3503_v6 }
0x15fc   :  { %v3516_v37 = vmul.f32 %v3515_v3, %v3511_v44 }
0x15fe   :  { %v3521_v34 = vadd.f32 %v3520_v19, %v3516_v37 }
0x1600   :  { %3522 = vst.msk [vmem:[#allocation2] sm:$0x3] %vm3498_vm12, %v3521_v34 }
0x1601   :  { %4663 = shalt.err (!%p4660_p4)
}
0x1602   :  { %3534 = dma.vmem_to_hbm [thread:$0]  %s3532_s24, 32, %s6371_s9, [#allocation3]  }
0x1603   :  { %4672 = dma.done.wait [#allocation3], 32  }
0x1604   :  { %4673 = vsyncadd [#allocation3], 4294967264 }
0x1605   :  { %3540 = vsyncpa [#allocation3], 1 }

</bundles_post_ra>
